<compile_context>
chip_gen: v7x
topology: tpu7x:2x2x1
jax: 0.10.0
libtpu: 0.0.40
codegen_flags: <defaults>
</compile_context>

<pallas_src>
import functools

import jax
import jax.numpy as jnp
import numpy as np
from jax.experimental import pallas as pl
from jax.experimental.pallas import tpu as pltpu


def get_padding(kernel_size, dilation=1):
    return (kernel_size * dilation - dilation) // 2


# ----------------- Pallas kernel: whole AMPBlock1, one time tile -------------
def _amp_block_kernel(xp_ref, xc_ref, xn_ref, w_ref, prm_ref, o_ref, *,
                      dilations, K, C, t_tile, halo, t_total):
    half = (K - 1) // 2
    L0 = t_tile + 2 * halo                         # halo'd window length

    # Global time index of window-local position 0 for this tile; one shared
    # (1, L0) validity plane replaces the old per-tap (C, T) masks.
    g0 = pl.program_id(1) * t_tile - halo
    pos = jax.lax.broadcasted_iota(jnp.int32, (1, L0), 1) + g0
    gmask = ((pos >= 0) & (pos < t_total)).astype(jnp.bfloat16)  # 0/1 exact

    # Assemble the halo'd window [left halo | tile | right halo]; residual
    # path is carried in f32. Out-of-sequence halo data is neutralized by
    # gmask before every conv, so no explicit zeroing is required here.
    x = jnp.concatenate(
        [xp_ref[:, t_tile - halo:], xc_ref[...], xn_ref[:, :halo]],
        axis=1).astype(jnp.float32)                # (C, L0)

    def snake(v, col):
        # v + sin(v*alpha)^2 * inv_beta ; alpha/inv_beta precomputed (C,1) f32
        alpha = prm_ref[:, col:col + 1]
        inv_b = prm_ref[:, col + 1:col + 2]
        s = jnp.sin(v * alpha)
        return v + (s * s) * inv_b

    def conv(v, w_idx, bias_col, d, s):
        # 'valid' dilated conv over the window via K accumulating per-tap
        # matmuls; 'same' zero-padding at the true sequence boundaries is
        # recovered by masking the (bf16) conv input with the global mask.
        Lin = v.shape[1]
        Lout = Lin - d * (K - 1)
        vb = v.astype(jnp.bfloat16) * gmask[:, s:s + Lin]
        acc = None
        for k in range(K):
            tap = vb[:, k * d:k * d + Lout]                    # static slice
            part = jnp.dot(w_ref[w_idx, k], tap,
                           preferred_element_type=jnp.float32)  # MXU, f32 acc
            acc = part if acc is None else acc + part
        return acc + prm_ref[:, bias_col:bias_col + 1]

    s = 0                                           # current left trim (coords)
    for l, d in enumerate(dilations):
        base = 6 * l
        xt = snake(x, base + 0)
        xt = conv(xt, 2 * l, base + 2, d, s)
        xt = snake(xt, base + 3)
        xt = conv(xt, 2 * l + 1, base + 5, 1, s + d * half)
        trim = (d + 1) * half
        x = x[:, trim:x.shape[1] - trim] + xt       # residual, shrunk window
        s += trim

    o_ref[...] = x.astype(o_ref.dtype)              # (C, t_tile), halo cropped


def amp_block1_pallas(x, params, *, dilation=(1, 3, 5), kernel_size=3,
                      t_tile=None):
    N, C, T = x.shape
    K = kernel_size
    L = len(dilation)
    assert K % 2 == 1, "odd kernel_size expected (symmetric 'same' padding)"
    half = (K - 1) // 2
    halo = half * sum(d + 1 for d in dilation)      # cumulative receptive field

    if t_tile is None:
        # Production: 1-2k on v7x, larger on v5e/v6e. Never overshoot T.
        t_tile = min(2048, max(128, ((T + 127) // 128) * 128))
    assert t_tile % 128 == 0, "t_tile must be a multiple of 128 (lane tiling)"
    nt = pl.cdiv(T, t_tile)
    T_pad = nt * t_tile
    x_p = x if T_pad == T else jnp.pad(x, ((0, 0), (0, 0), (0, T_pad - T)))

    # ---- glue: per-tap weight layout + packed per-channel params ------------
    mats, cols = [], []
    for p in params:
        for w in (p["w1"], p["w2"]):
            mats.append(jnp.transpose(w, (2, 0, 1)))          # (K, Cout, Cin)
        cols += [jnp.exp(p["la1"]), 1.0 / (jnp.exp(p["lb1"]) + 1e-9), p["b1"],
                 jnp.exp(p["la2"]), 1.0 / (jnp.exp(p["lb2"]) + 1e-9), p["b2"]]
    w_all = jnp.stack(mats).astype(jnp.bfloat16)               # (2L, K, C, C)
    prm = jnp.stack(cols, axis=1).astype(jnp.float32)          # (C, 6L)

    kernel = functools.partial(
        _amp_block_kernel, dilations=tuple(dilation), K=K, C=C,
        t_tile=t_tile, halo=halo, t_total=T)

    itemsize = jnp.dtype(x.dtype).itemsize
    # VMEM budget: double-buffered tiles (3 input views + 1 output), weights,
    # params, and the fused chain's f32/bf16 temporaries.
    est = (2 * 4 * C * t_tile * itemsize
           + 2 * w_all.size * 2 + 2 * prm.size * 4
           + 10 * C * (t_tile + 2 * halo) * 4)
    vmem_limit = int(min(64 * 2 ** 20, max(32 * 2 ** 20, est * 3 // 2)))

    cost = pl.CostEstimate(
        flops=int(2 * N * (2 * L) * K * C * C * T_pad),
        transcendentals=int(N * (2 * L) * C * T_pad),
        bytes_accessed=int(4 * N * C * T_pad * itemsize
                           + w_all.size * 2 + prm.size * 4))

    xio = lambda n, t: (n, 0, t)
    out = pl.pallas_call(
        kernel,
        out_shape=jax.ShapeDtypeStruct((N, C, T_pad), x.dtype),
        grid=(N, nt),
        in_specs=[
            # prev / cur / next time blocks (clamped) supply the halo context.
            pl.BlockSpec((None, C, t_tile),
                         lambda n, t: (n, 0, jnp.maximum(t - 1, 0))),
            pl.BlockSpec((None, C, t_tile), xio),
            pl.BlockSpec((None, C, t_tile),
                         lambda n, t: (n, 0, jnp.minimum(t + 1, nt - 1))),
            pl.BlockSpec((2 * L, K, C, C), lambda n, t: (0, 0, 0, 0)),
            pl.BlockSpec((C, 6 * L), lambda n, t: (0, 0)),
        ],
        out_specs=pl.BlockSpec((None, C, t_tile), xio),
        compiler_params=pltpu.CompilerParams(
            dimension_semantics=("parallel", "parallel"),
            vmem_limit_bytes=vmem_limit),
        cost_estimate=cost,
    )(x_p, x_p, x_p, w_all, prm)

    return out[:, :, :T] if T_pad != T else out


# ------------------------------ pure-JAX reference ---------------------------
def _snakebeta_ref(x, la, lb):
    a = jnp.exp(la)[None, :, None]
    b = jnp.exp(lb)[None, :, None]
    return x + (jnp.sin(x * a) ** 2) / (b + 1e-9)


def _conv1d_ref(x, w, bias, d):
    N, C, T = x.shape
    K = w.shape[-1]
    p = get_padding(K, d)
    xp = jnp.pad(x, ((0, 0), (0, 0), (p, p)))
    out = jnp.zeros((N, w.shape[0], T), jnp.float32)
    for j in range(K):
        out = out + jnp.einsum("oi,nit->not", w[:, :, j],
                               xp[:, :, j * d:j * d + T],
                               precision=jax.lax.Precision.HIGHEST)
    return out + bias[None, :, None]


def amp_block1_ref(x, params, dilation):
    for p, d in zip(params, dilation):
        xt = _snakebeta_ref(x, p["la1"], p["lb1"])
        xt = _conv1d_ref(xt, p["w1"], p["b1"], d)
        xt = _snakebeta_ref(xt, p["la2"], p["lb2"])
        xt = _conv1d_ref(xt, p["w2"], p["b2"], 1)
        x = xt + x
    return x


# ----------------------------------- main -------------------------------------
if __name__ == "__main__":
    key = jax.random.PRNGKey(0)
    # Small shapes; T=200 with t_tile=128 exercises multi-tile halo exchange,
    # the left/right sequence-boundary masks, and the pad/crop path.
    # (Production validation should use C a multiple of 128, e.g. C=512.)
    N, C, T = 2, 8, 200
    K = 3
    dilation = (1, 3, 5)

    key, kx = jax.random.split(key)
    x = jax.random.normal(kx, (N, C, T), dtype=jnp.float32)

    params = []
    for _ in dilation:
        key, *ks = jax.random.split(key, 9)
        params.append(dict(
            w1=(jax.random.normal(ks[0], (C, C, K)) * 0.01).astype(jnp.float32),
            b1=(jax.random.normal(ks[1], (C,)) * 0.01).astype(jnp.float32),
            la1=(jax.random.normal(ks[2], (C,)) * 0.1).astype(jnp.float32),
            lb1=(jax.random.normal(ks[3], (C,)) * 0.1).astype(jnp.float32),
            w2=(jax.random.normal(ks[4], (C, C, K)) * 0.01).astype(jnp.float32),
            b2=(jax.random.normal(ks[5], (C,)) * 0.01).astype(jnp.float32),
            la2=(jax.random.normal(ks[6], (C,)) * 0.1).astype(jnp.float32),
            lb2=(jax.random.normal(ks[7], (C,)) * 0.1).astype(jnp.float32),
        ))

    out = amp_block1_pallas(x, params, dilation=dilation, kernel_size=K,
                            t_tile=128)
    out = jax.block_until_ready(out)

    ref = amp_block1_ref(x, params, dilation)
    np.testing.assert_allclose(np.asarray(out), np.asarray(ref),
                               atol=3e-3, rtol=3e-3)
    print("KERNEL_OK")
</pallas_src>

<mosaic_0001>
module attributes {stable_mosaic.version = 11 : i64} {
  func.func @_amp_block_kernel(%arg0: i32, %arg1: i32, %arg2: memref<1x8x128xf32, #tpu.memory_space<vmem>>, %arg3: memref<1x8x128xf32, #tpu.memory_space<vmem>>, %arg4: memref<1x8x128xf32, #tpu.memory_space<vmem>>, %arg5: memref<6x3x8x8xbf16, #tpu.memory_space<vmem>>, %arg6: memref<8x18xf32, #tpu.memory_space<vmem>>, %arg7: memref<1x8x128xf32, #tpu.memory_space<vmem>>) attributes {dimension_semantics = [#tpu.dimension_semantics<parallel>, #tpu.dimension_semantics<parallel>], iteration_bounds = array<i64: 2, 2>, scalar_prefetch = 0 : i64, scratch_operands = 0 : i64, tpu.core_type = #tpu.core_type<tc>, window_params = [{transform_indices = @transform_0, window_bounds = array<i64: 1, 8, 128>}, {transform_indices = @transform_1, window_bounds = array<i64: 1, 8, 128>}, {transform_indices = @transform_2, window_bounds = array<i64: 1, 8, 128>}, {pipeline_mode = #tpu.pipeline_mode<synchronous>, transform_indices = @transform_3, window_bounds = array<i64: 6, 3, 8, 8>}, {pipeline_mode = #tpu.pipeline_mode<synchronous>, transform_indices = @transform_4, window_bounds = array<i64: 8, 18>}, {transform_indices = @transform_5, window_bounds = array<i64: 1, 8, 128>}]} {
    %c128_i32 = arith.constant 128 : i32
    %0 = arith.muli %arg1, %c128_i32 : i32
    %c12_i32 = arith.constant 12 : i32
    %1 = arith.subi %0, %c12_i32 : i32
    %2 = tpu.iota {dimensions = array<i32: 1>} : vector<1x152xi32>
    %3 = vector.broadcast %1 : i32 to vector<1x152xi32>
    %4 = arith.addi %2, %3 : vector<1x152xi32>
    %c0_i32 = arith.constant 0 : i32
    %5 = vector.broadcast %c0_i32 : i32 to vector<1x152xi32>
    %6 = arith.cmpi sge, %4, %5 : vector<1x152xi32>
    %c200_i32 = arith.constant 200 : i32
    %7 = vector.broadcast %c200_i32 : i32 to vector<1x152xi32>
    %8 = arith.cmpi slt, %4, %7 : vector<1x152xi32>
    %9 = arith.andi %6, %8 : vector<1x152xi1>
    %10 = arith.extui %9 : vector<1x152xi1> to vector<1x152xi32>
    %11 = arith.sitofp %10 : vector<1x152xi32> to vector<1x152xf32>
    %12 = arith.truncf %11 : vector<1x152xf32> to vector<1x152xbf16>
    %c0 = arith.constant 0 : index
    %c0_0 = arith.constant 0 : index
    %c116 = arith.constant 116 : index
    %13 = vector.load %arg2[%c0, %c0_0, %c116] : memref<1x8x128xf32, #tpu.memory_space<vmem>>, vector<1x8x12xf32>
    %14 = vector.shape_cast %13 : vector<1x8x12xf32> to vector<8x12xf32>
    %c0_1 = arith.constant 0 : index
    %c0_2 = arith.constant 0 : index
    %c0_3 = arith.constant 0 : index
    %15 = vector.load %arg3[%c0_1, %c0_2, %c0_3] : memref<1x8x128xf32, #tpu.memory_space<vmem>>, vector<1x8x128xf32>
    %16 = vector.shape_cast %15 : vector<1x8x128xf32> to vector<8x128xf32>
    %c0_4 = arith.constant 0 : index
    %c0_5 = arith.constant 0 : index
    %c0_6 = arith.constant 0 : index
    %17 = vector.load %arg4[%c0_4, %c0_5, %c0_6] : memref<1x8x128xf32, #tpu.memory_space<vmem>>, vector<1x8x12xf32>
    %18 = vector.shape_cast %17 : vector<1x8x12xf32> to vector<8x12xf32>
    %19 = tpu.concatenate %14, %16, %18 in 1 : vector<8x12xf32>, vector<8x128xf32>, vector<8x12xf32> -> vector<8x152xf32>
    %c0_7 = arith.constant 0 : index
    %c0_8 = arith.constant 0 : index
    %20 = vector.load %arg6[%c0_7, %c0_8] : memref<8x18xf32, #tpu.memory_space<vmem>>, vector<8x1xf32>
    %c0_9 = arith.constant 0 : index
    %c1 = arith.constant 1 : index
    %21 = vector.load %arg6[%c0_9, %c1] : memref<8x18xf32, #tpu.memory_space<vmem>>, vector<8x1xf32>
    %22 = vector.broadcast %20 : vector<8x1xf32> to vector<8x152xf32>
    %23 = arith.mulf %19, %22 : vector<8x152xf32>
    %24 = math.sin %23 : vector<8x152xf32>
    %25 = arith.mulf %24, %24 : vector<8x152xf32>
    %26 = vector.broadcast %21 : vector<8x1xf32> to vector<8x152xf32>
    %27 = arith.mulf %25, %26 : vector<8x152xf32>
    %28 = arith.addf %19, %27 : vector<8x152xf32>
    %29 = arith.truncf %28 : vector<8x152xf32> to vector<8x152xbf16>
    %30 = vector.broadcast %12 : vector<1x152xbf16> to vector<8x152xbf16>
    %31 = arith.mulf %29, %30 : vector<8x152xbf16>
    %32 = vector.extract_strided_slice %31 {offsets = [0, 0], sizes = [8, 150], strides = [1, 1]} : vector<8x152xbf16> to vector<8x150xbf16>
    %c0_10 = arith.constant 0 : index
    %c0_11 = arith.constant 0 : index
    %c0_12 = arith.constant 0 : index
    %c0_13 = arith.constant 0 : index
    %33 = vector.load %arg5[%c0_10, %c0_11, %c0_12, %c0_13] : memref<6x3x8x8xbf16, #tpu.memory_space<vmem>>, vector<1x1x8x8xbf16>
    %34 = vector.shape_cast %33 : vector<1x1x8x8xbf16> to vector<8x8xbf16>
    %cst = arith.constant dense<0.000000e+00> : vector<8x150xf32>
    %35 = tpu.matmul %34, %32, %cst {dimension_numbers = #tpu.dot_dimension_numbers<[1], [0], [0], [1], [0, 0, 1, 1], [], []>} : vector<8x8xbf16>, vector<8x150xbf16>, vector<8x150xf32> -> vector<8x150xf32>
    %36 = vector.extract_strided_slice %31 {offsets = [0, 1], sizes = [8, 150], strides = [1, 1]} : vector<8x152xbf16> to vector<8x150xbf16>
    %c0_14 = arith.constant 0 : index
    %c1_15 = arith.constant 1 : index
    %c0_16 = arith.constant 0 : index
    %c0_17 = arith.constant 0 : index
    %37 = vector.load %arg5[%c0_14, %c1_15, %c0_16, %c0_17] : memref<6x3x8x8xbf16, #tpu.memory_space<vmem>>, vector<1x1x8x8xbf16>
    %38 = vector.shape_cast %37 : vector<1x1x8x8xbf16> to vector<8x8xbf16>
    %cst_18 = arith.constant dense<0.000000e+00> : vector<8x150xf32>
    %39 = tpu.matmul %38, %36, %cst_18 {dimension_numbers = #tpu.dot_dimension_numbers<[1], [0], [0], [1], [0, 0, 1, 1], [], []>} : vector<8x8xbf16>, vector<8x150xbf16>, vector<8x150xf32> -> vector<8x150xf32>
    %40 = arith.addf %35, %39 : vector<8x150xf32>
    %41 = vector.extract_strided_slice %31 {offsets = [0, 2], sizes = [8, 150], strides = [1, 1]} : vector<8x152xbf16> to vector<8x150xbf16>
    %c0_19 = arith.constant 0 : index
    %c2 = arith.constant 2 : index
    %c0_20 = arith.constant 0 : index
    %c0_21 = arith.constant 0 : index
    %42 = vector.load %arg5[%c0_19, %c2, %c0_20, %c0_21] : memref<6x3x8x8xbf16, #tpu.memory_space<vmem>>, vector<1x1x8x8xbf16>
    %43 = vector.shape_cast %42 : vector<1x1x8x8xbf16> to vector<8x8xbf16>
    %cst_22 = arith.constant dense<0.000000e+00> : vector<8x150xf32>
    %44 = tpu.matmul %43, %41, %cst_22 {dimension_numbers = #tpu.dot_dimension_numbers<[1], [0], [0], [1], [0, 0, 1, 1], [], []>} : vector<8x8xbf16>, vector<8x150xbf16>, vector<8x150xf32> -> vector<8x150xf32>
    %45 = arith.addf %40, %44 : vector<8x150xf32>
    %c0_23 = arith.constant 0 : index
    %c2_24 = arith.constant 2 : index
    %46 = vector.load %arg6[%c0_23, %c2_24] : memref<8x18xf32, #tpu.memory_space<vmem>>, vector<8x1xf32>
    %47 = vector.broadcast %46 : vector<8x1xf32> to vector<8x150xf32>
    %48 = arith.addf %45, %47 : vector<8x150xf32>
    %c0_25 = arith.constant 0 : index
    %c3 = arith.constant 3 : index
    %49 = vector.load %arg6[%c0_25, %c3] : memref<8x18xf32, #tpu.memory_space<vmem>>, vector<8x1xf32>
    %c0_26 = arith.constant 0 : index
    %c4 = arith.constant 4 : index
    %50 = vector.load %arg6[%c0_26, %c4] : memref<8x18xf32, #tpu.memory_space<vmem>>, vector<8x1xf32>
    %51 = vector.broadcast %49 : vector<8x1xf32> to vector<8x150xf32>
    %52 = arith.mulf %48, %51 : vector<8x150xf32>
    %53 = math.sin %52 : vector<8x150xf32>
    %54 = arith.mulf %53, %53 : vector<8x150xf32>
    %55 = vector.broadcast %50 : vector<8x1xf32> to vector<8x150xf32>
    %56 = arith.mulf %54, %55 : vector<8x150xf32>
    %57 = arith.addf %48, %56 : vector<8x150xf32>
    %58 = arith.truncf %57 : vector<8x150xf32> to vector<8x150xbf16>
    %59 = vector.extract_strided_slice %12 {offsets = [0, 1], sizes = [1, 150], strides = [1, 1]} : vector<1x152xbf16> to vector<1x150xbf16>
    %60 = vector.broadcast %59 : vector<1x150xbf16> to vector<8x150xbf16>
    %61 = arith.mulf %58, %60 : vector<8x150xbf16>
    %62 = vector.extract_strided_slice %61 {offsets = [0, 0], sizes = [8, 148], strides = [1, 1]} : vector<8x150xbf16> to vector<8x148xbf16>
    %c1_27 = arith.constant 1 : index
    %c0_28 = arith.constant 0 : index
    %c0_29 = arith.constant 0 : index
    %c0_30 = arith.constant 0 : index
    %63 = vector.load %arg5[%c1_27, %c0_28, %c0_29, %c0_30] : memref<6x3x8x8xbf16, #tpu.memory_space<vmem>>, vector<1x1x8x8xbf16>
    %64 = vector.shape_cast %63 : vector<1x1x8x8xbf16> to vector<8x8xbf16>
    %cst_31 = arith.constant dense<0.000000e+00> : vector<8x148xf32>
    %65 = tpu.matmul %64, %62, %cst_31 {dimension_numbers = #tpu.dot_dimension_numbers<[1], [0], [0], [1], [0, 0, 1, 1], [], []>} : vector<8x8xbf16>, vector<8x148xbf16>, vector<8x148xf32> -> vector<8x148xf32>
    %66 = vector.extract_strided_slice %61 {offsets = [0, 1], sizes = [8, 148], strides = [1, 1]} : vector<8x150xbf16> to vector<8x148xbf16>
    %c1_32 = arith.constant 1 : index
    %c1_33 = arith.constant 1 : index
    %c0_34 = arith.constant 0 : index
    %c0_35 = arith.constant 0 : index
    %67 = vector.load %arg5[%c1_32, %c1_33, %c0_34, %c0_35] : memref<6x3x8x8xbf16, #tpu.memory_space<vmem>>, vector<1x1x8x8xbf16>
    %68 = vector.shape_cast %67 : vector<1x1x8x8xbf16> to vector<8x8xbf16>
    %cst_36 = arith.constant dense<0.000000e+00> : vector<8x148xf32>
    %69 = tpu.matmul %68, %66, %cst_36 {dimension_numbers = #tpu.dot_dimension_numbers<[1], [0], [0], [1], [0, 0, 1, 1], [], []>} : vector<8x8xbf16>, vector<8x148xbf16>, vector<8x148xf32> -> vector<8x148xf32>
    %70 = arith.addf %65, %69 : vector<8x148xf32>
    %71 = vector.extract_strided_slice %61 {offsets = [0, 2], sizes = [8, 148], strides = [1, 1]} : vector<8x150xbf16> to vector<8x148xbf16>
    %c1_37 = arith.constant 1 : index
    %c2_38 = arith.constant 2 : index
    %c0_39 = arith.constant 0 : index
    %c0_40 = arith.constant 0 : index
    %72 = vector.load %arg5[%c1_37, %c2_38, %c0_39, %c0_40] : memref<6x3x8x8xbf16, #tpu.memory_space<vmem>>, vector<1x1x8x8xbf16>
    %73 = vector.shape_cast %72 : vector<1x1x8x8xbf16> to vector<8x8xbf16>
    %cst_41 = arith.constant dense<0.000000e+00> : vector<8x148xf32>
    %74 = tpu.matmul %73, %71, %cst_41 {dimension_numbers = #tpu.dot_dimension_numbers<[1], [0], [0], [1], [0, 0, 1, 1], [], []>} : vector<8x8xbf16>, vector<8x148xbf16>, vector<8x148xf32> -> vector<8x148xf32>
    %75 = arith.addf %70, %74 : vector<8x148xf32>
    %c0_42 = arith.constant 0 : index
    %c5 = arith.constant 5 : index
    %76 = vector.load %arg6[%c0_42, %c5] : memref<8x18xf32, #tpu.memory_space<vmem>>, vector<8x1xf32>
    %77 = vector.broadcast %76 : vector<8x1xf32> to vector<8x148xf32>
    %78 = arith.addf %75, %77 : vector<8x148xf32>
    %79 = vector.extract_strided_slice %19 {offsets = [0, 2], sizes = [8, 148], strides = [1, 1]} : vector<8x152xf32> to vector<8x148xf32>
    %80 = arith.addf %79, %78 : vector<8x148xf32>
    %c0_43 = arith.constant 0 : index
    %c6 = arith.constant 6 : index
    %81 = vector.load %arg6[%c0_43, %c6] : memref<8x18xf32, #tpu.memory_space<vmem>>, vector<8x1xf32>
    %c0_44 = arith.constant 0 : index
    %c7 = arith.constant 7 : index
    %82 = vector.load %arg6[%c0_44, %c7] : memref<8x18xf32, #tpu.memory_space<vmem>>, vector<8x1xf32>
    %83 = vector.broadcast %81 : vector<8x1xf32> to vector<8x148xf32>
    %84 = arith.mulf %80, %83 : vector<8x148xf32>
    %85 = math.sin %84 : vector<8x148xf32>
    %86 = arith.mulf %85, %85 : vector<8x148xf32>
    %87 = vector.broadcast %82 : vector<8x1xf32> to vector<8x148xf32>
    %88 = arith.mulf %86, %87 : vector<8x148xf32>
    %89 = arith.addf %80, %88 : vector<8x148xf32>
    %90 = arith.truncf %89 : vector<8x148xf32> to vector<8x148xbf16>
    %91 = vector.extract_strided_slice %12 {offsets = [0, 2], sizes = [1, 148], strides = [1, 1]} : vector<1x152xbf16> to vector<1x148xbf16>
    %92 = vector.broadcast %91 : vector<1x148xbf16> to vector<8x148xbf16>
    %93 = arith.mulf %90, %92 : vector<8x148xbf16>
    %94 = vector.extract_strided_slice %93 {offsets = [0, 0], sizes = [8, 142], strides = [1, 1]} : vector<8x148xbf16> to vector<8x142xbf16>
    %c2_45 = arith.constant 2 : index
    %c0_46 = arith.constant 0 : index
    %c0_47 = arith.constant 0 : index
    %c0_48 = arith.constant 0 : index
    %95 = vector.load %arg5[%c2_45, %c0_46, %c0_47, %c0_48] : memref<6x3x8x8xbf16, #tpu.memory_space<vmem>>, vector<1x1x8x8xbf16>
    %96 = vector.shape_cast %95 : vector<1x1x8x8xbf16> to vector<8x8xbf16>
    %cst_49 = arith.constant dense<0.000000e+00> : vector<8x142xf32>
    %97 = tpu.matmul %96, %94, %cst_49 {dimension_numbers = #tpu.dot_dimension_numbers<[1], [0], [0], [1], [0, 0, 1, 1], [], []>} : vector<8x8xbf16>, vector<8x142xbf16>, vector<8x142xf32> -> vector<8x142xf32>
    %98 = vector.extract_strided_slice %93 {offsets = [0, 3], sizes = [8, 142], strides = [1, 1]} : vector<8x148xbf16> to vector<8x142xbf16>
    %c2_50 = arith.constant 2 : index
    %c1_51 = arith.constant 1 : index
    %c0_52 = arith.constant 0 : index
    %c0_53 = arith.constant 0 : index
    %99 = vector.load %arg5[%c2_50, %c1_51, %c0_52, %c0_53] : memref<6x3x8x8xbf16, #tpu.memory_space<vmem>>, vector<1x1x8x8xbf16>
    %100 = vector.shape_cast %99 : vector<1x1x8x8xbf16> to vector<8x8xbf16>
    %cst_54 = arith.constant dense<0.000000e+00> : vector<8x142xf32>
    %101 = tpu.matmul %100, %98, %cst_54 {dimension_numbers = #tpu.dot_dimension_numbers<[1], [0], [0], [1], [0, 0, 1, 1], [], []>} : vector<8x8xbf16>, vector<8x142xbf16>, vector<8x142xf32> -> vector<8x142xf32>
    %102 = arith.addf %97, %101 : vector<8x142xf32>
    %103 = vector.extract_strided_slice %93 {offsets = [0, 6], sizes = [8, 142], strides = [1, 1]} : vector<8x148xbf16> to vector<8x142xbf16>
    %c2_55 = arith.constant 2 : index
    %c2_56 = arith.constant 2 : index
    %c0_57 = arith.constant 0 : index
    %c0_58 = arith.constant 0 : index
    %104 = vector.load %arg5[%c2_55, %c2_56, %c0_57, %c0_58] : memref<6x3x8x8xbf16, #tpu.memory_space<vmem>>, vector<1x1x8x8xbf16>
    %105 = vector.shape_cast %104 : vector<1x1x8x8xbf16> to vector<8x8xbf16>
    %cst_59 = arith.constant dense<0.000000e+00> : vector<8x142xf32>
    %106 = tpu.matmul %105, %103, %cst_59 {dimension_numbers = #tpu.dot_dimension_numbers<[1], [0], [0], [1], [0, 0, 1, 1], [], []>} : vector<8x8xbf16>, vector<8x142xbf16>, vector<8x142xf32> -> vector<8x142xf32>
    %107 = arith.addf %102, %106 : vector<8x142xf32>
    %c0_60 = arith.constant 0 : index
    %c8 = arith.constant 8 : index
    %108 = vector.load %arg6[%c0_60, %c8] : memref<8x18xf32, #tpu.memory_space<vmem>>, vector<8x1xf32>
    %109 = vector.broadcast %108 : vector<8x1xf32> to vector<8x142xf32>
    %110 = arith.addf %107, %109 : vector<8x142xf32>
    %c0_61 = arith.constant 0 : index
    %c9 = arith.constant 9 : index
    %111 = vector.load %arg6[%c0_61, %c9] : memref<8x18xf32, #tpu.memory_space<vmem>>, vector<8x1xf32>
    %c0_62 = arith.constant 0 : index
    %c10 = arith.constant 10 : index
    %112 = vector.load %arg6[%c0_62, %c10] : memref<8x18xf32, #tpu.memory_space<vmem>>, vector<8x1xf32>
    %113 = vector.broadcast %111 : vector<8x1xf32> to vector<8x142xf32>
    %114 = arith.mulf %110, %113 : vector<8x142xf32>
    %115 = math.sin %114 : vector<8x142xf32>
    %116 = arith.mulf %115, %115 : vector<8x142xf32>
    %117 = vector.broadcast %112 : vector<8x1xf32> to vector<8x142xf32>
    %118 = arith.mulf %116, %117 : vector<8x142xf32>
    %119 = arith.addf %110, %118 : vector<8x142xf32>
    %120 = arith.truncf %119 : vector<8x142xf32> to vector<8x142xbf16>
    %121 = vector.extract_strided_slice %12 {offsets = [0, 5], sizes = [1, 142], strides = [1, 1]} : vector<1x152xbf16> to vector<1x142xbf16>
    %122 = vector.broadcast %121 : vector<1x142xbf16> to vector<8x142xbf16>
    %123 = arith.mulf %120, %122 : vector<8x142xbf16>
    %124 = vector.extract_strided_slice %123 {offsets = [0, 0], sizes = [8, 140], strides = [1, 1]} : vector<8x142xbf16> to vector<8x140xbf16>
    %c3_63 = arith.constant 3 : index
    %c0_64 = arith.constant 0 : index
    %c0_65 = arith.constant 0 : index
    %c0_66 = arith.constant 0 : index
    %125 = vector.load %arg5[%c3_63, %c0_64, %c0_65, %c0_66] : memref<6x3x8x8xbf16, #tpu.memory_space<vmem>>, vector<1x1x8x8xbf16>
    %126 = vector.shape_cast %125 : vector<1x1x8x8xbf16> to vector<8x8xbf16>
    %cst_67 = arith.constant dense<0.000000e+00> : vector<8x140xf32>
    %127 = tpu.matmul %126, %124, %cst_67 {dimension_numbers = #tpu.dot_dimension_numbers<[1], [0], [0], [1], [0, 0, 1, 1], [], []>} : vector<8x8xbf16>, vector<8x140xbf16>, vector<8x140xf32> -> vector<8x140xf32>
    %128 = vector.extract_strided_slice %123 {offsets = [0, 1], sizes = [8, 140], strides = [1, 1]} : vector<8x142xbf16> to vector<8x140xbf16>
    %c3_68 = arith.constant 3 : index
    %c1_69 = arith.constant 1 : index
    %c0_70 = arith.constant 0 : index
    %c0_71 = arith.constant 0 : index
    %129 = vector.load %arg5[%c3_68, %c1_69, %c0_70, %c0_71] : memref<6x3x8x8xbf16, #tpu.memory_space<vmem>>, vector<1x1x8x8xbf16>
    %130 = vector.shape_cast %129 : vector<1x1x8x8xbf16> to vector<8x8xbf16>
    %cst_72 = arith.constant dense<0.000000e+00> : vector<8x140xf32>
    %131 = tpu.matmul %130, %128, %cst_72 {dimension_numbers = #tpu.dot_dimension_numbers<[1], [0], [0], [1], [0, 0, 1, 1], [], []>} : vector<8x8xbf16>, vector<8x140xbf16>, vector<8x140xf32> -> vector<8x140xf32>
    %132 = arith.addf %127, %131 : vector<8x140xf32>
    %133 = vector.extract_strided_slice %123 {offsets = [0, 2], sizes = [8, 140], strides = [1, 1]} : vector<8x142xbf16> to vector<8x140xbf16>
    %c3_73 = arith.constant 3 : index
    %c2_74 = arith.constant 2 : index
    %c0_75 = arith.constant 0 : index
    %c0_76 = arith.constant 0 : index
    %134 = vector.load %arg5[%c3_73, %c2_74, %c0_75, %c0_76] : memref<6x3x8x8xbf16, #tpu.memory_space<vmem>>, vector<1x1x8x8xbf16>
    %135 = vector.shape_cast %134 : vector<1x1x8x8xbf16> to vector<8x8xbf16>
    %cst_77 = arith.constant dense<0.000000e+00> : vector<8x140xf32>
    %136 = tpu.matmul %135, %133, %cst_77 {dimension_numbers = #tpu.dot_dimension_numbers<[1], [0], [0], [1], [0, 0, 1, 1], [], []>} : vector<8x8xbf16>, vector<8x140xbf16>, vector<8x140xf32> -> vector<8x140xf32>
    %137 = arith.addf %132, %136 : vector<8x140xf32>
    %c0_78 = arith.constant 0 : index
    %c11 = arith.constant 11 : index
    %138 = vector.load %arg6[%c0_78, %c11] : memref<8x18xf32, #tpu.memory_space<vmem>>, vector<8x1xf32>
    %139 = vector.broadcast %138 : vector<8x1xf32> to vector<8x140xf32>
    %140 = arith.addf %137, %139 : vector<8x140xf32>
    %141 = vector.extract_strided_slice %80 {offsets = [0, 4], sizes = [8, 140], strides = [1, 1]} : vector<8x148xf32> to vector<8x140xf32>
    %142 = arith.addf %141, %140 : vector<8x140xf32>
    %c0_79 = arith.constant 0 : index
    %c12 = arith.constant 12 : index
    %143 = vector.load %arg6[%c0_79, %c12] : memref<8x18xf32, #tpu.memory_space<vmem>>, vector<8x1xf32>
    %c0_80 = arith.constant 0 : index
    %c13 = arith.constant 13 : index
    %144 = vector.load %arg6[%c0_80, %c13] : memref<8x18xf32, #tpu.memory_space<vmem>>, vector<8x1xf32>
    %145 = vector.broadcast %143 : vector<8x1xf32> to vector<8x140xf32>
    %146 = arith.mulf %142, %145 : vector<8x140xf32>
    %147 = math.sin %146 : vector<8x140xf32>
    %148 = arith.mulf %147, %147 : vector<8x140xf32>
    %149 = vector.broadcast %144 : vector<8x1xf32> to vector<8x140xf32>
    %150 = arith.mulf %148, %149 : vector<8x140xf32>
    %151 = arith.addf %142, %150 : vector<8x140xf32>
    %152 = arith.truncf %151 : vector<8x140xf32> to vector<8x140xbf16>
    %153 = vector.extract_strided_slice %12 {offsets = [0, 6], sizes = [1, 140], strides = [1, 1]} : vector<1x152xbf16> to vector<1x140xbf16>
    %154 = vector.broadcast %153 : vector<1x140xbf16> to vector<8x140xbf16>
    %155 = arith.mulf %152, %154 : vector<8x140xbf16>
    %156 = vector.extract_strided_slice %155 {offsets = [0, 0], sizes = [8, 130], strides = [1, 1]} : vector<8x140xbf16> to vector<8x130xbf16>
    %c4_81 = arith.constant 4 : index
    %c0_82 = arith.constant 0 : index
    %c0_83 = arith.constant 0 : index
    %c0_84 = arith.constant 0 : index
    %157 = vector.load %arg5[%c4_81, %c0_82, %c0_83, %c0_84] : memref<6x3x8x8xbf16, #tpu.memory_space<vmem>>, vector<1x1x8x8xbf16>
    %158 = vector.shape_cast %157 : vector<1x1x8x8xbf16> to vector<8x8xbf16>
    %cst_85 = arith.constant dense<0.000000e+00> : vector<8x130xf32>
    %159 = tpu.matmul %158, %156, %cst_85 {dimension_numbers = #tpu.dot_dimension_numbers<[1], [0], [0], [1], [0, 0, 1, 1], [], []>} : vector<8x8xbf16>, vector<8x130xbf16>, vector<8x130xf32> -> vector<8x130xf32>
    %160 = vector.extract_strided_slice %155 {offsets = [0, 5], sizes = [8, 130], strides = [1, 1]} : vector<8x140xbf16> to vector<8x130xbf16>
    %c4_86 = arith.constant 4 : index
    %c1_87 = arith.constant 1 : index
    %c0_88 = arith.constant 0 : index
    %c0_89 = arith.constant 0 : index
    %161 = vector.load %arg5[%c4_86, %c1_87, %c0_88, %c0_89] : memref<6x3x8x8xbf16, #tpu.memory_space<vmem>>, vector<1x1x8x8xbf16>
    %162 = vector.shape_cast %161 : vector<1x1x8x8xbf16> to vector<8x8xbf16>
    %cst_90 = arith.constant dense<0.000000e+00> : vector<8x130xf32>
    %163 = tpu.matmul %162, %160, %cst_90 {dimension_numbers = #tpu.dot_dimension_numbers<[1], [0], [0], [1], [0, 0, 1, 1], [], []>} : vector<8x8xbf16>, vector<8x130xbf16>, vector<8x130xf32> -> vector<8x130xf32>
    %164 = arith.addf %159, %163 : vector<8x130xf32>
    %165 = vector.extract_strided_slice %155 {offsets = [0, 10], sizes = [8, 130], strides = [1, 1]} : vector<8x140xbf16> to vector<8x130xbf16>
    %c4_91 = arith.constant 4 : index
    %c2_92 = arith.constant 2 : index
    %c0_93 = arith.constant 0 : index
    %c0_94 = arith.constant 0 : index
    %166 = vector.load %arg5[%c4_91, %c2_92, %c0_93, %c0_94] : memref<6x3x8x8xbf16, #tpu.memory_space<vmem>>, vector<1x1x8x8xbf16>
    %167 = vector.shape_cast %166 : vector<1x1x8x8xbf16> to vector<8x8xbf16>
    %cst_95 = arith.constant dense<0.000000e+00> : vector<8x130xf32>
    %168 = tpu.matmul %167, %165, %cst_95 {dimension_numbers = #tpu.dot_dimension_numbers<[1], [0], [0], [1], [0, 0, 1, 1], [], []>} : vector<8x8xbf16>, vector<8x130xbf16>, vector<8x130xf32> -> vector<8x130xf32>
    %169 = arith.addf %164, %168 : vector<8x130xf32>
    %c0_96 = arith.constant 0 : index
    %c14 = arith.constant 14 : index
    %170 = vector.load %arg6[%c0_96, %c14] : memref<8x18xf32, #tpu.memory_space<vmem>>, vector<8x1xf32>
    %171 = vector.broadcast %170 : vector<8x1xf32> to vector<8x130xf32>
    %172 = arith.addf %169, %171 : vector<8x130xf32>
    %c0_97 = arith.constant 0 : index
    %c15 = arith.constant 15 : index
    %173 = vector.load %arg6[%c0_97, %c15] : memref<8x18xf32, #tpu.memory_space<vmem>>, vector<8x1xf32>
    %c0_98 = arith.constant 0 : index
    %c16 = arith.constant 16 : index
    %174 = vector.load %arg6[%c0_98, %c16] : memref<8x18xf32, #tpu.memory_space<vmem>>, vector<8x1xf32>
    %175 = vector.broadcast %173 : vector<8x1xf32> to vector<8x130xf32>
    %176 = arith.mulf %172, %175 : vector<8x130xf32>
    %177 = math.sin %176 : vector<8x130xf32>
    %178 = arith.mulf %177, %177 : vector<8x130xf32>
    %179 = vector.broadcast %174 : vector<8x1xf32> to vector<8x130xf32>
    %180 = arith.mulf %178, %179 : vector<8x130xf32>
    %181 = arith.addf %172, %180 : vector<8x130xf32>
    %182 = arith.truncf %181 : vector<8x130xf32> to vector<8x130xbf16>
    %183 = vector.extract_strided_slice %12 {offsets = [0, 11], sizes = [1, 130], strides = [1, 1]} : vector<1x152xbf16> to vector<1x130xbf16>
    %184 = vector.broadcast %183 : vector<1x130xbf16> to vector<8x130xbf16>
    %185 = arith.mulf %182, %184 : vector<8x130xbf16>
    %186 = vector.extract_strided_slice %185 {offsets = [0, 0], sizes = [8, 128], strides = [1, 1]} : vector<8x130xbf16> to vector<8x128xbf16>
    %c5_99 = arith.constant 5 : index
    %c0_100 = arith.constant 0 : index
    %c0_101 = arith.constant 0 : index
    %c0_102 = arith.constant 0 : index
    %187 = vector.load %arg5[%c5_99, %c0_100, %c0_101, %c0_102] : memref<6x3x8x8xbf16, #tpu.memory_space<vmem>>, vector<1x1x8x8xbf16>
    %188 = vector.shape_cast %187 : vector<1x1x8x8xbf16> to vector<8x8xbf16>
    %cst_103 = arith.constant dense<0.000000e+00> : vector<8x128xf32>
    %189 = tpu.matmul %188, %186, %cst_103 {dimension_numbers = #tpu.dot_dimension_numbers<[1], [0], [0], [1], [0, 0, 1, 1], [], []>} : vector<8x8xbf16>, vector<8x128xbf16>, vector<8x128xf32> -> vector<8x128xf32>
    %190 = vector.extract_strided_slice %185 {offsets = [0, 1], sizes = [8, 128], strides = [1, 1]} : vector<8x130xbf16> to vector<8x128xbf16>
    %c5_104 = arith.constant 5 : index
    %c1_105 = arith.constant 1 : index
    %c0_106 = arith.constant 0 : index
    %c0_107 = arith.constant 0 : index
    %191 = vector.load %arg5[%c5_104, %c1_105, %c0_106, %c0_107] : memref<6x3x8x8xbf16, #tpu.memory_space<vmem>>, vector<1x1x8x8xbf16>
    %192 = vector.shape_cast %191 : vector<1x1x8x8xbf16> to vector<8x8xbf16>
    %cst_108 = arith.constant dense<0.000000e+00> : vector<8x128xf32>
    %193 = tpu.matmul %192, %190, %cst_108 {dimension_numbers = #tpu.dot_dimension_numbers<[1], [0], [0], [1], [0, 0, 1, 1], [], []>} : vector<8x8xbf16>, vector<8x128xbf16>, vector<8x128xf32> -> vector<8x128xf32>
    %194 = arith.addf %189, %193 : vector<8x128xf32>
    %195 = vector.extract_strided_slice %185 {offsets = [0, 2], sizes = [8, 128], strides = [1, 1]} : vector<8x130xbf16> to vector<8x128xbf16>
    %c5_109 = arith.constant 5 : index
    %c2_110 = arith.constant 2 : index
    %c0_111 = arith.constant 0 : index
    %c0_112 = arith.constant 0 : index
    %196 = vector.load %arg5[%c5_109, %c2_110, %c0_111, %c0_112] : memref<6x3x8x8xbf16, #tpu.memory_space<vmem>>, vector<1x1x8x8xbf16>
    %197 = vector.shape_cast %196 : vector<1x1x8x8xbf16> to vector<8x8xbf16>
    %cst_113 = arith.constant dense<0.000000e+00> : vector<8x128xf32>
    %198 = tpu.matmul %197, %195, %cst_113 {dimension_numbers = #tpu.dot_dimension_numbers<[1], [0], [0], [1], [0, 0, 1, 1], [], []>} : vector<8x8xbf16>, vector<8x128xbf16>, vector<8x128xf32> -> vector<8x128xf32>
    %199 = arith.addf %194, %198 : vector<8x128xf32>
    %c0_114 = arith.constant 0 : index
    %c17 = arith.constant 17 : index
    %200 = vector.load %arg6[%c0_114, %c17] : memref<8x18xf32, #tpu.memory_space<vmem>>, vector<8x1xf32>
    %201 = vector.broadcast %200 : vector<8x1xf32> to vector<8x128xf32>
    %202 = arith.addf %199, %201 : vector<8x128xf32>
    %203 = vector.extract_strided_slice %142 {offsets = [0, 6], sizes = [8, 128], strides = [1, 1]} : vector<8x140xf32> to vector<8x128xf32>
    %204 = arith.addf %203, %202 : vector<8x128xf32>
    %c0_115 = arith.constant 0 : index
    %c0_116 = arith.constant 0 : index
    %c0_117 = arith.constant 0 : index
    %205 = vector.load %arg7[%c0_115, %c0_116, %c0_117] : memref<1x8x128xf32, #tpu.memory_space<vmem>>, vector<1x8x128xf32>
    %206 = vector.shape_cast %205 : vector<1x8x128xf32> to vector<8x128xf32>
    %207 = vector.shape_cast %204 : vector<8x128xf32> to vector<1x8x128xf32>
    tpu.vector_store %arg7[%c0_115, %c0_116, %c0_117], %207 {strides = array<i32>} : memref<1x8x128xf32, #tpu.memory_space<vmem>>, vector<1x8x128xf32>,
    return
  }
  func.func @transform_0(%arg0: i32, %arg1: i32) -> (i32, i32, i32) {
    %c1_i32 = arith.constant 1 : i32
    %0 = arith.subi %arg1, %c1_i32 : i32
    %c0_i32 = arith.constant 0 : i32
    %1 = arith.maxsi %0, %c0_i32 : i32
    %c0_i32_0 = arith.constant 0 : i32
    %c0_i32_1 = arith.constant 0 : i32
    return %arg0, %c0_i32_0, %1 : i32, i32, i32
  }
  func.func @transform_1(%arg0: i32, %arg1: i32) -> (i32, i32, i32) {
    %c0_i32 = arith.constant 0 : i32
    %c0_i32_0 = arith.constant 0 : i32
    return %arg0, %c0_i32, %arg1 : i32, i32, i32
  }
  func.func @transform_2(%arg0: i32, %arg1: i32) -> (i32, i32, i32) {
    %c1_i32 = arith.constant 1 : i32
    %0 = arith.addi %arg1, %c1_i32 : i32
    %c1_i32_0 = arith.constant 1 : i32
    %1 = arith.minsi %0, %c1_i32_0 : i32
    %c0_i32 = arith.constant 0 : i32
    %c0_i32_1 = arith.constant 0 : i32
    return %arg0, %c0_i32, %1 : i32, i32, i32
  }
  func.func @transform_3(%arg0: i32, %arg1: i32) -> (i32, i32, i32, i32) {
    %c0_i32 = arith.constant 0 : i32
    %c0_i32_0 = arith.constant 0 : i32
    %c0_i32_1 = arith.constant 0 : i32
    %c0_i32_2 = arith.constant 0 : i32
    %c0_i32_3 = arith.constant 0 : i32
    return %c0_i32, %c0_i32_0, %c0_i32_1, %c0_i32_2 : i32, i32, i32, i32
  }
  func.func @transform_4(%arg0: i32, %arg1: i32) -> (i32, i32) {
    %c0_i32 = arith.constant 0 : i32
    %c0_i32_0 = arith.constant 0 : i32
    %c0_i32_1 = arith.constant 0 : i32
    return %c0_i32, %c0_i32_0 : i32, i32
  }
  func.func @transform_5(%arg0: i32, %arg1: i32) -> (i32, i32, i32) {
    %c0_i32 = arith.constant 0 : i32
    %c0_i32_0 = arith.constant 0 : i32
    return %arg0, %c0_i32, %arg1 : i32, i32, i32
  }
}

</mosaic_0001>

<bundles_post_ra>
// kernel: tpu_custom_call.1
= control target key start
LH: loop header
LB: loop body
LE: loop exit
PB: predicated region body
PF: predicated region fallthrough
CT: control target
= control target key end

     0   :  { %s5052_s0 = inlined_call_operand.hbm [shape: f32[2,8,256], index: 0, kind: input, shape index: {}]   ;;  %s5053_s1 = inlined_call_operand.hbm [shape: f32[2,8,256], index: 1, kind: input, shape index: {}]   ;;  %s5054_s2 = inlined_call_operand.hbm [shape: f32[2,8,256], index: 2, kind: input, shape index: {}]   ;;  %s5055_s3 = inlined_call_operand.hbm [shape: bf16[6,3,8,8], index: 3, kind: input, shape index: {}]   ;;  %s5056_s4 = inlined_call_operand.vmem [shape: f32[8,18], index: 4, kind: input, shape index: {}]   ;;  %s5057_s5 = inlined_call_operand.hbm [shape: f32[2,8,256], index: 5, kind: output, shape index: {}]  }
   0x1   :  { %5077 = sst [smem:[#allocation24_spill]] %s5053_s1 }
   0x2   :  { %5078 = sst [smem:[#allocation25_spill]] %s5055_s3 }
   0x3   :  { %5079 = sst [smem:[#allocation26_spill]] %s5056_s4 }
   0x4   :  { %5080 = sst [smem:[#allocation27_spill]] %s5057_s5 }
   0x5   :  { %10 = vsyncpa [#allocation3], 0 }
   0x6   :  { %12 = vsyncpa [#allocation3 + $0x1], 0 }
   0x7   :  { %13 = vsyncpa [#allocation6], 0 }
   0x8   :  { %15 = vsyncpa [#allocation6 + $0x1], 0 }
   0x9   :  { %16 = vsyncpa [#allocation9], 0 }
   0xa   :  { %17 = vsyncpa [#allocation4], 0 }
   0xb   :  { %19 = vsyncpa [#allocation4 + $0x1], 0  ;;  %s3862_s18 = smov 0   ;;  %s3864_s19 = smov 0  }
   0xc   :  { %s3866_s20 = smov 0   ;;  %s3868_s21 = smov 0  }
   0xd   :  { %s3870_s22 = smov 0   ;;  %s3872_s23 = smov 0  }
   0xe   :  { %s3874_s24 = smov 0   ;;  %s3876_s25 = smov 0  }
   0xf   :  { %s3878_s26 = smov 0   ;;  %s3880_s27 = smov 0  }
  0x10   :  { %s3882_s28 = smov 0   ;;  %s3884_s29 = smov 0  }
  0x11   :  { %s3886_s30 = smov 0   ;;  %s3888_s6 = smov 0  }
  0x12 LB: > { %5081 = sst [smem:[#allocation16_spill]] %s3746_s21  ;;  %s3933_s7 = sadd.s32 4294967295, %s3786_s6   ;;  %s3786_s6 = sphi %s3888_s6, %s25_s6   ;;  %s3782_s30 = sphi %s3886_s30, %s5153_s30   ;;  %s3778_s29 = sphi %s3884_s29, %s5152_s29   ;;  %s3774_s28 = sphi %s3882_s28, %s5151_s28   ;;  %s3770_s27 = sphi %s3880_s27, %s5150_s27   ;;  %s3766_s26 = sphi %s3878_s26, %s5149_s26   ;;  %s3762_s25 = sphi %s3876_s25, %s5148_s25   ;;  %s3758_s24 = sphi %s3874_s24, %s5147_s24   ;;  %s3754_s23 = sphi %s3872_s23, %s5146_s23   ;;  %s3750_s22 = sphi %s3870_s22, %s5145_s22   ;;  %s3746_s21 = sphi %s3868_s21, %s5144_s21   ;;  %s3742_s20 = sphi %s3866_s20, %s5143_s20   ;;  %s3738_s19 = sphi %s3864_s19, %s5142_s19   ;;  %s3734_s18 = sphi %s3862_s18, %s5141_s18  }
  0x13   : > { %5082 = sst [smem:[#allocation17_spill]] %s3770_s27  ;;  %s3067_s8 = sadd.s32 4294967294, %s3786_s6  }
  0x14   : > { %5083 = sst [smem:[#allocation18_spill]] %s3774_s28  ;;  %s34_s9 = sadd.s32 1, %s3778_s29 }
  0x15   : > { %s37_s10 = sadd.s32 1, %s3782_s30  ;;  %p35_p0 = scmp.ge.s32.totalorder %s34_s9, 2 }
  0x16   : > { %p5068_p1 = scmp.eq.s32.totalorder %s3786_s6, 0  ;;  %p5069_p2 = scmp.eq.s32.totalorder %s3933_s7, 0 }
  0x17   : > { %s5155_s9 = smov (%p35_p0, %s34_s9), 0  ;;  %s5157_s10 = smov (!%p35_p0, %s37_s10), %s3782_s30 }
  0x18   : > { %5084 = sst [smem:[#allocation19_spill]] %s5155_s9  ;;  %p87_p3 = scmp.ne.s32.totalorder %s3754_s23, %s3750_s22 }
  0x19   : > { %p93_p4 = scmp.ne.s32.totalorder %s3750_s22, %s3746_s21  ;;  %p195_p5 = scmp.eq.s32.totalorder %s3933_s7, 3 }
  0x1a   : > { %p3955_p6 = por %p87_p3, %p5068_p1  ;;  %p201_p7 = scmp.eq.s32.totalorder %s3067_s8, 3 }
  0x1b   : > { %p3961_p8 = por %p93_p4, %p5069_p2  ;;  %p3965_p9 = por %p195_p5, %p87_p3 }
  0x1c   : > { %p3969_p10 = por %p201_p7, %p93_p4  ;;  %p5067_p11 = scmp.lt.s32.totalorder %s3786_s6, 4 }
  0x1d   : > { %s5086_s14 = scalar_select %p3961_p8, 1, 0 }
  0x1e   : > { %s5088_s15 = scalar_select %p3965_p9, 1, 0 }
  0x1f   : > { %5087 = sst [smem:[#allocation20_spill]] %s5086_s14  ;;  %s3075_s17 = sshll.u32 %s3782_s30, 1 }
  0x20   : > { %5089 = sst [smem:[#allocation21_spill]] %s5088_s15  ;;  %s260_s11 = sand.u32 1, %s3786_s6  }
  0x21   : > { %s5090_s16 = scalar_select %p3969_p10, 1, 0 }
  0x22   : > { %s262_s12 = sand.u32 1, %s3754_s23   ;;  %s269_s5 = sadd.s32 %s3778_s29, %s3075_s17 }
  0x23   : > { %5091 = sst [smem:[#allocation22_spill]] %s5090_s16  ;;  %s3077_s21 = sshll.u32 %s262_s12, 3 }
  0x24   : > { %s3079_s8 = sshll.u32 %s269_s5, 7  ;;  %s5092_s1 = sld [smem:[#allocation24_spill]] }
  0x25   : > { %s264_s15 = scalar_lea.vmem [#allocation5], %s3077_s21  ;;  %p3989_p12 = pnand %p5067_p11, %p3955_p6 }
  0x26   : > { %s273_s14 = sshll.u32 %s264_s15, 4  ;;  %s3993_s5 = scalar_lea.sflag [#allocation6], %s260_s11  ;;  %s3983_s14 = int_to_ptr.vmem [resolvable:$true] %s273_s14 }
  0x27   : > { %p3508_p0 = pneg %p3989_p12 }
  0x2a   : > { %s3981_s4 = scalar_lea.hbm %s5092_s1, %s3079_s8  ;;  %s3511_s12 = scalar_lea.hbm %s5092_s1, 512 }
  0x2b   : > { %s3506_s27 = scalar_lea.hbm %s3981_s4, 128  ;;  %p3512_p5 = scmp.lt.u32.totalorder %s3981_s4, %s5092_s1 }
  0x2c   : > { %p3507_p13 = scmp.ne.s32.totalorder %s3981_s4, %s3506_s27  ;;  %p3513_p6 = scmp.lt.u32.totalorder %s3511_s12, %s3506_s27 }
  0x2d   : > { %p3515_p11 = scmp.lt.u32.totalorder %s3506_s27, %s3981_s4 }
  0x2e   : > { %p3509_p3 = pnand %p3508_p0, %p3507_p13  ;;  %p3514_p7 = por %p3513_p6, %p3512_p5 }
  0x30   : > { %p3510_p4 = pneg %p3509_p3  ;;  %p3516_p1 = por %p3515_p11, %p3514_p7 }
  0x32   : > { %p3517_p2 = pnand %p3516_p1, %p3510_p4 }
  0x34   : > { %3520 = shalt.err (!%p3517_p2)
}
  0x35   : > { %s3521_s11 = scalar_lea.vmem %s3983_s14, 128  ;;  %s3788_s17 = smov [#allocation5]  }
  0x36   : > { %p3522_p13 = scmp.ne.s32.totalorder %s3983_s14, %s3521_s11  ;;  %s3526_s8 = sshll.u32 %s3788_s17, 4  ;;  %s3527_s8 = int_to_ptr.vmem [resolvable:$false] %s3526_s8 }
  0x37   : > { %s3528_s21 = scalar_lea.vmem %s3527_s8, 256  ;;  %p3529_p9 = scmp.lt.s32.totalorder %s3983_s14, %s3527_s8 }
  0x38   : > { %p3524_p3 = pnand %p3522_p13, %p3508_p0  ;;  %p3530_p5 = scmp.lt.s32.totalorder %s3528_s21, %s3521_s11 }
  0x3a   : > { %p3525_p10 = pneg %p3524_p3  ;;  %p3531_p6 = por %p3530_p5, %p3529_p9 }
  0x3c   : > { %p3532_p11 = pnand %p3531_p6, %p3525_p10 }
  0x3e   : > { %3535 = shalt.err (!%p3532_p11)
}
  0x3f   : > { %3273 = dma.hbm_to_vmem [thread:$0]  (!%p3989_p12), %s3981_s4, 128, %s3983_s14, %s3993_s5  }
  0x40   : > { %p3070_p1 = scmp.ge.s32.totalorder %s3786_s6, 1  ;;  %p208_p2 = scmp.lt.s32.totalorder %s3786_s6, 5 }
  0x41   : > { %s3789_s27 = smov [#allocation8]   ;;  %p5095_p10 = scmp.eq.s32.totalorder %s3933_s7, 0 }
  0x42   : > { %s220_s28 = sshll.u32 %s3789_s27, 4  ;;  %p4023_p0 = pnand %p3070_p1, %p208_p2  ;;  %s221_s28 = int_to_ptr.vmem [resolvable:$true] %s220_s28 }
  0x43   : > { %s5097_s3 = sld [smem:[#allocation25_spill]] }
  0x44   : > { %s5094_s12 = scalar_select %p4023_p0, 1, 0 }
  0x45   : > { %p3263_p9 = pneg %p4023_p0 }
  0x47   : > { %p4031_p4 = pnand %p3263_p9, %p5095_p10 }
  0x49   : > { %s3536_s13 = scalar_lea.hbm %s5097_s3, 1152  ;;  %p3538_p13 = pneg %p4031_p4 }
  0x4a   : > { %p3537_p12 = scmp.ne.s32.totalorder %s5097_s3, %s3536_s13  ;;  %p3543_p6 = scmp.lt.u32.totalorder %s3536_s13, %s5097_s3 }
  0x4c   : > { %p3539_p3 = pnand %p3538_p13, %p3537_p12 }
  0x4e   : > { %p3540_p5 = pneg %p3539_p3 }
  0x50   : > { %p3545_p11 = pnand %p3543_p6, %p3540_p5 }
  0x52   : > { %3548 = shalt.err (!%p3545_p11)
}
  0x53   : > { %s3549_s21 = scalar_lea.vmem %s221_s28, 1152  ;;  %p3557_p10 = scmp.lt.s32.totalorder %s221_s28, %s221_s28 }
  0x54   : > { %p3550_p1 = scmp.ne.s32.totalorder %s221_s28, %s3549_s21  ;;  %p3558_p7 = scmp.lt.s32.totalorder %s3549_s21, %s3549_s21 }
  0x56   : > { %p3552_p2 = pnand %p3550_p1, %p3538_p13  ;;  %p3559_p8 = por %p3558_p7, %p3557_p10 }
  0x58   : > { %p3553_p9 = pneg %p3552_p2 }
  0x5a   : > { %p3560_p0 = pnand %p3559_p8, %p3553_p9 }
  0x5c   : > { %3563 = shalt.err (!%p3560_p0)
}
  0x5d   : > { %s3790_s27 = smov 64   ;;  %s3791_s4 = smov 4  }
  0x5e   : > { %3266 = dma.hbm_to_vmem [thread:$0]  (!%p4031_p4), %s5097_s3, 1152, %s221_s28, [#allocation9], %s3790_s27, %s3790_s27, %s3791_s4  }
  0x5f   : > { %p5098_p8 = scmp.ge.s32.totalorder %s5157_s10, 2  ;;  %s52_s11 = sadd.s32 1, %s3766_s26 }
  0x60   : > { %p59_p0 = scmp.ne.s32.totalorder %s3766_s26, %s3762_s25  ;;  %p65_p7 = scmp.ne.s32.totalorder %s3762_s25, %s3758_s24 }
  0x61   : > { %s5159_s10 = smov (%p5098_p8, %s5157_s10), 0  ;;  %p5100_p12 = scmp.eq.s32.totalorder %s3786_s6, 0 }
  0x62   : > { %5099 = sst [smem:[#allocation23_spill]] %s5159_s10  ;;  %s4059_s15 = ssub.s32 %s3782_s30, %s5159_s10 }
  0x63   : > { %p4068_p13 = por %p5100_p12, %p59_p0  ;;  %p5075_p4 = scmp.eq.s32.totalorder %s4059_s15, 0 }
  0x64   : > { %p5102_p3 = scmp.eq.s32.totalorder %s3933_s7, 0  ;;  %s5104_s17 = ssub.s32 %s3778_s29, %s5155_s9 }
  0x65   : > { %s77_s8 = sor.u32 %s5104_s17, %s4059_s15  ;;  %s237_s21 = sand.u32 1, %s3766_s26  }
  0x66   : > { %p4075_p5 = por %p5102_p3, %p65_p7  ;;  %p78_p6 = scmp.eq.s32.totalorder %s77_s8, 0 }
  0x67   : > { %s4087_s27 = scalar_select %p5075_p4, %s3766_s26, %s52_s11  }
  0x68   : > { %s3073_s24 = sshll.u32 %s237_s21, 3  ;;  %s5105_s4 = sadd.s32 1, %s3754_s23 }
  0x69   : > { %s4092_s14 = scalar_select %p78_p6, %s3754_s23, %s5105_s4  }
  0x6a   : > { %s3728_s13 = sshll.u32 %s3782_s30, 8  ;;  %s241_s17 = scalar_lea.vmem [#allocation2], %s3073_s24 }
  0x6b   : > { %s4100_s10 = scalar_lea.hbm %s5052_s0, %s3728_s13  ;;  %s253_s9 = sshll.u32 %s241_s17, 4  ;;  %s4102_s9 = int_to_ptr.vmem [resolvable:$true] %s253_s9 }
  0x6c   : > { %p5106_p11 = scmp.lt.s32.totalorder %s3786_s6, 4  ;;  %s238_s8 = scalar_lea.sflag [#allocation3], %s237_s21 }
  0x6d   : > { %s3564_s1 = scalar_lea.hbm %s4100_s10, 128  ;;  %s3569_s16 = scalar_lea.hbm %s5052_s0, 512 }
  0x6e   : > { %p4108_p1 = pnand %p5106_p11, %p4068_p13  ;;  %p3565_p2 = scmp.ne.s32.totalorder %s4100_s10, %s3564_s1 }
  0x6f   : > { %p3570_p0 = scmp.lt.u32.totalorder %s4100_s10, %s5052_s0  ;;  %p3571_p7 = scmp.lt.u32.totalorder %s3569_s16, %s3564_s1 }
  0x70   : > { %p3566_p9 = pneg %p4108_p1  ;;  %p3573_p13 = scmp.lt.u32.totalorder %s3564_s1, %s4100_s10 }
  0x71   : > { %p3572_p12 = por %p3571_p7, %p3570_p0 }
  0x72   : > { %p3567_p10 = pnand %p3566_p9, %p3565_p2 }
  0x73   : > { %p3574_p3 = por %p3573_p13, %p3572_p12 }
  0x74   : > { %p3568_p8 = pneg %p3567_p10 }
  0x76   : > { %p3575_p6 = pnand %p3574_p3, %p3568_p8 }
  0x78   : > { %3578 = shalt.err (!%p3575_p6)
}
  0x79   : > { %s3579_s21 = scalar_lea.vmem %s4102_s9, 128  ;;  %s3792_s3 = smov [#allocation2]  }
  0x7a   : > { %p3580_p11 = scmp.ne.s32.totalorder %s4102_s9, %s3579_s21  ;;  %s3584_s24 = sshll.u32 %s3792_s3, 4  ;;  %s3585_s24 = int_to_ptr.vmem [resolvable:$false] %s3584_s24 }
  0x7b   : > { %s3586_s4 = scalar_lea.vmem %s3585_s24, 256  ;;  %p3587_p4 = scmp.lt.s32.totalorder %s4102_s9, %s3585_s24 }
  0x7c   : > { %p3582_p2 = pnand %p3580_p11, %p3566_p9  ;;  %p3588_p0 = scmp.lt.s32.totalorder %s3586_s4, %s3579_s21 }
  0x7e   : > { %p3583_p10 = pneg %p3582_p2  ;;  %p3589_p7 = por %p3588_p0, %p3587_p4 }
  0x80   : > { %p3590_p12 = pnand %p3589_p7, %p3583_p10 }
  0x82   : > { %3593 = shalt.err (!%p3590_p12)
}
  0x83   : > { %3270 = dma.hbm_to_vmem [thread:$0]  (!%p4108_p1), %s4100_s10, 128, %s4102_s9, %s238_s8  }
  0x84   : > { %s114_s1 = sadd.s32 1, %s3742_s20  ;;  %p121_p4 = scmp.ne.s32.totalorder %s3742_s20, %s3738_s19 }
  0x85   : > { %p127_p9 = scmp.ne.s32.totalorder %s3738_s19, %s3734_s18  ;;  %s282_s16 = sand.u32 1, %s3742_s20  }
  0x86   : > { %p5108_p8 = scmp.eq.s32.totalorder %s3786_s6, 0  ;;  %p5109_p3 = scmp.eq.s32.totalorder %s3933_s7, 0 }
  0x87   : > { %s3080_s17 = sshll.u32 %s282_s16, 3  ;;  %s3730_s21 = sadd.s32 128, %s3728_s13 }
  0x88   : > { %p123_p13 = por %p121_p4, %p5108_p8  ;;  %p4147_p6 = por %p127_p9, %p5109_p3 }
  0x89   : > { %s284_s3 = scalar_lea.vmem [#allocation7], %s3080_s17  ;;  %p5111_p11 = scmp.eq.s32.totalorder %s4059_s15, 0 }
  0x8a   : > { %s5110_s11 = scalar_select %p4147_p6, 1, 0 }
  0x8b   : > { %s296_s24 = sshll.u32 %s284_s3, 4  ;;  %s4161_s18 = scalar_lea.hbm %s5054_s2, %s3730_s21  ;;  %s4163_s24 = int_to_ptr.vmem [resolvable:$true] %s296_s24 }
  0x8c   : > { %s4156_s4 = scalar_select %p5111_p11, %s3742_s20, %s114_s1  }
  0x8d   : > { %p5112_p1 = scmp.lt.s32.totalorder %s3786_s6, 4  ;;  %s3594_s15 = scalar_lea.hbm %s4161_s18, 128 }
  0x8e   : > { %p3595_p10 = scmp.ne.s32.totalorder %s4161_s18, %s3594_s15  ;;  %s3599_s16 = scalar_lea.hbm %s5054_s2, 512 }
  0x8f   : > { %p4167_p2 = pnand %p5112_p1, %p123_p13  ;;  %p3600_p4 = scmp.lt.u32.totalorder %s4161_s18, %s5054_s2 }
  0x90   : > { %p3601_p9 = scmp.lt.u32.totalorder %s3599_s16, %s3594_s15  ;;  %p3603_p13 = scmp.lt.u32.totalorder %s3594_s15, %s4161_s18 }
  0x91   : > { %p3596_p0 = pneg %p4167_p2 }
  0x92   : > { %p3602_p8 = por %p3601_p9, %p3600_p4 }
  0x93   : > { %p3597_p7 = pnand %p3596_p0, %p3595_p10 }
  0x94   : > { %p3604_p3 = por %p3603_p13, %p3602_p8 }
  0x95   : > { %p3598_p12 = pneg %p3597_p7 }
  0x97   : > { %p3605_p11 = pnand %p3604_p3, %p3598_p12 }
  0x99   : > { %3608 = shalt.err (!%p3605_p11)
}
  0x9a   : > { %s3609_s3 = scalar_lea.vmem %s4163_s24, 128  ;;  %s3793_s9 = smov [#allocation7]  }
  0x9b   : > { %p3610_p1 = scmp.ne.s32.totalorder %s4163_s24, %s3609_s3  ;;  %s3614_s10 = sshll.u32 %s3793_s9, 4  ;;  %s3615_s10 = int_to_ptr.vmem [resolvable:$false] %s3614_s10 }
  0x9c   : > { %s3616_s13 = scalar_lea.vmem %s3615_s10, 256  ;;  %p3617_p6 = scmp.lt.s32.totalorder %s4163_s24, %s3615_s10 }
  0x9d   : > { %p3612_p10 = pnand %p3610_p1, %p3596_p0  ;;  %p3618_p4 = scmp.lt.s32.totalorder %s3616_s13, %s3609_s3 }
  0x9f   : > { %p3613_p7 = pneg %p3612_p10  ;;  %p3619_p9 = por %p3618_p4, %p3617_p6 }
  0xa1   : > { %p3620_p8 = pnand %p3619_p9, %p3613_p7 }
  0xa3   : > { %3623 = shalt.err (!%p3620_p8)
}
  0xa4   : > { %3276 = dma.hbm_to_vmem [thread:$0]  (!%p4167_p2), %s4161_s18, 128, %s4163_s24, %s3993_s5  }
  0xa5   : > { %p5114_p12 = scmp.ne.s32.totalorder %s5094_s12, 0 }
  0xa6   : > { %s307_s15 = sand.u32 (!%p5114_p12), 1, %s3762_s25  }
  0xa7   : > { %305 = sbr.rel (%p5114_p12) target bundleno = 3482 (0xd9a), region = 40  ;;  %s4200_s1 = sshll.u32 (!%p5114_p12), %s307_s15, 3 }
  0xa8   : > { %s308_s16 = scalar_lea.sflag (!%p5114_p12), [#allocation3], %s307_s15  ;;  %s311_s17 = scalar_lea.vmem (!%p5114_p12), [#allocation2], %s4200_s1 }
  0xae   : > { %3709 = dma.done.wait (%p4075_p5), %s308_s16, 128  }
  0xaf   : > { %3711 = vsyncadd (%p4075_p5), %s308_s16, 4294967168  ;;  %s5115_s5 = sld [smem:[#allocation20_spill]]  ;;  %s316_s24 = sand.u32 1, %s3933_s7  }
  0xb0   : > { %s318_s12 = sand.u32 1, %s3750_s22   ;;  %s317_s8 = scalar_lea.sflag [#allocation6], %s316_s24 }
  0xb1   : > { %s4211_s18 = sshll.u32 %s318_s12, 3 }
  0xb2   : > { %s320_s21 = scalar_lea.vmem [#allocation5], %s4211_s18 }
  0xb5   : > { %p5116_p6 = scmp.ne.s32.totalorder %s5115_s5, 0 }
  0xb7   : > { %3713 = dma.done.wait (%p5116_p6), %s317_s8, 128  }
  0xb8   : > { %3715 = vsyncadd (%p5116_p6), %s317_s8, 4294967168  ;;  %s327_s28 = sand.u32 1, %s3738_s19   ;;  %p5117_p5 = scmp.ne.s32.totalorder %s5110_s11, 0 }
  0xb9   : > { %s3086_s3 = sshll.u32 %s327_s28, 3 }
  0xba   : > { %s329_s9 = scalar_lea.vmem [#allocation7], %s3086_s3 }
  0xbb   : > { %3717 = dma.done.wait (%p5117_p5), %s317_s8, 128  }
  0xbc   : > { %3719 = vsyncadd (%p5117_p5), %s317_s8, 4294967168  ;;  %p5118_p2 = scmp.eq.s32.totalorder %s3933_s7, 0 }
  0xbe   : > { %3721 = dma.done.wait (%p5118_p2), [#allocation9], 1152   ;;  %p5119_p0 = pmov %p5118_p2 }
  0xbf   : > { %v3794_v0 = vmov 0   ;;  %s5120_s15 = sld [smem:[#allocation26_spill]]  ;;  %v398_v2 = vld [vmem:[%s320_s21] sm:$0xff]  ;;  %s3795_s11 = smov 12   ;;  %v399_v3 = vld [vmem:[%s329_s9] sm:$0xff]  ;;  %v3796_v5 = vmov 1  }
  0xc0   : > { %3723 = vsyncadd (%p5119_p0), [#allocation9], 4294966144  ;;  %3437 = vset.pattern.permute.xlu0 %v3794_v0  ;;  %699 = vmatprep.mubr.bf16.mxu0 %v3794_v0  ;;  %v397_v4 = vld [vmem:[%s311_s17] sm:$0xff]  ;;  %vm412_vm0 = vcmask 97280   ;;  %v3797_v32 = vmov 683565275  }
  0xc1   : > { %749 = vmatprep.mubr.bf16.mxu1 %v3794_v0  ;;  %405 = vrot.lane.b32.xlu1 %v398_v2, %s3795_s11  ;;  %v3798_v34 = vmov 2475754826   ;;  %v3799_v37 = vmov 2131351028   ;;  %v3800_v39 = vmov 2102212464  }
  0xc2   : > { %v3801_v41 = vmov 920167782   ;;  %v3802_v48 = vmov 1326507024   ;;  %s5121_s7 = sld [smem:[#allocation17_spill]]  ;;  %s3804_s17 = smov 126  }
  0xc3   : > { %s3805_s5 = smov 127   ;;  %s3812_s21 = smov 2  }
  0xc4   : > { %s3813_s28 = smov 123   ;;  %s3814_s3 = smov 120  }
  0xc5   : > { %v4233_v1 = vld [vmem:[%s5120_s15] sm:$0xff]  ;;  %409 = vrot.lane.b32.xlu1 %v399_v3, %s3795_s11  ;;  %s3821_s13 = smov 6   ;;  %s3824_s24 = smov 112  }
  0xc6   : > { %418 = vperm.xlu0 %3437, %v4233_v1  }
  0xc8   : > { %s3089_s1 = sshll.u32 %s5121_s7, 7 }
  0xc9   : > { %s4339_s16 = sadd.s32 4294967284, %s3089_s1  ;;  %s3822_s1 = smov 117  }
  0xca   : > { %401 = vrot.lane.b32.xlu0 %v397_v4, %s3795_s11 }
  0xcb   : > { %3438 = vset.pattern.permute.xlu0 %v3796_v5 }
  0xce   : > { %634 = vperm.xlu0 %3438, %v4233_v1  }
 0x133   : > { %v406_v6 = vpop.permute.xlu1 %405 }
 0x137   : > { %v410_v7 = vpop.permute.xlu1 %409 }
 0x138   : > { %v4240_v8 = vsel %vm412_vm0, %v406_v6, %v410_v7 }
 0x145   : > { %v419_v9 = vpop.permute.xlu0 %418 }
 0x146   : > { %v4243_v10 = vmul.f32 %v419_v9, %v4240_v8 }
 0x148   : > { %v527_v11 = vand.u32 2147483647, %v4243_v10  ;;  %v530_v12 = vand.u32 2139095040, %v4243_v10  ;;  %vm529_vm15 = vcmp.lt.s32.totalorder %v4243_v10, 0 }
 0x149   : > { %v402_v13 = vpop.permute.xlu0 %401 }
 0x14a   : > { %v531_v14 = vshrl.u32 %v530_v12, 23  ;;  %v4247_v15 = vsel %vm412_vm0, %v402_v13, %v406_v6  ;;  %v534_v16 = vand.u32 8388607, %v527_v11  ;;  %vm4329_vm0 = vcmp.le.f32.partialorder %v527_v11, 0.7853982 }
 0x14b   : > { %v4252_v17 = vmul.f32 %v419_v9, %v4247_v15 }
 0x14c   : > { %v3097_v18 = vadd.s32 4294967169, %v531_v14  ;;  %v535_v22 = vor.u32 8388608, %v534_v16 }
 0x14d   : > { %v426_v19 = vand.u32 2139095040, %v4252_v17  ;;  %v423_v20 = vand.u32 2147483647, %v4252_v17 }
 0x14e   : > { %v537_v21 = vadd.s32 1, %v3097_v18  ;;  %v4258_v29 = vshll.u32 %v535_v22, 8 }
 0x14f   : > { %v427_v23 = vshrl.u32 %v426_v19, 23  ;;  %v430_v24 = vand.u32 8388607, %v423_v20 }
 0x150   : > { %vm538_vm1 = vcmp.gt.s32.totalorder %v537_v21, 0 }
 0x151   : > { %v539_v25 = vsel %vm538_vm1, %v537_v21, 0  ;;  %v3093_v26 = vadd.s32 4294967169, %v427_v23  ;;  %v431_v30 = vor.u32 8388608, %v430_v24  ;;  %vm425_vm1 = vcmp.lt.s32.totalorder %v4252_v17, 0 }
 0x152   : > { %v540_v27 = vshrl.u32 %v539_v25, 5  ;;  %v541_v28 = vand.u32 31, %v539_v25 }
 0x153   : > { %v433_v36 = vadd.s32 1, %v3093_v26  ;;  %v471_v19 = vshll.u32 %v431_v30, 8 }
 0x154   : > { %v542_v31 = vsub.s32 32, %v541_v28  ;;  %v544_v33 = vshll.u32 %v3797_v32, %v541_v28  ;;  %v547_v35 = vshll.u32 %v3798_v34, %v541_v28  ;;  %v550_v38 = vshll.u32 %v3799_v37, %v541_v28 }
 0x155   : > { %v553_v40 = vshll.u32 %v3800_v39, %v541_v28  ;;  %v556_v42 = vshll.u32 %v3801_v41, %v541_v28  ;;  %vm559_vm2 = vcmp.lt.s32.totalorder %v540_v27, 1  ;;  %vm560_vm3 = vcmp.lt.s32.totalorder %v540_v27, 2 }
 0x156   : > { %v545_v43 = vshrl.u32 %v3798_v34, %v542_v31  ;;  %v548_v44 = vshrl.u32 %v3799_v37, %v542_v31  ;;  %v551_v45 = vshrl.u32 %v3800_v39, %v542_v31  ;;  %v543_v46 = vshrl.u32 %v3797_v32, %v542_v31 }
 0x157   : > { %v554_v47 = vshrl.u32 %v3801_v41, %v542_v31  ;;  %v557_v49 = vshrl.u32 %v3802_v48, %v542_v31  ;;  %vm561_vm4 = vcmp.lt.s32.totalorder %v540_v27, 3  ;;  %vm434_vm5 = vcmp.gt.s32.totalorder %v433_v36, 0 }
 0x158   : > { %v546_v50 = vor.u32 %v545_v43, %v544_v33  ;;  %v549_v51 = vor.u32 %v548_v44, %v547_v35  ;;  %v552_v52 = vor.u32 %v551_v45, %v550_v38  ;;  %vm562_vm6 = vcmp.lt.s32.totalorder %v540_v27, 4 }
 0x159   : > { %v555_v53 = vor.u32 %v554_v47, %v553_v40  ;;  %v558_v54 = vor.u32 %v557_v49, %v556_v42  ;;  %v435_v55 = vsel %vm434_vm5, %v433_v36, 0 }
 0x15a   : > { %v563_v56 = vsel %vm559_vm2, %v543_v46, %v546_v50  ;;  %v564_v57 = vsel %vm562_vm6, %v552_v52, 2102212464  ;;  %v567_v58 = vsel %vm559_vm2, %v546_v50, %v549_v51  ;;  %v571_v59 = vsel %vm559_vm2, %v549_v51, %v552_v52 }
 0x15b   : > { %v565_v60 = vsel %vm561_vm4, %v549_v51, %v564_v57  ;;  %v568_v61 = vsel %vm562_vm6, %v555_v53, 920167782  ;;  %v572_v62 = vsel %vm562_vm6, %v558_v54, 1326507024  ;;  %v436_v63 = vshrl.u32 %v435_v55, 5 }
 0x15c   : > { %v566_v2 = vsel %vm560_vm3, %v563_v56, %v565_v60  ;;  %v569_v3 = vsel %vm561_vm4, %v552_v52, %v568_v61  ;;  %v573_v4 = vsel %vm561_vm4, %v555_v53, %v572_v62  ;;  %v437_v5 = vand.u32 31, %v435_v55 }
 0x15d   : > { %v570_v6 = vsel %vm560_vm3, %v567_v58, %v569_v3  ;;  %v574_v7 = vsel %vm560_vm3, %v571_v59, %v573_v4  ;;  %v582_v16 = vmul.u32 %v4258_v29, %v566_v2  ;;  %vm458_vm7 = vcmp.lt.s32.totalorder %v436_v63, 4 }
 0x15e   : > { %v4281_v9 = vmul.u32.u64.low %v4258_v29, %v574_v7  ;;  %v4282_v12 = vmul.u32.u64.high %v4258_v29, %v574_v7, %v4281_v9  ;;  %v4285_v13 = vmul.u32.u64.low %v4258_v29, %v570_v6  ;;  %v4286_v14 = vmul.u32.u64.high %v4258_v29, %v570_v6, %v4285_v13 }
 0x15f   : > { %v438_v18 = vsub.s32 32, %v437_v5  ;;  %v449_v21 = vshll.u32 %v3800_v39, %v437_v5  ;;  %v452_v22 = vshll.u32 %v3801_v41, %v437_v5  ;;  %v440_v23 = vshll.u32 %v3797_v32, %v437_v5 }
 0x160   : > { %v443_v27 = vshll.u32 %v3798_v34, %v437_v5  ;;  %vm584_vm8 = vc.u32 %v4282_v12, %v4285_v13  ;;  %v585_v28 = vadd.s32 1, %v4286_v14  ;;  %v446_v30 = vshll.u32 %v3799_v37, %v437_v5 }
 0x161   : > { %v450_v24 = vshrl.u32 %v3801_v41, %v438_v18  ;;  %v453_v25 = vshrl.u32 %v3802_v48, %v438_v18  ;;  %v441_v26 = vshrl.u32 %v3798_v34, %v438_v18  ;;  %v444_v29 = vshrl.u32 %v3799_v37, %v438_v18 }
 0x162   : > { %v447_v36 = vshrl.u32 %v3800_v39, %v438_v18  ;;  %v586_v38 = vsel %vm584_vm8, %v585_v28, %v4286_v14  ;;  %vm455_vm9 = vcmp.lt.s32.totalorder %v436_v63, 1  ;;  %vm457_vm10 = vcmp.lt.s32.totalorder %v436_v63, 3 }
 0x163   : > { %v451_v31 = vor.u32 %v450_v24, %v449_v21  ;;  %v454_v33 = vor.u32 %v453_v25, %v452_v22  ;;  %v442_v35 = vor.u32 %v441_v26, %v440_v23  ;;  %v445_v40 = vor.u32 %v444_v29, %v443_v27 }
 0x164   : > { %v587_v42 = vadd.s32 %v586_v38, %v582_v16  ;;  %v448_v45 = vor.u32 %v447_v36, %v446_v30  ;;  %v439_v46 = vshrl.u32 %v3797_v32, %v438_v18  ;;  %vm456_vm11 = vcmp.lt.s32.totalorder %v436_v63, 2 }
 0x165   : > { %v464_v43 = vsel %vm458_vm7, %v451_v31, 920167782  ;;  %v468_v44 = vsel %vm458_vm7, %v454_v33, 1326507024  ;;  %v463_v47 = vsel %vm455_vm9, %v442_v35, %v445_v40  ;;  %v583_v63 = vadd.s32 %v4285_v13, %v4282_v12 }
 0x166   : > { %v469_v49 = vsel %vm457_vm10, %v451_v31, %v468_v44  ;;  %v588_v50 = vadd.s32 536870912, %v587_v42  ;;  %v460_v51 = vsel %vm458_vm7, %v448_v45, 2102212464  ;;  %v465_v52 = vsel %vm457_vm10, %v448_v45, %v464_v43 }
 0x167   : > { %v467_v53 = vsel %vm455_vm9, %v445_v40, %v448_v45  ;;  %v459_v54 = vsel %vm455_vm9, %v439_v46, %v442_v35  ;;  %v466_v55 = vsel %vm456_vm11, %v463_v47, %v465_v52  ;;  %v461_v58 = vsel %vm457_vm10, %v445_v40, %v460_v51 }
 0x168   : > { %v470_v56 = vsel %vm456_vm11, %v467_v53, %v469_v49  ;;  %v589_v57 = vshrl.u32 %v588_v50, 30  ;;  %v4316_v61 = vmul.u32.u64.low %v471_v19, %v466_v55  ;;  %v4317_v62 = vmul.u32.u64.high %v471_v19, %v466_v55, %v4316_v61 }
 0x169   : > { %v4313_v59 = vmul.u32.u64.low %v471_v19, %v470_v56  ;;  %v4314_v60 = vmul.u32.u64.high %v471_v19, %v470_v56, %v4313_v59  ;;  %v462_v3 = vsel %vm456_vm11, %v459_v54, %v461_v58  ;;  %v379_v13 = vlaneseq }
 0x16a   : > { %v590_v2 = vshll.u32 %v589_v57, 30  ;;  %v481_v5 = vadd.s32 1, %v4317_v62  ;;  %v478_v7 = vmul.u32 %v471_v19, %v462_v3  ;;  %v613_v45 = vsub.s32 4, %v589_v57 }
 0x16b   : > { %vm480_vm12 = vc.u32 %v4314_v60, %v4316_v61  ;;  %v479_v49 = vadd.s32 %v4316_v61, %v4314_v60  ;;  %vm4345_vm2 = vcmp.le.f32.partialorder %v423_v20, 0.7853982  ;;  %vm619_vm8 = vweird.f32 %v4243_v10 }
 0x16c   : > { %v591_v4 = vsub.s32 %v587_v42, %v590_v2  ;;  %v482_v9 = vsel %vm480_vm12, %v481_v5, %v4317_v62  ;;  %v614_v53 = vsel %vm529_vm15, %v613_v45, %v589_v57  ;;  %v380_v62 = vand.u32 127, %v379_v13 }
 0x16d   : > { %v483_v16 = vadd.s32 %v482_v9, %v478_v7  ;;  %v616_v11 = vsel %vm4329_vm0, 0, %v614_v53  ;;  %vm660_vm12 = vcmask 1043456  }
 0x16e   : > { %v593_v6 = vsub.s32 0, %v591_v4  ;;  %v381_v2 = vadd.s32 128, %v380_v62  ;;  %v620_v5 = vadd.s32 3, %v616_v11  ;;  %v3806_v11 = vmov 2  }
 0x16f   : > { %v484_v21 = vadd.s32 536870912, %v483_v16  ;;  %3439 = vset.pattern.permute.xlu0 %v3806_v11 }
 0x170   : > { %v3098_v14 = vmin.u32 %v593_v6, %v591_v4  ;;  %v382_v6 = vstv %s4339_s16  ;;  %s3823_s16 = smov 122  }
 0x171   : > { %v485_v23 = vshrl.u32 %v484_v21, 30 }
 0x172   : > { %v595_v18 = vclz %v3098_v14  ;;  %v384_v14 = vadd.s32 %v382_v6, %v381_v2  ;;  %v3808_v2 = vmov 4  }
 0x173   : > { %v486_v24 = vshll.u32 %v485_v23, 30  ;;  %v509_v9 = vsub.s32 4, %v485_v23 }
 0x174   : > { %v3099_v22 = vadd.s32 4294967294, %v595_v18  ;;  %v621_v18 = vand.u32 3, %v620_v5  ;;  %vm386_vm3 = vcmp.ge.s32.totalorder %v384_v14, 0  ;;  %vm388_vm5 = vcmp.lt.s32.totalorder %v384_v14, 200 }
 0x175   : > { %v487_v28 = vsub.s32 %v483_v16, %v486_v24  ;;  %vm390_vm9 = vmand %vm386_vm3, %vm388_vm5  ;;  %vm654_vm3 = vcmask 1039360  }
 0x176   : > { %vm3100_vm13 = vcmp.lt.s32.totalorder %v3099_v22, 0  ;;  %vm626_vm4 = vcmp.eq.s32.totalorder %v621_v18, 2  ;;  %vm623_vm6 = vcmp.eq.s32.totalorder %v621_v18, 0  ;;  %vm622_vm7 = vcmp.lt.s32.totalorder %v621_v18, 2  ;;  %v759_v18 = vld [vmem:[#allocation8 + $0x8] sm:$0xf] }
 0x177   : > { %v598_v25 = vsel %vm3100_vm13, 0, %v3099_v22  ;;  %v489_v31 = vsub.s32 0, %v487_v28 }
 0x178   : > { %v599_v26 = vsub.s32 32, %v598_v25  ;;  %v603_v27 = vsub.s32 4294967266, %v598_v25  ;;  %v600_v29 = vshll.u32 %v591_v4, %v598_v25  ;;  %v510_v25 = vsel %vm425_vm1, %v509_v9, %v485_v23 }
 0x179   : > { %v3094_v36 = vmin.u32 %v489_v31, %v487_v28 }
 0x17a   : > { %v601_v30 = vshrl.u32 %v583_v63, %v599_v26  ;;  %v604_v19 = vadd.s32 127, %v603_v27 }
 0x17b   : > { %v491_v40 = vclz %v3094_v36  ;;  %v3803_v36 = vmov 0.0  }
 0x17c   : > { %v602_v33 = vor.u32 %v601_v30, %v600_v29  ;;  %v605_v35 = vshll.u32 %v604_v19, 23  ;;  %v512_v29 = vsel %vm4345_vm2, 0, %v510_v25 }
 0x17d   : > { %v3095_v44 = vadd.s32 4294967294, %v491_v40  ;;  %v516_v19 = vadd.s32 3, %v512_v29 }
 0x17e   : > { %v606_v38 = vor.u32 4788187, %v605_v35  ;;  %v609_v43 = vcvt.s32.f32 %v602_v33  ;;  %v635_v33 = vpop.permute.xlu0 %634 }
 0x17f   : > { %vm3096_vm14 = vcmp.lt.s32.totalorder %v3095_v44, 0 }
 0x180   : > { %v607_v42 = vand.u32 2147483647, %v606_v38  ;;  %v494_v12 = vsel %vm3096_vm14, 0, %v3095_v44  ;;  %v3092_v38 = vsel %vm390_vm9, 1.0, %v3803_v36 }
 0x181   : > { %v495_v50 = vsub.s32 32, %v494_v12  ;;  %v499_v51 = vsub.s32 4294967266, %v494_v12  ;;  %v496_v55 = vshll.u32 %v487_v28, %v494_v12  ;;  %v4357_v45 = vpack.c.bf16 %v3092_v38, %v3092_v38 }
 0x182   : > { %v610_v46 = vmul.f32 %v609_v43, %v607_v42  ;;  %v383_v42 = vadd.s32 %v382_v6, %v380_v62  ;;  %v517_v43 = vand.u32 3, %v516_v19 }
 0x183   : > { %v497_v56 = vshrl.u32 %v479_v49, %v495_v50  ;;  %v500_v58 = vadd.s32 127, %v499_v51 }
 0x184   : > { %v611_v47 = vxor.u32 2147483648, %v610_v46  ;;  %vm385_vm10 = vcmp.ge.s32.totalorder %v383_v42, 0  ;;  %vm522_vm11 = vcmp.eq.s32.totalorder %v517_v43, 2  ;;  %vm387_vm13 = vcmp.lt.s32.totalorder %v383_v42, 200 }
 0x185   : > { %v498_v60 = vor.u32 %v497_v56, %v496_v55  ;;  %v501_v61 = vshll.u32 %v500_v58, 23  ;;  %vm519_vm14 = vcmp.eq.s32.totalorder %v517_v43, 0 }
 0x186   : > { %v612_v54 = vsel %vm529_vm15, %v611_v47, %v610_v46  ;;  %vm518_vm15 = vcmp.lt.s32.totalorder %v517_v43, 2 }
 0x187   : > { %v615_v59 = vsel %vm4329_vm0, %v4243_v10, %v612_v54  ;;  %v502_v57 = vor.u32 4788187, %v501_v61  ;;  %v505_v4 = vcvt.s32.f32 %v498_v60  ;;  %vm515_vm0 = vweird.f32 %v4252_v17  ;;  %v645_v61 = vld [vmem:[#allocation8] sm:$0xf] }
 0x188   : > { %3455 = vcosq.f32 %v615_v59 }
 0x189   : > { %3457 = vsinq.f32 %v615_v59  ;;  %v503_v3 = vand.u32 2147483647, %v502_v57  ;;  %v3807_v57 = vmov 3  }
 0x18a   : > { %3440 = vset.pattern.permute.xlu1 %v3807_v57 }
 0x18b   : > { %v506_v7 = vmul.f32 %v505_v4, %v503_v3 }
 0x18d   : > { %v507_v16 = vxor.u32 2147483648, %v506_v7 }
 0x18f   : > { %v508_v24 = vsel %vm425_vm1, %v507_v16, %v506_v7  ;;  %vm389_vm1 = vmand %vm385_vm10, %vm387_vm13  ;;  %v647_v7 = vld [vmem:[#allocation8 + $0x4] sm:$0xf] }
 0x190   : > { %v511_v26 = vsel %vm4345_vm2, %v4252_v17, %v508_v24  ;;  %v3091_v55 = vsel %vm389_vm1, 1.0, %v3803_v36  ;;  %vm656_vm2 = vcmask 64512  }
 0x191   : > { %3459 = vcosq.f32 %v511_v26  ;;  %v4364_v59 = vpack.c.bf16 %v3091_v55, %v3091_v55 }
 0x192   : > { %v3456_v21 = vpop.eup %3455  ;;  %3461 = vsinq.f32 %v511_v26 }
 0x193   : > { %v3458_v63 = vpop.eup %3457  ;;  %v627_v27 = vxor.u32 2147483648, %v3456_v21 }
 0x194   : > { %v624_v28 = vxor.u32 2147483648, %v3458_v63 }
 0x195   : > { %v628_v20 = vsel %vm626_vm4, %v627_v27, %v3458_v63  ;;  %vm764_vm4 = vcmask 1031168  }
 0x196   : > { %v625_v30 = vsel %vm623_vm6, %v3456_v21, %v624_v28 }
 0x197   : > { %v629_v23 = vsel %vm622_vm7, %v625_v30, %v628_v20 }
 0x198   : > { %v630_v31 = vsel %vm619_vm8, nan, %v629_v23 }
 0x199   : > { %v632_v35 = vmul.f32 %v630_v31, %v630_v31 }
 0x19b   : > { %v638_v40 = vmul.f32 %v635_v33, %v632_v35  ;;  %v3460_v46 = vpop.eup %3459 }
 0x19c   : > { %v3462_v12 = vpop.eup %3461  ;;  %v523_v13 = vxor.u32 2147483648, %v3460_v46 }
 0x19d   : > { %v640_v44 = vadd.f32 %v638_v40, %v4240_v8  ;;  %v520_v47 = vxor.u32 2147483648, %v3462_v12 }
 0x19e   : > { %v524_v49 = vsel %vm522_vm11, %v523_v13, %v3462_v12 }
 0x19f   : > { %v642_v10 = vpack.c.bf16 %v640_v44, %v640_v44  ;;  %v521_v51 = vsel %vm519_vm14, %v3460_v46, %v520_v47 }
 0x1a0   : > { %v525_v52 = vsel %vm518_vm15, %v521_v51, %v524_v49 }
 0x1a1   : > { %v644_v50 = vmul.bf16 %v642_v10, %v4357_v45  ;;  %v526_v53 = vsel %vm515_vm0, nan, %v525_v52 }
 0x1a2   : > { %v631_v54 = vmul.f32 %v526_v53, %v526_v53 }
 0x1a3   : > { %3103 = vmatprep.subr.msk.bf16.mxu1 %vm660_vm12, %v644_v50 }
 0x1a4   : > { %v637_v56 = vmul.f32 %v635_v33, %v631_v54 }
 0x1a6   : > { %v639_v58 = vadd.f32 %v637_v56, %v4247_v15 }
 0x1a8   : > { %v641_v62 = vpack.c.bf16 %v639_v58, %v639_v58 }
 0x1aa   : > { %v643_v60 = vmul.bf16 %v641_v62, %v4364_v59 }
 0x1ac   : > { %760 = vrot.lane.b32.xlu0 %v643_v60, %s3804_s17  ;;  %650 = vrot.lane.b32.xlu1 %v643_v60, %s3805_s5  ;;  %v712_v17 = vsel %vm660_vm12, %v643_v60, 0 }
 0x1ad   : > { %718 = vmatpush1.bf16.msra.mxu1 %v712_v17 }
 0x1b0   : > { %652 = vrot.lane.b32.xlu1 %v644_v50, %s3805_s5  ;;  %3104 = vmatmul.mubr.msk.bf16.vlgmr.msra.gmra.mrb[0].mxu1 %vm656_vm2, %v645_v61 }
 0x1b1   : > { %819 = vperm.xlu0 %3439, %v4233_v1   ;;  %1113 = vmatprep.mubr.bf16.mxu1 %v3794_v0 }
 0x1b4   : > { %762 = vrot.lane.b32.xlu1 %v644_v50, %s3804_s17 }
 0x1b5   : > { %1052 = vrot.lane.b32.xlu0 %v4364_v59, %s3805_s5 }
 0x1b8   : > { %825 = vperm.xlu1 %3440, %v4233_v1  }
 0x1bc   : > { %3441 = vset.pattern.permute.xlu1 %v3808_v2 }
 0x1bd   : > { %1041 = vperm.xlu1 %3441, %v4233_v1  }
 0x1c1   : > { %1054 = vrot.lane.b32.xlu1 %v4357_v45, %s3805_s5 }
 0x21e   : > { %v651_v3 = vpop.permute.xlu1 %650  ;;  %v761_v9 = vpop.permute.xlu0 %760 }
 0x222   : > { %v653_v4 = vpop.permute.xlu1 %652 }
 0x223   : > { %3101 = vmatprep.subr.msk.bf16.mxu0 %vm660_vm12, %v653_v4  ;;  %v655_v5 = vsel %vm654_vm3, %v651_v3, %v653_v4 }
 0x224   : > { %v662_v6 = vsel %vm660_vm12, %v655_v5, 0 }
 0x225   : > { %668 = vmatpush1.bf16.msra.mxu0 %v662_v6 }
 0x226   : > { %v763_v14 = vpop.permute.xlu1 %762 }
 0x227   : > { %v765_v16 = vsel %vm764_vm4, %v761_v9, %v763_v14  ;;  %3105 = vmatprep.subr.msk.bf16.mxu0 %vm660_vm12, %v763_v14 }
 0x228   : > { %v770_v1 = vsel %vm660_vm12, %v765_v16, 0  ;;  %3102 = vmatmul.mubr.msk.bf16.vlgmr.msra.gmra.mrb[0].mxu0 %vm656_vm2, %v647_v7 }
 0x229   : > { %776 = vmatpush1.bf16.msra.mxu0 %v770_v1  ;;  %807 = vmatprep.mubr.bf16.mxu0 %v3794_v0 }
 0x230   : > { %3106 = vmatmul.mubr.msk.bf16.vlgmr.msra.gmra.mrb[4].mxu0 %vm656_vm2, %v759_v18  ;;  %v820_v23 = vpop.permute.xlu0 %819 }
 0x231   : > { %1163 = vmatprep.mubr.bf16.mxu0 %v3794_v0 }
 0x237   : > { %v826_v38 = vpop.permute.xlu1 %825 }
 0x283   : > { %v751_v21 = vpop.f32.mrb[0].mxu1 }
 0x284   : > { %v753_v22 = vpop.f32.mrb[1].mxu1 }
 0x285   : > { %v755_v24 = vpop.f32.mrb[2].mxu1 }
 0x286   : > { %v756_v25 = vpop.f32.mrb[3].mxu1 }
 0x2fb   : > { %v701_v63 = vpop.f32.mrb[0].mxu0 }
 0x2fc   : > { %v752_v26 = vadd.f32 %v751_v21, %v701_v63  ;;  %v703_v27 = vpop.f32.mrb[1].mxu0 }
 0x2fd   : > { %v754_v28 = vadd.f32 %v753_v22, %v703_v27  ;;  %v705_v29 = vpop.f32.mrb[2].mxu0 }
 0x2fe   : > { %v706_v20 = vpop.f32.mrb[3].mxu0 }
 0x303   : > { %v809_v30 = vpop.f32.mrb[4].mxu0 }
 0x304   : > { %v816_v19 = vadd.f32 %v809_v30, %v752_v26  ;;  %v811_v31 = vpop.f32.mrb[5].mxu0 }
 0x305   : > { %v817_v33 = vadd.f32 %v811_v31, %v754_v28  ;;  %v813_v35 = vpop.f32.mrb[6].mxu0 }
 0x306   : > { %v4391_v40 = vadd.f32 %v820_v23, %v816_v19  ;;  %v814_v42 = vpop.f32.mrb[7].mxu0 }
 0x307   : > { %v4393_v43 = vadd.f32 %v820_v23, %v817_v33 }
 0x308   : > { %v4396_v44 = vmul.f32 %v826_v38, %v4391_v40 }
 0x309   : > { %v4399_v46 = vmul.f32 %v826_v38, %v4393_v43 }
 0x30a   : > { %v830_v12 = vand.u32 2147483647, %v4396_v44  ;;  %v833_v13 = vand.u32 2139095040, %v4396_v44 }
 0x30b   : > { %v937_v10 = vand.u32 2139095040, %v4399_v46  ;;  %v934_v50 = vand.u32 2147483647, %v4399_v46 }
 0x30c   : > { %v834_v47 = vshrl.u32 %v833_v13, 23  ;;  %v837_v49 = vand.u32 8388607, %v830_v12 }
 0x30d   : > { %v938_v51 = vshrl.u32 %v937_v10, 23  ;;  %v941_v56 = vand.u32 8388607, %v934_v50 }
 0x30e   : > { %v3107_v52 = vadd.s32 4294967169, %v834_v47  ;;  %v838_v55 = vor.u32 8388608, %v837_v49 }
 0x30f   : > { %v3111_v53 = vadd.s32 4294967169, %v938_v51  ;;  %v942_v57 = vor.u32 8388608, %v941_v56 }
 0x310   : > { %v840_v54 = vadd.s32 1, %v3107_v52  ;;  %v4409_v11 = vshll.u32 %v838_v55, 8 }
 0x311   : > { %v944_v58 = vadd.s32 1, %v3111_v53 }
 0x312   : > { %vm841_vm5 = vcmp.gt.s32.totalorder %v840_v54, 0 }
 0x313   : > { %v842_v62 = vsel %vm841_vm5, %v840_v54, 0  ;;  %vm945_vm6 = vcmp.gt.s32.totalorder %v944_v58, 0 }
 0x314   : > { %v843_v60 = vshrl.u32 %v842_v62, 5  ;;  %v844_v17 = vand.u32 31, %v842_v62  ;;  %v946_v61 = vsel %vm945_vm6, %v944_v58, 0 }
 0x315   : > { %v4412_v4 = vshrl.u32 %v946_v61, 5  ;;  %v948_v5 = vand.u32 31, %v946_v61 }
 0x316   : > { %v845_v2 = vsub.s32 32, %v844_v17  ;;  %v847_v3 = vshll.u32 %v3797_v32, %v844_v17  ;;  %v850_v6 = vshll.u32 %v3798_v34, %v844_v17  ;;  %v853_v7 = vshll.u32 %v3799_v37, %v844_v17 }
 0x317   : > { %v856_v9 = vshll.u32 %v3800_v39, %v844_v17  ;;  %v859_v14 = vshll.u32 %v3801_v41, %v844_v17  ;;  %vm862_vm7 = vcmp.lt.s32.totalorder %v843_v60, 1  ;;  %vm863_vm8 = vcmp.lt.s32.totalorder %v843_v60, 2 }
 0x318   : > { %v848_v16 = vshrl.u32 %v3798_v34, %v845_v2  ;;  %v851_v1 = vshrl.u32 %v3799_v37, %v845_v2  ;;  %v854_v18 = vshrl.u32 %v3800_v39, %v845_v2  ;;  %v846_v21 = vshrl.u32 %v3797_v32, %v845_v2 }
 0x319   : > { %v857_v22 = vshrl.u32 %v3801_v41, %v845_v2  ;;  %v860_v24 = vshrl.u32 %v3802_v48, %v845_v2  ;;  %v949_v27 = vsub.s32 32, %v948_v5  ;;  %vm864_vm9 = vcmp.lt.s32.totalorder %v843_v60, 3 }
 0x31a   : > { %v849_v25 = vor.u32 %v848_v16, %v847_v3  ;;  %v852_v63 = vor.u32 %v851_v1, %v850_v6  ;;  %v855_v26 = vor.u32 %v854_v18, %v853_v7  ;;  %vm865_vm10 = vcmp.lt.s32.totalorder %v843_v60, 4 }
 0x31b   : > { %v858_v28 = vor.u32 %v857_v22, %v856_v9  ;;  %v861_v29 = vor.u32 %v860_v24, %v859_v14  ;;  %v951_v38 = vshll.u32 %v3797_v32, %v948_v5  ;;  %v952_v10 = vshrl.u32 %v3798_v34, %v949_v27 }
 0x31c   : > { %v866_v20 = vsel %vm862_vm7, %v846_v21, %v849_v25  ;;  %v867_v30 = vsel %vm865_vm10, %v855_v26, 2102212464  ;;  %v870_v23 = vsel %vm862_vm7, %v849_v25, %v852_v63  ;;  %v874_v19 = vsel %vm862_vm7, %v852_v63, %v855_v26 }
 0x31d   : > { %v868_v31 = vsel %vm864_vm9, %v852_v63, %v867_v30  ;;  %v871_v33 = vsel %vm865_vm10, %v858_v28, 920167782  ;;  %v875_v35 = vsel %vm865_vm10, %v861_v29, 1326507024  ;;  %v954_v47 = vshll.u32 %v3798_v34, %v948_v5 }
 0x31e   : > { %v872_v42 = vsel %vm864_vm9, %v855_v26, %v871_v33  ;;  %v876_v13 = vsel %vm864_vm9, %v858_v28, %v875_v35  ;;  %v869_v49 = vsel %vm863_vm8, %v866_v20, %v868_v31  ;;  %v955_v53 = vshrl.u32 %v3799_v37, %v949_v27 }
 0x31f   : > { %v873_v51 = vsel %vm863_vm8, %v870_v23, %v872_v42  ;;  %v877_v52 = vsel %vm863_vm8, %v874_v19, %v876_v13  ;;  %v953_v62 = vor.u32 %v952_v10, %v951_v38  ;;  %v957_v61 = vshll.u32 %v3799_v37, %v948_v5 }
 0x320   : > { %v4435_v54 = vmul.u32.u64.low %v4409_v11, %v877_v52  ;;  %v4436_v55 = vmul.u32.u64.high %v4409_v11, %v877_v52, %v4435_v54  ;;  %v4439_v56 = vmul.u32.u64.low %v4409_v11, %v873_v51  ;;  %v4440_v58 = vmul.u32.u64.high %v4409_v11, %v873_v51, %v4439_v56 }
 0x321   : > { %v956_v17 = vor.u32 %v955_v53, %v954_v47  ;;  %v958_v2 = vshrl.u32 %v3800_v39, %v949_v27  ;;  %v960_v3 = vshll.u32 %v3800_v39, %v948_v5  ;;  %v961_v60 = vshrl.u32 %v3801_v41, %v949_v27 }
 0x322   : > { %v964_v6 = vshrl.u32 %v3802_v48, %v949_v27  ;;  %v982_v7 = vshll.u32 %v942_v57, 8  ;;  %v885_v9 = vmul.u32 %v4409_v11, %v869_v49  ;;  %v950_v14 = vshrl.u32 %v3797_v32, %v949_v27 }
 0x323   : > { %v959_v16 = vor.u32 %v958_v2, %v957_v61  ;;  %v963_v1 = vshll.u32 %v3801_v41, %v948_v5  ;;  %vm887_vm11 = vc.u32 %v4436_v55, %v4439_v56  ;;  %v888_v18 = vadd.s32 1, %v4440_v58 }
 0x324   : > { %v962_v21 = vor.u32 %v961_v60, %v960_v3  ;;  %vm966_vm13 = vcmp.lt.s32.totalorder %v4412_v4, 1  ;;  %vm968_vm14 = vcmp.lt.s32.totalorder %v4412_v4, 3  ;;  %vm969_vm15 = vcmp.lt.s32.totalorder %v4412_v4, 4 }
 0x325   : > { %v965_v22 = vor.u32 %v964_v6, %v963_v1  ;;  %v974_v57 = vsel %vm966_vm13, %v953_v62, %v956_v17  ;;  %v889_v11 = vsel %vm887_vm11, %v888_v18, %v4440_v58  ;;  %v971_v24 = vsel %vm969_vm15, %v959_v16, 2102212464 }
 0x326   : > { %v975_v25 = vsel %vm969_vm15, %v962_v21, 920167782  ;;  %v978_v63 = vsel %vm966_vm13, %v956_v17, %v959_v16  ;;  %v890_v26 = vadd.s32 %v889_v11, %v885_v9  ;;  %vm967_vm0 = vcmp.lt.s32.totalorder %v4412_v4, 2 }
 0x327   : > { %v976_v5 = vsel %vm968_vm14, %v959_v16, %v975_v25  ;;  %v979_v27 = vsel %vm969_vm15, %v965_v22, 1326507024  ;;  %v970_v28 = vsel %vm966_vm13, %v950_v14, %v953_v62  ;;  %v972_v29 = vsel %vm968_vm14, %v956_v17, %v971_v24 }
 0x328   : > { %v977_v20 = vsel %vm967_vm0, %v974_v57, %v976_v5  ;;  %v980_v30 = vsel %vm968_vm14, %v962_v21, %v979_v27  ;;  %v891_v23 = vadd.s32 536870912, %v890_v26  ;;  %v973_v13 = vsel %vm967_vm0, %v970_v28, %v972_v29 }
 0x329   : > { %v981_v19 = vsel %vm967_vm0, %v978_v63, %v980_v30  ;;  %v4457_v31 = vmul.u32.u64.low %v982_v7, %v977_v20  ;;  %v4458_v33 = vmul.u32.u64.high %v982_v7, %v977_v20, %v4457_v31  ;;  %v989_v4 = vmul.u32 %v982_v7, %v973_v13 }
 0x32a   : > { %v4460_v35 = vmul.u32.u64.low %v982_v7, %v981_v19  ;;  %v4461_v38 = vmul.u32.u64.high %v982_v7, %v981_v19, %v4460_v35  ;;  %v892_v42 = vshrl.u32 %v891_v23, 30  ;;  %v886_v9 = vadd.s32 %v4439_v56, %v4436_v55 }
 0x32b   : > { %v992_v47 = vadd.s32 1, %v4458_v33  ;;  %vm832_vm7 = vcmp.lt.s32.totalorder %v4396_v44, 0  ;;  %vm831_vm8 = vcmp.le.f32.partialorder %v830_v12, 0.7853982  ;;  %vm936_vm9 = vcmp.lt.s32.totalorder %v4399_v46, 0 }
 0x32c   : > { %v893_v10 = vshll.u32 %v892_v42, 30  ;;  %vm991_vm1 = vc.u32 %v4461_v38, %v4457_v31  ;;  %v990_v27 = vadd.s32 %v4457_v31, %v4461_v38  ;;  %v916_v56 = vsub.s32 4, %v892_v42 }
 0x32d   : > { %v993_v51 = vsel %vm991_vm1, %v992_v47, %v4458_v33  ;;  %vm935_vm10 = vcmp.le.f32.partialorder %v934_v50, 0.7853982  ;;  %vm922_vm15 = vweird.f32 %v4396_v44 }
 0x32e   : > { %v894_v49 = vsub.s32 %v890_v26, %v893_v10  ;;  %v994_v52 = vadd.s32 %v993_v51, %v989_v4  ;;  %v917_v10 = vsel %vm832_vm7, %v916_v56, %v892_v42 }
 0x330   : > { %v896_v53 = vsub.s32 0, %v894_v49  ;;  %v995_v54 = vadd.s32 536870912, %v994_v52 }
 0x332   : > { %v3108_v58 = vmin.u32 %v896_v53, %v894_v49  ;;  %v996_v62 = vshrl.u32 %v995_v54, 30 }
 0x334   : > { %v898_v17 = vclz %v3108_v58  ;;  %v997_v61 = vshll.u32 %v996_v62, 30 }
 0x336   : > { %v3109_v2 = vadd.s32 4294967294, %v898_v17  ;;  %v998_v3 = vsub.s32 %v994_v52, %v997_v61  ;;  %v1020_v52 = vsub.s32 4, %v996_v62 }
 0x338   : > { %vm3110_vm5 = vcmp.lt.s32.totalorder %v3109_v2, 0  ;;  %v1000_v6 = vsub.s32 0, %v998_v3  ;;  %v1021_v12 = vsel %vm936_vm9, %v1020_v52, %v996_v62 }
 0x339   : > { %v901_v60 = vsel %vm3110_vm5, 0, %v3109_v2  ;;  %v1023_v2 = vsel %vm935_vm10, 0, %v1021_v12 }
 0x33a   : > { %v902_v7 = vsub.s32 32, %v901_v60  ;;  %v906_v14 = vsub.s32 4294967266, %v901_v60  ;;  %v3112_v16 = vmin.u32 %v1000_v6, %v998_v3  ;;  %v903_v1 = vshll.u32 %v894_v49, %v901_v60 }
 0x33b   : > { %v919_v49 = vsel %vm831_vm8, 0, %v917_v10 }
 0x33c   : > { %v904_v18 = vshrl.u32 %v886_v9, %v902_v7  ;;  %v907_v21 = vadd.s32 127, %v906_v14  ;;  %v1002_v22 = vclz %v3112_v16  ;;  %v923_v53 = vadd.s32 3, %v919_v49  ;;  %v1042_v9 = vpop.permute.xlu1 %1041  ;;  %v1064_v49 = vld [vmem:[#allocation8 + $0x10] sm:$0xf] }
 0x33d   : > { %v1027_v14 = vadd.s32 3, %v1023_v2 }
 0x33e   : > { %v905_v57 = vor.u32 %v904_v18, %v903_v1  ;;  %v908_v11 = vshll.u32 %v907_v21, 23  ;;  %v3113_v24 = vadd.s32 4294967294, %v1002_v22  ;;  %v924_v42 = vand.u32 3, %v923_v53 }
 0x33f   : > { %v1028_v1 = vand.u32 3, %v1027_v14 }
 0x340   : > { %v909_v25 = vor.u32 4788187, %v908_v11  ;;  %vm3114_vm6 = vcmp.lt.s32.totalorder %v3113_v24, 0  ;;  %v912_v26 = vcvt.s32.f32 %v905_v57  ;;  %vm929_vm11 = vcmp.eq.s32.totalorder %v924_v42, 2  ;;  %v1053_v57 = vpop.permute.xlu0 %1052  ;;  %v1055_v11 = vpop.permute.xlu1 %1054 }
 0x341   : > { %v1005_v5 = vsel %vm3114_vm6, 0, %v3113_v24  ;;  %vm926_vm13 = vcmp.eq.s32.totalorder %v924_v42, 0  ;;  %vm925_vm14 = vcmp.lt.s32.totalorder %v924_v42, 2  ;;  %vm1033_vm0 = vcmp.eq.s32.totalorder %v1028_v1, 2 }
 0x342   : > { %v910_v63 = vand.u32 2147483647, %v909_v25  ;;  %v1006_v28 = vsub.s32 32, %v1005_v5  ;;  %v1010_v29 = vsub.s32 4294967266, %v1005_v5  ;;  %v1007_v20 = vshll.u32 %v998_v3, %v1005_v5 }
 0x343   : > { %vm1030_vm1 = vcmp.eq.s32.totalorder %v1028_v1, 0  ;;  %vm1029_vm5 = vcmp.lt.s32.totalorder %v1028_v1, 2  ;;  %vm1026_vm6 = vweird.f32 %v4399_v46 }
 0x344   : > { %v913_v55 = vmul.f32 %v912_v26, %v910_v63  ;;  %v1008_v30 = vshrl.u32 %v990_v27, %v1006_v28  ;;  %v1011_v23 = vadd.s32 127, %v1010_v29  ;;  %v1056_v27 = vsel %vm654_vm3, %v1053_v57, %v1055_v11 }
 0x346   : > { %v914_v19 = vxor.u32 2147483648, %v913_v55  ;;  %v1009_v33 = vor.u32 %v1008_v30, %v1007_v20  ;;  %v1012_v35 = vshll.u32 %v1011_v23, 23 }
 0x348   : > { %v915_v13 = vsel %vm832_vm7, %v914_v19, %v913_v55  ;;  %v1013_v47 = vor.u32 4788187, %v1012_v35  ;;  %v1016_v4 = vcvt.s32.f32 %v1009_v33  ;;  %v3809_v35 = vmov 5  }
 0x349   : > { %v918_v31 = vsel %vm831_vm8, %v4396_v44, %v915_v13  ;;  %3442 = vset.pattern.permute.xlu0 %v3809_v35  ;;  %v4489_v13 = vld [vmem:[%s5120_s15] sm:$0xff]  ;;  %vm1243_vm7 = vcmask 15360  }
 0x34a   : > { %3463 = vcosq.f32 %v918_v31  ;;  %v1014_v38 = vand.u32 2147483647, %v1013_v47 }
 0x34b   : > { %3465 = vsinq.f32 %v918_v31 }
 0x34c   : > { %v1017_v51 = vmul.f32 %v1016_v4, %v1014_v38 }
 0x34e   : > { %v1018_v54 = vxor.u32 2147483648, %v1017_v51 }
 0x350   : > { %v1019_v58 = vsel %vm936_vm9, %v1018_v54, %v1017_v51  ;;  %v1173_v54 = vld [vmem:[#allocation8 + $0x14] sm:$0xf] }
 0x351   : > { %v1022_v17 = vsel %vm935_vm10, %v4399_v46, %v1019_v58  ;;  %v1062_v46 = vld [vmem:[#allocation8 + $0xc] sm:$0xf] }
 0x352   : > { %3467 = vcosq.f32 %v1022_v17 }
 0x353   : > { %3469 = vsinq.f32 %v1022_v17 }
 0x354   : > { %v3464_v61 = vpop.eup %3463 }
 0x355   : > { %v3466_v3 = vpop.eup %3465  ;;  %v930_v60 = vxor.u32 2147483648, %v3464_v61 }
 0x356   : > { %v927_v6 = vxor.u32 2147483648, %v3466_v3 }
 0x357   : > { %v931_v7 = vsel %vm929_vm11, %v930_v60, %v3466_v3 }
 0x358   : > { %v928_v16 = vsel %vm926_vm13, %v3464_v61, %v927_v6  ;;  %v3811_v61 = vmov 7  }
 0x359   : > { %v932_v50 = vsel %vm925_vm14, %v928_v16, %v931_v7 }
 0x35a   : > { %v933_v62 = vsel %vm922_vm15, nan, %v932_v50 }
 0x35b   : > { %v1038_v18 = vmul.f32 %v933_v62, %v933_v62 }
 0x35c   : > { %v3468_v21 = vpop.eup %3467 }
 0x35d   : > { %v1044_v22 = vmul.f32 %v1042_v9, %v1038_v18  ;;  %v3470_v24 = vpop.eup %3469  ;;  %v1034_v25 = vxor.u32 2147483648, %v3468_v21 }
 0x35e   : > { %v1031_v63 = vxor.u32 2147483648, %v3470_v24 }
 0x35f   : > { %v1046_v26 = vadd.f32 %v1044_v22, %v4391_v40  ;;  %v1035_v5 = vsel %vm1033_vm0, %v1034_v25, %v3470_v24 }
 0x360   : > { %v1032_v44 = vsel %vm1030_vm1, %v3468_v21, %v1031_v63 }
 0x361   : > { %v1048_v28 = vpack.c.bf16 %v1046_v26, %v1046_v26  ;;  %v1036_v29 = vsel %vm1029_vm5, %v1032_v44, %v1035_v5 }
 0x362   : > { %v1037_v55 = vsel %vm1026_vm6, nan, %v1036_v29 }
 0x363   : > { %v1059_v56 = vmul.bf16 %v1056_v27, %v1048_v28  ;;  %v1039_v20 = vmul.f32 %v1037_v55, %v1037_v55 }
 0x365   : > { %1067 = vrot.lane.b32.xlu0 %v1059_v56, %s3805_s5  ;;  %v1045_v30 = vmul.f32 %v1042_v9, %v1039_v20  ;;  %v1126_v33 = vsel %vm660_vm12, %v1059_v56, 0 }
 0x367   : > { %v1047_v23 = vadd.f32 %v1045_v30, %v4393_v43  ;;  %v3810_v43 = vmov 6  }
 0x368   : > { %3443 = vset.pattern.permute.xlu1 %v3810_v43 }
 0x369   : > { %1174 = vrot.lane.b32.xlu0 %v1059_v56, %s3804_s17  ;;  %v1049_v40 = vpack.c.bf16 %v1047_v23, %v1047_v23 }
 0x36b   : > { %v1060_v19 = vmul.bf16 %v1055_v11, %v1049_v40 }
 0x36d   : > { %1069 = vrot.lane.b32.xlu1 %v1060_v19, %s3805_s5  ;;  %3117 = vmatprep.subr.msk.bf16.mxu0 %vm660_vm12, %v1060_v19 }
 0x36e   : > { %1132 = vmatpush1.bf16.msra.mxu0 %v1126_v33  ;;  %1232 = vperm.xlu0 %3442, %v4489_v13  }
 0x371   : > { %1176 = vrot.lane.b32.xlu1 %v1060_v19, %s3804_s17  ;;  %3118 = vmatmul.mubr.msk.bf16.vlgmr.msra.gmra.mrb[8].mxu0 %vm656_vm2, %v1062_v46 }
 0x372   : > { %1530 = vmatprep.mubr.bf16.mxu0 %v3794_v0 }
 0x375   : > { %1250 = vperm.xlu1 %3443, %v4489_v13  }
 0x379   : > { %3444 = vset.pattern.permute.xlu1 %v3811_v61 }
 0x3d7   : > { %v1068_v10 = vpop.permute.xlu0 %1067 }
 0x3db   : > { %v1175_v4 = vpop.permute.xlu0 %1174 }
 0x3df   : > { %v1070_v47 = vpop.permute.xlu1 %1069 }
 0x3e0   : > { %v1071_v31 = vsel %vm654_vm3, %v1068_v10, %v1070_v47  ;;  %3115 = vmatprep.subr.msk.bf16.mxu1 %vm660_vm12, %v1070_v47 }
 0x3e1   : > { %v1076_v38 = vsel %vm660_vm12, %v1071_v31, 0 }
 0x3e2   : > { %1082 = vmatpush1.bf16.msra.mxu1 %v1076_v38 }
 0x3e3   : > { %v1177_v51 = vpop.permute.xlu1 %1176 }
 0x3e4   : > { %v1178_v52 = vsel %vm764_vm4, %v1175_v4, %v1177_v51  ;;  %3119 = vmatprep.subr.msk.bf16.mxu1 %vm660_vm12, %v1177_v51 }
 0x3e5   : > { %v1183_v53 = vsel %vm660_vm12, %v1178_v52, 0  ;;  %3116 = vmatmul.mubr.msk.bf16.vlgmr.msra.gmra.mrb[4].mxu1 %vm656_vm2, %v1064_v49 }
 0x3e6   : > { %1189 = vmatpush1.bf16.msra.mxu1 %v1183_v53  ;;  %1220 = vmatprep.mubr.bf16.mxu1 %v3794_v0 }
 0x3ed   : > { %3120 = vmatmul.mubr.msk.bf16.vlgmr.msra.gmra.mrb[8].mxu1 %vm656_vm2, %v1173_v54  ;;  %v1233_v16 = vpop.permute.xlu0 %1232 }
 0x3ee   : > { %1585 = vmatprep.mubr.bf16.mxu1 %v3794_v0 }
 0x3f4   : > { %v1251_v11 = vpop.permute.xlu1 %1250 }
 0x444   : > { %v1165_v58 = vpop.f32.mrb[8].mxu0 }
 0x445   : > { %v1167_v12 = vpop.f32.mrb[9].mxu0 }
 0x446   : > { %v1169_v42 = vpop.f32.mrb[10].mxu0 }
 0x447   : > { %v1170_v17 = vpop.f32.mrb[11].mxu0 }
 0x4b8   : > { %v1115_v2 = vpop.f32.mrb[4].mxu1 }
 0x4b9   : > { %v1166_v3 = vadd.f32 %v1165_v58, %v1115_v2  ;;  %v1117_v60 = vpop.f32.mrb[5].mxu1 }
 0x4ba   : > { %v1168_v6 = vadd.f32 %v1167_v12, %v1117_v60  ;;  %v1119_v9 = vpop.f32.mrb[6].mxu1 }
 0x4bb   : > { %v1120_v7 = vpop.f32.mrb[7].mxu1 }
 0x4c0   : > { %v1222_v14 = vpop.f32.mrb[8].mxu1 }
 0x4c1   : > { %v1229_v50 = vadd.f32 %v1222_v14, %v1166_v3  ;;  %v1224_v62 = vpop.f32.mrb[9].mxu1 }
 0x4c2   : > { %v1230_v1 = vadd.f32 %v1224_v62, %v1168_v6  ;;  %v1226_v18 = vpop.f32.mrb[10].mxu1 }
 0x4c3   : > { %v1235_v21 = vadd.f32 %v1233_v16, %v1229_v50  ;;  %v1227_v22 = vpop.f32.mrb[11].mxu1 }
 0x4c4   : > { %v1236_v57 = vadd.f32 %v1233_v16, %v1230_v1 }
 0x4c5   : > { %1239 = vrot.lane.b32.xlu1 %v1235_v21, %s3812_s21 }
 0x4c6   : > { %1241 = vrot.lane.b32.xlu0 %v1236_v57, %s3812_s21 }
 0x4c9   : > { %1466 = vperm.xlu1 %3444, %v4489_v13  }
 0x537   : > { %v1240_v24 = vpop.permute.xlu1 %1239 }
 0x538   : > { %v4508_v25 = vadd.f32 %v1240_v24, %v4247_v15  ;;  %v1242_v63 = vpop.permute.xlu0 %1241 }
 0x539   : > { %v1244_v26 = vsel %vm1243_vm7, %v1240_v24, %v1242_v63 }
 0x53a   : > { %v4511_v5 = vmul.f32 %v1251_v11, %v4508_v25  ;;  %v4514_v27 = vadd.f32 %v1244_v26, %v4240_v8 }
 0x53c   : > { %v1258_v44 = vand.u32 2139095040, %v4511_v5  ;;  %v4518_v28 = vmul.f32 %v1251_v11, %v4514_v27  ;;  %v1255_v29 = vand.u32 2147483647, %v4511_v5 }
 0x53e   : > { %v1259_v55 = vshrl.u32 %v1258_v44, 23  ;;  %v1362_v56 = vand.u32 2139095040, %v4518_v28  ;;  %v1262_v30 = vand.u32 8388607, %v1255_v29  ;;  %v1359_v23 = vand.u32 2147483647, %v4518_v28 }
 0x540   : > { %v3121_v15 = vadd.s32 4294967169, %v1259_v55  ;;  %v1363_v20 = vshrl.u32 %v1362_v56, 23  ;;  %v1263_v33 = vor.u32 8388608, %v1262_v30  ;;  %v1366_v35 = vand.u32 8388607, %v1359_v23 }
 0x542   : > { %v1265_v40 = vadd.s32 1, %v3121_v15  ;;  %v3125_v8 = vadd.s32 4294967169, %v1363_v20  ;;  %v4527_v4 = vshll.u32 %v1263_v33, 8  ;;  %v1367_v53 = vor.u32 8388608, %v1366_v35 }
 0x544   : > { %vm1266_vm8 = vcmp.gt.s32.totalorder %v1265_v40, 0  ;;  %v1369_v19 = vadd.s32 1, %v3125_v8  ;;  %v1407_v56 = vshll.u32 %v1367_v53, 8 }
 0x545   : > { %v1267_v46 = vsel %vm1266_vm8, %v1265_v40, 0 }
 0x546   : > { %v1269_v43 = vand.u32 31, %v1267_v46  ;;  %vm1370_vm9 = vcmp.gt.s32.totalorder %v1369_v19, 0  ;;  %v1268_v47 = vshrl.u32 %v1267_v46, 5 }
 0x547   : > { %v1371_v10 = vsel %vm1370_vm9, %v1369_v19, 0 }
 0x548   : > { %v1270_v31 = vsub.s32 32, %v1269_v43  ;;  %v1373_v38 = vand.u32 31, %v1371_v10  ;;  %v1272_v49 = vshll.u32 %v3797_v32, %v1269_v43  ;;  %v1275_v51 = vshll.u32 %v3798_v34, %v1269_v43 }
 0x549   : > { %v1278_v52 = vshll.u32 %v3799_v37, %v1269_v43  ;;  %v1281_v12 = vshll.u32 %v3800_v39, %v1269_v43  ;;  %v1284_v42 = vshll.u32 %v3801_v41, %v1269_v43  ;;  %vm1287_vm10 = vcmp.lt.s32.totalorder %v1268_v47, 1 }
 0x54a   : > { %v1273_v54 = vshrl.u32 %v3798_v34, %v1270_v31  ;;  %v1276_v58 = vshrl.u32 %v3799_v37, %v1270_v31  ;;  %v1374_v17 = vsub.s32 32, %v1373_v38  ;;  %v1279_v61 = vshrl.u32 %v3800_v39, %v1270_v31 }
 0x54b   : > { %v1282_v2 = vshrl.u32 %v3801_v41, %v1270_v31  ;;  %v1285_v3 = vshrl.u32 %v3802_v48, %v1270_v31  ;;  %v1271_v60 = vshrl.u32 %v3797_v32, %v1270_v31  ;;  %vm1288_vm11 = vcmp.lt.s32.totalorder %v1268_v47, 2 }
 0x54c   : > { %v1274_v6 = vor.u32 %v1273_v54, %v1272_v49  ;;  %v1277_v9 = vor.u32 %v1276_v58, %v1275_v51  ;;  %v1280_v7 = vor.u32 %v1279_v61, %v1278_v52  ;;  %vm1289_vm13 = vcmp.lt.s32.totalorder %v1268_v47, 3 }
 0x54d   : > { %v1283_v14 = vor.u32 %v1282_v2, %v1281_v12  ;;  %v1286_v16 = vor.u32 %v1285_v3, %v1284_v42  ;;  %vm1290_vm14 = vcmp.lt.s32.totalorder %v1268_v47, 4  ;;  %v1377_v63 = vshrl.u32 %v3798_v34, %v1374_v17 }
 0x54e   : > { %v1291_v50 = vsel %vm1287_vm10, %v1271_v60, %v1274_v6  ;;  %v1295_v62 = vsel %vm1287_vm10, %v1274_v6, %v1277_v9  ;;  %v1292_v1 = vsel %vm1290_vm14, %v1280_v7, 2102212464  ;;  %v1299_v21 = vsel %vm1287_vm10, %v1277_v9, %v1280_v7 }
 0x54f   : > { %v1296_v18 = vsel %vm1290_vm14, %v1283_v14, 920167782  ;;  %v1300_v22 = vsel %vm1290_vm14, %v1286_v16, 1326507024  ;;  %v1293_v57 = vsel %vm1289_vm13, %v1277_v9, %v1292_v1  ;;  %v1376_v55 = vshll.u32 %v3797_v32, %v1373_v38 }
 0x550   : > { %v1297_v11 = vsel %vm1289_vm13, %v1280_v7, %v1296_v18  ;;  %v1301_v24 = vsel %vm1289_vm13, %v1283_v14, %v1300_v22  ;;  %v1372_v8 = vshrl.u32 %v1371_v10, 5  ;;  %v1294_v19 = vsel %vm1288_vm11, %v1291_v50, %v1293_v57 }
 0x551   : > { %v1298_v26 = vsel %vm1288_vm11, %v1295_v62, %v1297_v11  ;;  %v1302_v44 = vsel %vm1288_vm11, %v1299_v21, %v1301_v24  ;;  %v1379_v33 = vshll.u32 %v3798_v34, %v1373_v38  ;;  %v1380_v46 = vshrl.u32 %v3799_v37, %v1374_v17 }
 0x552   : > { %v4545_v15 = vmul.u32.u64.low %v4527_v4, %v1302_v44  ;;  %v4546_v20 = vmul.u32.u64.high %v4527_v4, %v1302_v44, %v4545_v15  ;;  %v4549_v30 = vmul.u32.u64.low %v4527_v4, %v1298_v26  ;;  %v4550_v40 = vmul.u32.u64.high %v4527_v4, %v1298_v26, %v4549_v30 }
 0x553   : > { %v1378_v35 = vor.u32 %v1377_v63, %v1376_v55  ;;  %v1382_v43 = vshll.u32 %v3799_v37, %v1373_v38  ;;  %v1383_v31 = vshrl.u32 %v3800_v39, %v1374_v17  ;;  %v1386_v49 = vshrl.u32 %v3801_v41, %v1374_v17 }
 0x554   : > { %v1381_v51 = vor.u32 %v1380_v46, %v1379_v33  ;;  %v1385_v52 = vshll.u32 %v3800_v39, %v1373_v38  ;;  %v1388_v53 = vshll.u32 %v3801_v41, %v1373_v38  ;;  %v1389_v10 = vshrl.u32 %v3802_v48, %v1374_v17 }
 0x555   : > { %v1310_v47 = vmul.u32 %v4527_v4, %v1294_v19  ;;  %vm1312_vm15 = vc.u32 %v4546_v20, %v4549_v30  ;;  %v1313_v54 = vadd.s32 1, %v4550_v40  ;;  %v1384_v58 = vor.u32 %v1383_v31, %v1382_v43 }
 0x556   : > { %v1387_v12 = vor.u32 %v1386_v49, %v1385_v52  ;;  %v1390_v42 = vor.u32 %v1389_v10, %v1388_v53  ;;  %vm1391_vm0 = vcmp.lt.s32.totalorder %v1372_v8, 1  ;;  %vm1394_vm1 = vcmp.lt.s32.totalorder %v1372_v8, 4 }
 0x557   : > { %v1314_v61 = vsel %vm1312_vm15, %v1313_v54, %v4550_v40  ;;  %v1375_v2 = vshrl.u32 %v3797_v32, %v1374_v17  ;;  %v1396_v3 = vsel %vm1394_vm1, %v1384_v58, 2102212464  ;;  %v1399_v38 = vsel %vm1391_vm0, %v1378_v35, %v1381_v51 }
 0x558   : > { %v1315_v60 = vadd.s32 %v1314_v61, %v1310_v47  ;;  %vm1393_vm5 = vcmp.lt.s32.totalorder %v1372_v8, 3  ;;  %v1400_v6 = vsel %vm1394_vm1, %v1387_v12, 920167782  ;;  %v1403_v4 = vsel %vm1391_vm0, %v1381_v51, %v1384_v58 }
 0x559   : > { %vm1392_vm6 = vcmp.lt.s32.totalorder %v1372_v8, 2  ;;  %v1395_v9 = vsel %vm1391_vm0, %v1375_v2, %v1378_v35  ;;  %v1401_v7 = vsel %vm1393_vm5, %v1384_v58, %v1400_v6  ;;  %v1404_v14 = vsel %vm1394_vm1, %v1390_v42, 1326507024 }
 0x55a   : > { %v1316_v16 = vadd.s32 536870912, %v1315_v60  ;;  %v1397_v50 = vsel %vm1393_vm5, %v1381_v51, %v1396_v3  ;;  %v1402_v62 = vsel %vm1392_vm6, %v1399_v38, %v1401_v7  ;;  %v1405_v1 = vsel %vm1393_vm5, %v1387_v12, %v1404_v14 }
 0x55b   : > { %v1406_v18 = vsel %vm1392_vm6, %v1403_v4, %v1405_v1  ;;  %v4568_v21 = vmul.u32.u64.low %v1407_v56, %v1402_v62  ;;  %v4569_v22 = vmul.u32.u64.high %v1407_v56, %v1402_v62, %v4568_v21  ;;  %v1398_v24 = vsel %vm1392_vm6, %v1395_v9, %v1397_v50 }
 0x55c   : > { %v1317_v57 = vshrl.u32 %v1316_v16, 30  ;;  %v4571_v17 = vmul.u32.u64.low %v1407_v56, %v1406_v18  ;;  %v4572_v11 = vmul.u32.u64.high %v1407_v56, %v1406_v18, %v4571_v17  ;;  %v1414_v55 = vmul.u32 %v1407_v56, %v1398_v24 }
 0x55d   : > { %v1417_v26 = vadd.s32 1, %v4569_v22  ;;  %v1311_v52 = vadd.s32 %v4549_v30, %v4546_v20  ;;  %vm1257_vm10 = vcmp.lt.s32.totalorder %v4511_v5, 0  ;;  %vm1256_vm11 = vcmp.le.f32.partialorder %v1255_v29, 0.7853982 }
 0x55e   : > { %v1318_v63 = vshll.u32 %v1317_v57, 30  ;;  %vm1416_vm7 = vc.u32 %v4572_v11, %v4568_v21  ;;  %v1341_v9 = vsub.s32 4, %v1317_v57  ;;  %v1415_v20 = vadd.s32 %v4568_v21, %v4572_v11 }
 0x55f   : > { %v1418_v15 = vsel %vm1416_vm7, %v1417_v26, %v4569_v22  ;;  %vm1361_vm13 = vcmp.lt.s32.totalorder %v4518_v28, 0  ;;  %vm4587_vm14 = vcmp.le.f32.partialorder %v1359_v23, 0.7853982  ;;  %vm1347_vm5 = vweird.f32 %v4511_v5 }
 0x560   : > { %v1319_v44 = vsub.s32 %v1315_v60, %v1318_v63  ;;  %v1419_v8 = vadd.s32 %v1418_v15, %v1414_v55  ;;  %v1342_v22 = vsel %vm1257_vm10, %v1341_v9, %v1317_v57 }
 0x561   : > { %v1344_v26 = vsel %vm1256_vm11, 0, %v1342_v22 }
 0x562   : > { %v1321_v40 = vsub.s32 0, %v1319_v44  ;;  %v1420_v33 = vadd.s32 536870912, %v1419_v8  ;;  %v1348_v55 = vadd.s32 3, %v1344_v26  ;;  %v1480_v26 = vld [vmem:[#allocation8 + $0x1c] sm:$0xf] }
 0x564   : > { %v3122_v19 = vmin.u32 %v1321_v40, %v1319_v44  ;;  %v1421_v35 = vshrl.u32 %v1420_v33, 30 }
 0x566   : > { %v1323_v46 = vclz %v3122_v19  ;;  %v1422_v31 = vshll.u32 %v1421_v35, 30  ;;  %v1445_v40 = vsub.s32 4, %v1421_v35  ;;  %v1349_v19 = vand.u32 3, %v1348_v55 }
 0x568   : > { %v3123_v43 = vadd.s32 4294967294, %v1323_v46  ;;  %v1423_v51 = vsub.s32 %v1419_v8, %v1422_v31  ;;  %v1446_v33 = vsel %vm1361_vm13, %v1445_v40, %v1421_v35  ;;  %vm1354_vm15 = vcmp.eq.s32.totalorder %v1349_v19, 2 }
 0x569   : > { %vm1351_vm0 = vcmp.eq.s32.totalorder %v1349_v19, 0  ;;  %vm1350_vm1 = vcmp.lt.s32.totalorder %v1349_v19, 2  ;;  %v1595_v19 = vld [vmem:[#allocation8 + $0x20] sm:$0xf] }
 0x56a   : > { %vm3124_vm8 = vcmp.lt.s32.totalorder %v3123_v43, 0  ;;  %v1425_v10 = vsub.s32 0, %v1423_v51 }
 0x56b   : > { %v1326_v49 = vsel %vm3124_vm8, 0, %v3123_v43 }
 0x56c   : > { %v1327_v53 = vsub.s32 32, %v1326_v49  ;;  %v1331_v56 = vsub.s32 4294967266, %v1326_v49  ;;  %v1328_v47 = vshll.u32 %v1319_v44, %v1326_v49  ;;  %v3126_v12 = vmin.u32 %v1425_v10, %v1423_v51 }
 0x56e   : > { %v1329_v54 = vshrl.u32 %v1311_v52, %v1327_v53  ;;  %v1332_v58 = vadd.s32 127, %v1331_v56  ;;  %v1427_v2 = vclz %v3126_v12  ;;  %v1448_v52 = vsel %vm4587_vm14, 0, %v1446_v33 }
 0x56f   : > { %v1452_v56 = vadd.s32 3, %v1448_v52 }
 0x570   : > { %v1330_v42 = vor.u32 %v1329_v54, %v1328_v47  ;;  %v1333_v61 = vshll.u32 %v1332_v58, 23  ;;  %v3127_v38 = vadd.s32 4294967294, %v1427_v2  ;;  %v1467_v47 = vpop.permute.xlu1 %1466 }
 0x571   : > { %v1453_v58 = vand.u32 3, %v1452_v56 }
 0x572   : > { %v1334_v3 = vor.u32 4788187, %v1333_v61  ;;  %v1337_v6 = vcvt.s32.f32 %v1330_v42  ;;  %vm3128_vm9 = vcmp.lt.s32.totalorder %v3127_v38, 0 }
 0x573   : > { %v1430_v7 = vsel %vm3128_vm9, 0, %v3127_v38  ;;  %vm1458_vm6 = vcmp.eq.s32.totalorder %v1453_v58, 2  ;;  %vm1455_vm7 = vcmp.eq.s32.totalorder %v1453_v58, 0  ;;  %vm1454_vm8 = vcmp.lt.s32.totalorder %v1453_v58, 2 }
 0x574   : > { %v1335_v60 = vand.u32 2147483647, %v1334_v3  ;;  %v1431_v30 = vsub.s32 32, %v1430_v7  ;;  %v1435_v14 = vsub.s32 4294967266, %v1430_v7  ;;  %v1432_v50 = vshll.u32 %v1423_v51, %v1430_v7 }
 0x575   : > { %vm1451_vm9 = vweird.f32 %v4518_v28 }
 0x576   : > { %v1338_v4 = vmul.f32 %v1337_v6, %v1335_v60  ;;  %v1433_v62 = vshrl.u32 %v1415_v20, %v1431_v30  ;;  %v1436_v1 = vadd.s32 127, %v1435_v14 }
 0x578   : > { %v1339_v16 = vxor.u32 2147483648, %v1338_v4  ;;  %v1434_v24 = vor.u32 %v1433_v62, %v1432_v50  ;;  %v1437_v63 = vshll.u32 %v1436_v1, 23  ;;  %v3815_v62 = vmov 8  }
 0x579   : > { %3445 = vset.pattern.permute.xlu0 %v3815_v62  ;;  %v3816_v1 = vmov 9  }
 0x57a   : > { %v1340_v18 = vsel %vm1257_vm10, %v1339_v16, %v1338_v4  ;;  %v1438_v21 = vor.u32 4788187, %v1437_v63  ;;  %v1441_v44 = vcvt.s32.f32 %v1434_v24  ;;  %3446 = vset.pattern.permute.xlu1 %v3816_v1  ;;  %vm1487_vm10 = vcmask 1006592  }
 0x57b   : > { %v1343_v17 = vsel %vm1256_vm11, %v4511_v5, %v1340_v18  ;;  %vm1600_vm11 = vcmask 982016  }
 0x57c   : > { %3471 = vcosq.f32 %v1343_v17  ;;  %v1439_v11 = vand.u32 2147483647, %v1438_v21 }
 0x57d   : > { %3473 = vsinq.f32 %v1343_v17 }
 0x57e   : > { %v1442_v15 = vmul.f32 %v1441_v44, %v1439_v11  ;;  %v1478_v44 = vld [vmem:[#allocation8 + $0x18] sm:$0xf] }
 0x580   : > { %v1443_v8 = vxor.u32 2147483648, %v1442_v15 }
 0x582   : > { %v1444_v57 = vsel %vm1361_vm13, %v1443_v8, %v1442_v15 }
 0x583   : > { %v1447_v43 = vsel %vm4587_vm14, %v4518_v28, %v1444_v57  ;;  %v3817_v28 = vmov 10  }
 0x584   : > { %3475 = vcosq.f32 %v1447_v43 }
 0x585   : > { %3477 = vsinq.f32 %v1447_v43 }
 0x586   : > { %v3472_v46 = vpop.eup %3471 }
 0x587   : > { %v3474_v31 = vpop.eup %3473  ;;  %v1355_v49 = vxor.u32 2147483648, %v3472_v46 }
 0x588   : > { %v1352_v51 = vxor.u32 2147483648, %v3474_v31 }
 0x589   : > { %v1356_v23 = vsel %vm1354_vm15, %v1355_v49, %v3474_v31 }
 0x58a   : > { %v1353_v53 = vsel %vm1351_vm0, %v3472_v46, %v1352_v51 }
 0x58b   : > { %v1357_v35 = vsel %vm1350_vm1, %v1353_v53, %v1356_v23 }
 0x58c   : > { %v1358_v10 = vsel %vm1347_vm5, nan, %v1357_v35 }
 0x58d   : > { %v1463_v54 = vmul.f32 %v1358_v10, %v1358_v10 }
 0x58e   : > { %v3476_v42 = vpop.eup %3475 }
 0x58f   : > { %v1469_v12 = vmul.f32 %v1467_v47, %v1463_v54  ;;  %v3478_v2 = vpop.eup %3477  ;;  %v1459_v3 = vxor.u32 2147483648, %v3476_v42 }
 0x590   : > { %v1456_v38 = vxor.u32 2147483648, %v3478_v2 }
 0x591   : > { %v1471_v61 = vadd.f32 %v1469_v12, %v4508_v25  ;;  %v1460_v6 = vsel %vm1458_vm6, %v1459_v3, %v3478_v2 }
 0x592   : > { %v1457_v4 = vsel %vm1455_vm7, %v3476_v42, %v1456_v38 }
 0x593   : > { %v1473_v60 = vpack.c.bf16 %v1471_v61, %v1471_v61  ;;  %v1461_v9 = vsel %vm1454_vm8, %v1457_v4, %v1460_v6 }
 0x594   : > { %v1462_v7 = vsel %vm1451_vm9, nan, %v1461_v9 }
 0x595   : > { %v1475_v5 = vmul.bf16 %v1473_v60, %v4364_v59  ;;  %v1464_v20 = vmul.f32 %v1462_v7, %v1462_v7 }
 0x597   : > { %1483 = vrot.lane.b32.xlu0 %v1475_v5, %s3813_s28  ;;  %v1470_v30 = vmul.f32 %v1467_v47, %v1464_v20 }
 0x599   : > { %v1472_v14 = vadd.f32 %v1470_v30, %v4514_v27 }
 0x59b   : > { %1539 = vrot.lane.b32.xlu0 %v1475_v5, %s3804_s17  ;;  %v1474_v16 = vpack.c.bf16 %v1472_v14, %v1472_v14 }
 0x59d   : > { %v1476_v50 = vmul.bf16 %v1474_v16, %v4357_v45 }
 0x59f   : > { %1596 = vrot.lane.b32.xlu0 %v1475_v5, %s3814_s3  ;;  %1485 = vrot.lane.b32.xlu1 %v1476_v50, %s3813_s28 }
 0x5a3   : > { %1655 = vperm.xlu0 %3445, %v4489_v13   ;;  %1541 = vrot.lane.b32.xlu1 %v1476_v50, %s3804_s17 }
 0x5a7   : > { %1886 = vrot.lane.b32.xlu0 %v4364_v59, %s3813_s28  ;;  %1598 = vrot.lane.b32.xlu1 %v1476_v50, %s3814_s3 }
 0x5ab   : > { %1661 = vperm.xlu1 %3446, %v4489_v13  }
 0x5af   : > { %3447 = vset.pattern.permute.xlu1 %v3817_v28 }
 0x5b0   : > { %1877 = vperm.xlu1 %3447, %v4489_v13  }
 0x5b4   : > { %1888 = vrot.lane.b32.xlu1 %v4357_v45, %s3813_s28  ;;  %s5131_s28 = sld [smem:[#allocation21_spill]] }
 0x5ba   : > { %p5134_p3 = scmp.ne.s32.totalorder %s5131_s28, 0 }
 0x609   : > { %v1484_v18 = vpop.permute.xlu0 %1483 }
 0x60d   : > { %v1540_v63 = vpop.permute.xlu0 %1539 }
 0x611   : > { %v1486_v22 = vpop.permute.xlu1 %1485  ;;  %v1597_v55 = vpop.permute.xlu0 %1596 }
 0x612   : > { %v1488_v17 = vsel %vm1487_vm10, %v1484_v18, %v1486_v22  ;;  %3129 = vmatprep.subr.msk.bf16.mxu0 %vm660_vm12, %v1486_v22 }
 0x613   : > { %v1493_v24 = vsel %vm660_vm12, %v1488_v17, 0 }
 0x614   : > { %1499 = vmatpush1.bf16.msra.mxu0 %v1493_v24 }
 0x615   : > { %v1542_v21 = vpop.permute.xlu1 %1541 }
 0x616   : > { %v1543_v11 = vsel %vm764_vm4, %v1540_v63, %v1542_v21  ;;  %3131 = vmatprep.subr.msk.bf16.mxu1 %vm660_vm12, %v1542_v21 }
 0x617   : > { %v1548_v13 = vsel %vm660_vm12, %v1543_v11, 0  ;;  %3130 = vmatmul.mubr.msk.bf16.vlgmr.msra.gmra.mrb[12].mxu0 %vm656_vm2, %v1480_v26 }
 0x618   : > { %1554 = vmatpush1.bf16.msra.mxu1 %v1548_v13  ;;  %1643 = vmatprep.mubr.bf16.mxu0 %v3794_v0 }
 0x619   : > { %v1599_v15 = vpop.permute.xlu1 %1598 }
 0x61a   : > { %v1601_v40 = vsel %vm1600_vm11, %v1597_v55, %v1599_v15  ;;  %3133 = vmatprep.subr.msk.bf16.mxu0 %vm660_vm12, %v1599_v15 }
 0x61b   : > { %v1606_v8 = vsel %vm660_vm12, %v1601_v40, 0  ;;  %3132 = vmatmul.mubr.msk.bf16.vlgmr.msra.gmra.mrb[12].mxu1 %vm656_vm2, %v1478_v44 }
 0x61c   : > { %1612 = vmatpush1.bf16.msra.mxu0 %v1606_v8  ;;  %1947 = vmatprep.mubr.bf16.mxu1 %v3794_v0 }
 0x61f   : > { %3134 = vmatmul.mubr.msk.bf16.vlgmr.msra.gmra.mrb[16].mxu0 %vm656_vm2, %v1595_v19 }
 0x620   : > { %1997 = vmatprep.mubr.bf16.mxu0 %v3794_v0 }
 0x622   : > { %v1656_v35 = vpop.permute.xlu0 %1655 }
 0x62a   : > { %v1662_v58 = vpop.permute.xlu1 %1661 }
 0x6ea   : > { %v1532_v29 = vpop.f32.mrb[12].mxu0 }
 0x6eb   : > { %v1534_v57 = vpop.f32.mrb[13].mxu0 }
 0x6ec   : > { %v1536_v33 = vpop.f32.mrb[14].mxu0 }
 0x6ed   : > { %v1537_v46 = vpop.f32.mrb[15].mxu0 }
 0x6ee   : > { %v1587_v43 = vpop.f32.mrb[12].mxu1 }
 0x6ef   : > { %v1588_v31 = vadd.f32 %v1587_v43, %v1532_v29  ;;  %v1589_v49 = vpop.f32.mrb[13].mxu1 }
 0x6f0   : > { %v1590_v51 = vadd.f32 %v1589_v49, %v1534_v57  ;;  %v1591_v52 = vpop.f32.mrb[14].mxu1 }
 0x6f1   : > { %v1592_v23 = vpop.f32.mrb[15].mxu1 }
 0x6f2   : > { %v1645_v53 = vpop.f32.mrb[16].mxu0 }
 0x6f3   : > { %v1652_v56 = vadd.f32 %v1645_v53, %v1588_v31  ;;  %v1647_v10 = vpop.f32.mrb[17].mxu0 }
 0x6f4   : > { %v1653_v47 = vadd.f32 %v1647_v10, %v1590_v51  ;;  %v1649_v54 = vpop.f32.mrb[18].mxu0 }
 0x6f5   : > { %v4623_v12 = vadd.f32 %v1656_v35, %v1652_v56  ;;  %v1650_v42 = vpop.f32.mrb[19].mxu0 }
 0x6f6   : > { %v4625_v61 = vadd.f32 %v1656_v35, %v1653_v47 }
 0x6f7   : > { %v4628_v2 = vmul.f32 %v1662_v58, %v4623_v12 }
 0x6f8   : > { %v4631_v3 = vmul.f32 %v1662_v58, %v4625_v61 }
 0x6f9   : > { %v1666_v38 = vand.u32 2147483647, %v4628_v2  ;;  %v1669_v60 = vand.u32 2139095040, %v4628_v2 }
 0x6fa   : > { %v1773_v6 = vand.u32 2139095040, %v4631_v3  ;;  %v1770_v9 = vand.u32 2147483647, %v4631_v3 }
 0x6fb   : > { %v1670_v4 = vshrl.u32 %v1669_v60, 23  ;;  %v1673_v5 = vand.u32 8388607, %v1666_v38 }
 0x6fc   : > { %v1774_v7 = vshrl.u32 %v1773_v6, 23  ;;  %v1777_v50 = vand.u32 8388607, %v1770_v9 }
 0x6fd   : > { %v3135_v20 = vadd.s32 4294967169, %v1670_v4  ;;  %v1674_v16 = vor.u32 8388608, %v1673_v5 }
 0x6fe   : > { %v3139_v30 = vadd.s32 4294967169, %v1774_v7  ;;  %v1778_v24 = vor.u32 8388608, %v1777_v50 }
 0x6ff   : > { %v1676_v14 = vadd.s32 1, %v3135_v20  ;;  %v4641_v17 = vshll.u32 %v1674_v16, 8 }
 0x700   : > { %v1780_v62 = vadd.s32 1, %v3139_v30 }
 0x701   : > { %vm1677_vm13 = vcmp.gt.s32.totalorder %v1676_v14, 0 }
 0x702   : > { %v1678_v1 = vsel %vm1677_vm13, %v1676_v14, 0  ;;  %vm1781_vm14 = vcmp.gt.s32.totalorder %v1780_v62, 0 }
 0x703   : > { %v1679_v28 = vshrl.u32 %v1678_v1, 5  ;;  %v1680_v18 = vand.u32 31, %v1678_v1  ;;  %v1782_v22 = vsel %vm1781_vm14, %v1780_v62, 0 }
 0x704   : > { %v4644_v21 = vshrl.u32 %v1782_v22, 5  ;;  %v1784_v11 = vand.u32 31, %v1782_v22 }
 0x705   : > { %v1681_v63 = vsub.s32 32, %v1680_v18  ;;  %v1683_v26 = vshll.u32 %v3797_v32, %v1680_v18  ;;  %v1686_v13 = vshll.u32 %v3798_v34, %v1680_v18  ;;  %v1689_v44 = vshll.u32 %v3799_v37, %v1680_v18 }
 0x706   : > { %v1692_v55 = vshll.u32 %v3800_v39, %v1680_v18  ;;  %v1695_v15 = vshll.u32 %v3801_v41, %v1680_v18  ;;  %vm1698_vm15 = vcmp.lt.s32.totalorder %v1679_v28, 1  ;;  %vm1699_vm0 = vcmp.lt.s32.totalorder %v1679_v28, 2 }
 0x707   : > { %v1684_v40 = vshrl.u32 %v3798_v34, %v1681_v63  ;;  %v1687_v8 = vshrl.u32 %v3799_v37, %v1681_v63  ;;  %v1690_v19 = vshrl.u32 %v3800_v39, %v1681_v63  ;;  %v1682_v29 = vshrl.u32 %v3797_v32, %v1681_v63 }
 0x708   : > { %v1693_v57 = vshrl.u32 %v3801_v41, %v1681_v63  ;;  %v1696_v33 = vshrl.u32 %v3802_v48, %v1681_v63  ;;  %v1785_v49 = vsub.s32 32, %v1784_v11  ;;  %vm1700_vm1 = vcmp.lt.s32.totalorder %v1679_v28, 3 }
 0x709   : > { %v1685_v46 = vor.u32 %v1684_v40, %v1683_v26  ;;  %v1688_v43 = vor.u32 %v1687_v8, %v1686_v13  ;;  %v1691_v31 = vor.u32 %v1690_v19, %v1689_v44  ;;  %vm1701_vm5 = vcmp.lt.s32.totalorder %v1679_v28, 4 }
 0x70a   : > { %v1694_v51 = vor.u32 %v1693_v57, %v1692_v55  ;;  %v1697_v52 = vor.u32 %v1696_v33, %v1695_v15  ;;  %v1787_v58 = vshll.u32 %v3797_v32, %v1784_v11  ;;  %v1788_v6 = vshrl.u32 %v3798_v34, %v1785_v49 }
 0x70b   : > { %v1702_v23 = vsel %vm1698_vm15, %v1682_v29, %v1685_v46  ;;  %v1703_v53 = vsel %vm1701_vm5, %v1691_v31, 2102212464  ;;  %v1706_v35 = vsel %vm1698_vm15, %v1685_v46, %v1688_v43  ;;  %v1710_v56 = vsel %vm1698_vm15, %v1688_v43, %v1691_v31 }
 0x70c   : > { %v1704_v10 = vsel %vm1700_vm1, %v1688_v43, %v1703_v53  ;;  %v1707_v47 = vsel %vm1701_vm5, %v1694_v51, 920167782  ;;  %v1711_v54 = vsel %vm1701_vm5, %v1697_v52, 1326507024  ;;  %v1790_v4 = vshll.u32 %v3798_v34, %v1784_v11 }
 0x70d   : > { %v1708_v42 = vsel %vm1700_vm1, %v1691_v31, %v1707_v47  ;;  %v1712_v60 = vsel %vm1700_vm1, %v1694_v51, %v1711_v54  ;;  %v1705_v5 = vsel %vm1699_vm0, %v1702_v23, %v1704_v10  ;;  %v1791_v30 = vshrl.u32 %v3799_v37, %v1785_v49 }
 0x70e   : > { %v1709_v7 = vsel %vm1699_vm0, %v1706_v35, %v1708_v42  ;;  %v1713_v20 = vsel %vm1699_vm0, %v1710_v56, %v1712_v60  ;;  %v1789_v1 = vor.u32 %v1788_v6, %v1787_v58  ;;  %v1793_v22 = vshll.u32 %v3799_v37, %v1784_v11 }
 0x70f   : > { %v4667_v14 = vmul.u32.u64.low %v4641_v17, %v1713_v20  ;;  %v4668_v16 = vmul.u32.u64.high %v4641_v17, %v1713_v20, %v4667_v14  ;;  %v4671_v50 = vmul.u32.u64.low %v4641_v17, %v1709_v7  ;;  %v4672_v62 = vmul.u32.u64.high %v4641_v17, %v1709_v7, %v4671_v50 }
 0x710   : > { %v1792_v18 = vor.u32 %v1791_v30, %v1790_v4  ;;  %v1794_v63 = vshrl.u32 %v3800_v39, %v1785_v49  ;;  %v1796_v26 = vshll.u32 %v3800_v39, %v1784_v11  ;;  %v1797_v28 = vshrl.u32 %v3801_v41, %v1785_v49 }
 0x711   : > { %v1800_v13 = vshrl.u32 %v3802_v48, %v1785_v49  ;;  %v1818_v44 = vshll.u32 %v1778_v24, 8  ;;  %v1721_v55 = vmul.u32 %v4641_v17, %v1705_v5  ;;  %v1786_v15 = vshrl.u32 %v3797_v32, %v1785_v49 }
 0x712   : > { %v1795_v40 = vor.u32 %v1794_v63, %v1793_v22  ;;  %v1799_v8 = vshll.u32 %v3801_v41, %v1784_v11  ;;  %vm1723_vm6 = vc.u32 %v4668_v16, %v4671_v50  ;;  %v1724_v19 = vadd.s32 1, %v4672_v62 }
 0x713   : > { %v1798_v29 = vor.u32 %v1797_v28, %v1796_v26  ;;  %vm1802_vm7 = vcmp.lt.s32.totalorder %v4644_v21, 1  ;;  %vm1804_vm8 = vcmp.lt.s32.totalorder %v4644_v21, 3  ;;  %vm1805_vm9 = vcmp.lt.s32.totalorder %v4644_v21, 4 }
 0x714   : > { %v1801_v57 = vor.u32 %v1800_v13, %v1799_v8  ;;  %v1810_v24 = vsel %vm1802_vm7, %v1789_v1, %v1792_v18  ;;  %v1725_v17 = vsel %vm1723_vm6, %v1724_v19, %v4672_v62  ;;  %v1807_v33 = vsel %vm1805_vm9, %v1795_v40, 2102212464 }
 0x715   : > { %v1811_v46 = vsel %vm1805_vm9, %v1798_v29, 920167782  ;;  %v1814_v43 = vsel %vm1802_vm7, %v1792_v18, %v1795_v40  ;;  %v1726_v31 = vadd.s32 %v1725_v17, %v1721_v55  ;;  %vm1803_vm11 = vcmp.lt.s32.totalorder %v4644_v21, 2 }
 0x716   : > { %v1812_v11 = vsel %vm1804_vm8, %v1795_v40, %v1811_v46  ;;  %v1815_v49 = vsel %vm1805_vm9, %v1801_v57, 1326507024  ;;  %v1806_v51 = vsel %vm1802_vm7, %v1786_v15, %v1789_v1  ;;  %v1808_v52 = vsel %vm1804_vm8, %v1792_v18, %v1807_v33 }
 0x717   : > { %v1813_v23 = vsel %vm1803_vm11, %v1810_v24, %v1812_v11  ;;  %v1816_v53 = vsel %vm1804_vm8, %v1798_v29, %v1815_v49  ;;  %v1727_v35 = vadd.s32 536870912, %v1726_v31  ;;  %v1809_v60 = vsel %vm1803_vm11, %v1806_v51, %v1808_v52 }
 0x718   : > { %v1817_v56 = vsel %vm1803_vm11, %v1814_v43, %v1816_v53  ;;  %v4689_v10 = vmul.u32.u64.low %v1818_v44, %v1813_v23  ;;  %v4690_v47 = vmul.u32.u64.high %v1818_v44, %v1813_v23, %v4689_v10  ;;  %v1825_v21 = vmul.u32 %v1818_v44, %v1809_v60 }
 0x719   : > { %v4692_v54 = vmul.u32.u64.low %v1818_v44, %v1817_v56  ;;  %v4693_v58 = vmul.u32.u64.high %v1818_v44, %v1817_v56, %v4692_v54  ;;  %v1728_v42 = vshrl.u32 %v1727_v35, 30  ;;  %v1722_v55 = vadd.s32 %v4671_v50, %v4668_v16 }
 0x71a   : > { %v1828_v4 = vadd.s32 1, %v4690_v47  ;;  %vm1668_vm0 = vcmp.lt.s32.totalorder %v4628_v2, 0  ;;  %vm1667_vm1 = vcmp.le.f32.partialorder %v1666_v38, 0.7853982  ;;  %vm1772_vm5 = vcmp.lt.s32.totalorder %v4631_v3, 0 }
 0x71b   : > { %v1729_v6 = vshll.u32 %v1728_v42, 30  ;;  %vm1827_vm13 = vc.u32 %v4693_v58, %v4689_v10  ;;  %v1826_v49 = vadd.s32 %v4689_v10, %v4693_v58  ;;  %v1752_v50 = vsub.s32 4, %v1728_v42 }
 0x71c   : > { %v1829_v7 = vsel %vm1827_vm13, %v1828_v4, %v4690_v47  ;;  %vm1771_vm6 = vcmp.le.f32.partialorder %v1770_v9, 0.7853982  ;;  %vm1758_vm11 = vweird.f32 %v4628_v2 }
 0x71d   : > { %v1730_v5 = vsub.s32 %v1726_v31, %v1729_v6  ;;  %v1830_v20 = vadd.s32 %v1829_v7, %v1825_v21  ;;  %v1753_v6 = vsel %vm1668_vm0, %v1752_v50, %v1728_v42 }
 0x71f   : > { %v1732_v30 = vsub.s32 0, %v1730_v5  ;;  %v1831_v14 = vadd.s32 536870912, %v1830_v20 }
 0x721   : > { %v3136_v62 = vmin.u32 %v1732_v30, %v1730_v5  ;;  %v1832_v1 = vshrl.u32 %v1831_v14, 30 }
 0x723   : > { %v1734_v18 = vclz %v3136_v62  ;;  %v1833_v22 = vshll.u32 %v1832_v1, 30 }
 0x725   : > { %v3137_v63 = vadd.s32 4294967294, %v1734_v18  ;;  %v1834_v26 = vsub.s32 %v1830_v20, %v1833_v22  ;;  %v1856_v20 = vsub.s32 4, %v1832_v1 }
 0x727   : > { %vm3138_vm14 = vcmp.lt.s32.totalorder %v3137_v63, 0  ;;  %v1836_v13 = vsub.s32 0, %v1834_v26  ;;  %v1857_v38 = vsel %vm1772_vm5, %v1856_v20, %v1832_v1 }
 0x728   : > { %v1737_v28 = vsel %vm3138_vm14, 0, %v3137_v63  ;;  %v1859_v63 = vsel %vm1771_vm6, 0, %v1857_v38 }
 0x729   : > { %v1738_v44 = vsub.s32 32, %v1737_v28  ;;  %v1742_v15 = vsub.s32 4294967266, %v1737_v28  ;;  %v3140_v40 = vmin.u32 %v1836_v13, %v1834_v26  ;;  %v1739_v8 = vshll.u32 %v1730_v5, %v1737_v28 }
 0x72a   : > { %v1755_v5 = vsel %vm1667_vm1, 0, %v1753_v6 }
 0x72b   : > { %v1740_v19 = vshrl.u32 %v1722_v55, %v1738_v44  ;;  %v1743_v29 = vadd.s32 127, %v1742_v15  ;;  %v1838_v57 = vclz %v3140_v40  ;;  %v1759_v30 = vadd.s32 3, %v1755_v5  ;;  %v1878_v55 = vpop.permute.xlu1 %1877  ;;  %v1898_v5 = vld [vmem:[#allocation8 + $0x28] sm:$0xf] }
 0x72c   : > { %v1863_v15 = vadd.s32 3, %v1859_v63 }
 0x72d   : > { %v1741_v24 = vor.u32 %v1740_v19, %v1739_v8  ;;  %v1744_v17 = vshll.u32 %v1743_v29, 23  ;;  %v3141_v33 = vadd.s32 4294967294, %v1838_v57  ;;  %v1760_v42 = vand.u32 3, %v1759_v30 }
 0x72e   : > { %v1864_v8 = vand.u32 3, %v1863_v15 }
 0x72f   : > { %v1745_v46 = vor.u32 4788187, %v1744_v17  ;;  %vm3142_vm15 = vcmp.lt.s32.totalorder %v3141_v33, 0  ;;  %v1748_v31 = vcvt.s32.f32 %v1741_v24  ;;  %vm1765_vm7 = vcmp.eq.s32.totalorder %v1760_v42, 2  ;;  %v1889_v24 = vpop.permute.xlu1 %1888  ;;  %v1887_v17 = vpop.permute.xlu0 %1886 }
 0x730   : > { %v1841_v11 = vsel %vm3142_vm15, 0, %v3141_v33  ;;  %vm1762_vm8 = vcmp.eq.s32.totalorder %v1760_v42, 0  ;;  %vm1761_vm9 = vcmp.lt.s32.totalorder %v1760_v42, 2  ;;  %vm1869_vm13 = vcmp.eq.s32.totalorder %v1864_v8, 2 }
 0x731   : > { %v1746_v43 = vand.u32 2147483647, %v1745_v46  ;;  %v1842_v51 = vsub.s32 32, %v1841_v11  ;;  %v1846_v52 = vsub.s32 4294967266, %v1841_v11  ;;  %v1843_v23 = vshll.u32 %v1834_v26, %v1841_v11 }
 0x732   : > { %vm1866_vm14 = vcmp.eq.s32.totalorder %v1864_v8, 0  ;;  %vm1865_vm15 = vcmp.lt.s32.totalorder %v1864_v8, 2 }
 0x733   : > { %v1749_v16 = vmul.f32 %v1748_v31, %v1746_v43  ;;  %v1844_v53 = vshrl.u32 %v1826_v49, %v1842_v51  ;;  %v1847_v35 = vadd.s32 127, %v1846_v52  ;;  %v1890_v49 = vsel %vm1487_vm10, %v1887_v17, %v1889_v24 }
 0x734   : > { %vm2077_vm10 = vcmask 48128  }
 0x735   : > { %v1750_v56 = vxor.u32 2147483648, %v1749_v16  ;;  %v1845_v47 = vor.u32 %v1844_v53, %v1843_v23  ;;  %v1848_v54 = vshll.u32 %v1847_v35, 23 }
 0x737   : > { %v1751_v60 = vsel %vm1668_vm0, %v1750_v56, %v1749_v16  ;;  %v1849_v4 = vor.u32 4788187, %v1848_v54  ;;  %v1852_v21 = vcvt.s32.f32 %v1845_v47  ;;  %vm1862_vm0 = vweird.f32 %v4631_v3 }
 0x738   : > { %v1754_v10 = vsel %vm1667_vm1, %v4628_v2, %v1751_v60  ;;  %v3818_v54 = vmov 11   ;;  %v4721_v60 = vld [vmem:[%s5120_s15] sm:$0xff] }
 0x739   : > { %3479 = vcosq.f32 %v1754_v10  ;;  %v1850_v58 = vand.u32 2147483647, %v1849_v4  ;;  %3448 = vset.pattern.permute.xlu0 %v3818_v54 }
 0x73a   : > { %3481 = vsinq.f32 %v1754_v10 }
 0x73b   : > { %v1853_v7 = vmul.f32 %v1852_v21, %v1850_v58 }
 0x73d   : > { %v1854_v14 = vxor.u32 2147483648, %v1853_v7 }
 0x73f   : > { %v1855_v62 = vsel %vm1772_vm5, %v1854_v14, %v1853_v7  ;;  %v2007_v14 = vld [vmem:[#allocation8 + $0x2c] sm:$0xf] }
 0x740   : > { %v1858_v18 = vsel %vm1771_vm6, %v4631_v3, %v1855_v62  ;;  %v1896_v3 = vld [vmem:[#allocation8 + $0x24] sm:$0xf] }
 0x741   : > { %3483 = vcosq.f32 %v1858_v18 }
 0x742   : > { %3485 = vsinq.f32 %v1858_v18 }
 0x743   : > { %v3480_v22 = vpop.eup %3479 }
 0x744   : > { %v3482_v26 = vpop.eup %3481  ;;  %v1766_v28 = vxor.u32 2147483648, %v3480_v22 }
 0x745   : > { %v1763_v13 = vxor.u32 2147483648, %v3482_v26 }
 0x746   : > { %v1767_v44 = vsel %vm1765_vm7, %v1766_v28, %v3482_v26 }
 0x747   : > { %v1764_v40 = vsel %vm1762_vm8, %v3480_v22, %v1763_v13  ;;  %v3820_v22 = vmov 13  }
 0x748   : > { %v1768_v9 = vsel %vm1761_vm9, %v1764_v40, %v1767_v44 }
 0x749   : > { %v1769_v1 = vsel %vm1758_vm11, nan, %v1768_v9 }
 0x74a   : > { %v1874_v19 = vmul.f32 %v1769_v1, %v1769_v1 }
 0x74b   : > { %v3484_v29 = vpop.eup %3483 }
 0x74c   : > { %v1880_v57 = vmul.f32 %v1878_v55, %v1874_v19  ;;  %v3486_v33 = vpop.eup %3485  ;;  %v1870_v46 = vxor.u32 2147483648, %v3484_v29 }
 0x74d   : > { %v1867_v43 = vxor.u32 2147483648, %v3486_v33 }
 0x74e   : > { %v1882_v31 = vadd.f32 %v1880_v57, %v4623_v12  ;;  %v1871_v11 = vsel %vm1869_vm13, %v1870_v46, %v3486_v33 }
 0x74f   : > { %v1868_v2 = vsel %vm1866_vm14, %v3484_v29, %v1867_v43 }
 0x750   : > { %v1884_v51 = vpack.c.bf16 %v1882_v31, %v1882_v31  ;;  %v1872_v52 = vsel %vm1865_vm15, %v1868_v2, %v1871_v11 }
 0x751   : > { %v1873_v16 = vsel %vm1862_vm0, nan, %v1872_v52 }
 0x752   : > { %v1893_v50 = vmul.bf16 %v1890_v49, %v1884_v51  ;;  %v1875_v23 = vmul.f32 %v1873_v16, %v1873_v16 }
 0x754   : > { %1901 = vrot.lane.b32.xlu0 %v1893_v50, %s3805_s5  ;;  %v1881_v53 = vmul.f32 %v1878_v55, %v1875_v23  ;;  %v1960_v47 = vsel %vm660_vm12, %v1893_v50, 0 }
 0x756   : > { %v1883_v35 = vadd.f32 %v1881_v53, %v4625_v61  ;;  %v3819_v61 = vmov 12  }
 0x757   : > { %3449 = vset.pattern.permute.xlu1 %v3819_v61 }
 0x758   : > { %2008 = vrot.lane.b32.xlu0 %v1893_v50, %s3804_s17  ;;  %v1885_v12 = vpack.c.bf16 %v1883_v35, %v1883_v35 }
 0x75a   : > { %v1894_v56 = vmul.bf16 %v1889_v24, %v1885_v12 }
 0x75c   : > { %1903 = vrot.lane.b32.xlu1 %v1894_v56, %s3805_s5  ;;  %3145 = vmatprep.subr.msk.bf16.mxu0 %vm660_vm12, %v1894_v56 }
 0x75d   : > { %1966 = vmatpush1.bf16.msra.mxu0 %v1960_v47  ;;  %2066 = vperm.xlu0 %3448, %v4721_v60  }
 0x760   : > { %2010 = vrot.lane.b32.xlu1 %v1894_v56, %s3804_s17  ;;  %3146 = vmatmul.mubr.msk.bf16.vlgmr.msra.gmra.mrb[20].mxu0 %vm656_vm2, %v1896_v3 }
 0x761   : > { %2364 = vmatprep.mubr.bf16.mxu0 %v3794_v0 }
 0x764   : > { %2084 = vperm.xlu1 %3449, %v4721_v60  }
 0x768   : > { %3450 = vset.pattern.permute.xlu1 %v3820_v22 }
 0x7c6   : > { %v1902_v6 = vpop.permute.xlu0 %1901 }
 0x7ca   : > { %v2009_v21 = vpop.permute.xlu0 %2008 }
 0x7ce   : > { %v1904_v4 = vpop.permute.xlu1 %1903 }
 0x7cf   : > { %v1905_v10 = vsel %vm654_vm3, %v1902_v6, %v1904_v4  ;;  %3143 = vmatprep.subr.msk.bf16.mxu1 %vm660_vm12, %v1904_v4 }
 0x7d0   : > { %v1910_v58 = vsel %vm660_vm12, %v1905_v10, 0 }
 0x7d1   : > { %1916 = vmatpush1.bf16.msra.mxu1 %v1910_v58 }
 0x7d2   : > { %v2011_v7 = vpop.permute.xlu1 %2010 }
 0x7d3   : > { %v2012_v20 = vsel %vm764_vm4, %v2009_v21, %v2011_v7  ;;  %3147 = vmatprep.subr.msk.bf16.mxu1 %vm660_vm12, %v2011_v7 }
 0x7d4   : > { %v2017_v30 = vsel %vm660_vm12, %v2012_v20, 0  ;;  %3144 = vmatmul.mubr.msk.bf16.vlgmr.msra.gmra.mrb[16].mxu1 %vm656_vm2, %v1898_v5 }
 0x7d5   : > { %2023 = vmatpush1.bf16.msra.mxu1 %v2017_v30  ;;  %2054 = vmatprep.mubr.bf16.mxu1 %v3794_v0 }
 0x7dc   : > { %3148 = vmatmul.mubr.msk.bf16.vlgmr.msra.gmra.mrb[20].mxu1 %vm656_vm2, %v2007_v14  ;;  %v2067_v40 = vpop.permute.xlu0 %2066 }
 0x7dd   : > { %2420 = vmatprep.mubr.bf16.mxu1 %v3794_v0 }
 0x7e3   : > { %v2085_v17 = vpop.permute.xlu1 %2084 }
 0x833   : > { %v1999_v62 = vpop.f32.mrb[20].mxu0 }
 0x834   : > { %v2001_v38 = vpop.f32.mrb[21].mxu0 }
 0x835   : > { %v2003_v42 = vpop.f32.mrb[22].mxu0 }
 0x836   : > { %v2004_v18 = vpop.f32.mrb[23].mxu0 }
 0x8a7   : > { %v1949_v63 = vpop.f32.mrb[16].mxu1 }
 0x8a8   : > { %v2000_v26 = vadd.f32 %v1999_v62, %v1949_v63  ;;  %v1951_v28 = vpop.f32.mrb[17].mxu1 }
 0x8a9   : > { %v2002_v13 = vadd.f32 %v2001_v38, %v1951_v28  ;;  %v1953_v55 = vpop.f32.mrb[18].mxu1 }
 0x8aa   : > { %v1954_v44 = vpop.f32.mrb[19].mxu1 }
 0x8af   : > { %v2056_v15 = vpop.f32.mrb[20].mxu1 }
 0x8b0   : > { %v2063_v9 = vadd.f32 %v2056_v15, %v2000_v26  ;;  %v2058_v1 = vpop.f32.mrb[21].mxu1 }
 0x8b1   : > { %v2064_v8 = vadd.f32 %v2058_v1, %v2002_v13  ;;  %v2060_v19 = vpop.f32.mrb[22].mxu1 }
 0x8b2   : > { %v2069_v29 = vadd.f32 %v2067_v40, %v2063_v9  ;;  %v2061_v57 = vpop.f32.mrb[23].mxu1 }
 0x8b3   : > { %v2070_v24 = vadd.f32 %v2067_v40, %v2064_v8 }
 0x8b4   : > { %2073 = vrot.lane.b32.xlu1 %v2069_v29, %s3821_s13 }
 0x8b5   : > { %2075 = vrot.lane.b32.xlu0 %v2070_v24, %s3821_s13  ;;  %s369_s13 = scalar_lea.vmem [#allocation10], %s4211_s18  ;;  %s3831_s18 = smov [#allocation10]  }
 0x8b8   : > { %2300 = vperm.xlu1 %3450, %v4721_v60  }
 0x926   : > { %v2074_v33 = vpop.permute.xlu1 %2073 }
 0x927   : > { %v4740_v46 = vadd.f32 %v2074_v33, %v4508_v25  ;;  %v2076_v43 = vpop.permute.xlu0 %2075 }
 0x928   : > { %v2078_v31 = vsel %vm2077_vm10, %v2074_v33, %v2076_v43 }
 0x929   : > { %v4743_v11 = vmul.f32 %v2085_v17, %v4740_v46  ;;  %v4746_v49 = vadd.f32 %v2078_v31, %v4514_v27 }
 0x92b   : > { %v2092_v2 = vand.u32 2139095040, %v4743_v11  ;;  %v4750_v51 = vmul.f32 %v2085_v17, %v4746_v49  ;;  %v2089_v52 = vand.u32 2147483647, %v4743_v11 }
 0x92d   : > { %v2093_v16 = vshrl.u32 %v2092_v2, 23  ;;  %v2196_v50 = vand.u32 2139095040, %v4750_v51  ;;  %v2096_v53 = vand.u32 8388607, %v2089_v52  ;;  %v2193_v35 = vand.u32 2147483647, %v4750_v51 }
 0x92f   : > { %v3149_v25 = vadd.s32 4294967169, %v2093_v16  ;;  %v2197_v23 = vshrl.u32 %v2196_v50, 23  ;;  %v2097_v47 = vor.u32 8388608, %v2096_v53  ;;  %v2200_v54 = vand.u32 8388607, %v2193_v35 }
 0x931   : > { %v2099_v12 = vadd.s32 1, %v3149_v25  ;;  %v3153_v27 = vadd.s32 4294967169, %v2197_v23  ;;  %v4759_v21 = vshll.u32 %v2097_v47, 8  ;;  %v2201_v30 = vor.u32 8388608, %v2200_v54 }
 0x933   : > { %vm2100_vm1 = vcmp.gt.s32.totalorder %v2099_v12, 0  ;;  %v2203_v56 = vadd.s32 1, %v3153_v27  ;;  %v2241_v50 = vshll.u32 %v2201_v30, 8 }
 0x934   : > { %v2101_v3 = vsel %vm2100_vm1, %v2099_v12, 0 }
 0x935   : > { %v2103_v61 = vand.u32 31, %v2101_v3  ;;  %vm2204_vm5 = vcmp.gt.s32.totalorder %v2203_v56, 0  ;;  %v2102_v4 = vshrl.u32 %v2101_v3, 5 }
 0x936   : > { %v2205_v6 = vsel %vm2204_vm5, %v2203_v56, 0 }
 0x937   : > { %v2104_v10 = vsub.s32 32, %v2103_v61  ;;  %v2207_v58 = vand.u32 31, %v2205_v6  ;;  %v2106_v5 = vshll.u32 %v3797_v32, %v2103_v61  ;;  %v2109_v7 = vshll.u32 %v3798_v34, %v2103_v61 }
 0x938   : > { %v2112_v20 = vshll.u32 %v3799_v37, %v2103_v61  ;;  %v2115_v38 = vshll.u32 %v3800_v39, %v2103_v61  ;;  %v2118_v42 = vshll.u32 %v3801_v41, %v2103_v61  ;;  %vm2121_vm6 = vcmp.lt.s32.totalorder %v2102_v4, 1 }
 0x939   : > { %v2107_v14 = vshrl.u32 %v3798_v34, %v2104_v10  ;;  %v2110_v62 = vshrl.u32 %v3799_v37, %v2104_v10  ;;  %v2208_v18 = vsub.s32 32, %v2207_v58  ;;  %v2113_v22 = vshrl.u32 %v3800_v39, %v2104_v10 }
 0x93a   : > { %v2116_v63 = vshrl.u32 %v3801_v41, %v2104_v10  ;;  %v2119_v26 = vshrl.u32 %v3802_v48, %v2104_v10  ;;  %v2105_v28 = vshrl.u32 %v3797_v32, %v2104_v10  ;;  %vm2122_vm7 = vcmp.lt.s32.totalorder %v2102_v4, 2 }
 0x93b   : > { %v2108_v13 = vor.u32 %v2107_v14, %v2106_v5  ;;  %v2111_v55 = vor.u32 %v2110_v62, %v2109_v7  ;;  %v2114_v44 = vor.u32 %v2113_v22, %v2112_v20  ;;  %vm2123_vm8 = vcmp.lt.s32.totalorder %v2102_v4, 3 }
 0x93c   : > { %v2117_v15 = vor.u32 %v2116_v63, %v2115_v38  ;;  %v2120_v40 = vor.u32 %v2119_v26, %v2118_v42  ;;  %vm2124_vm9 = vcmp.lt.s32.totalorder %v2102_v4, 4  ;;  %v2211_v43 = vshrl.u32 %v3798_v34, %v2208_v18 }
 0x93d   : > { %v2125_v9 = vsel %vm2121_vm6, %v2105_v28, %v2108_v13  ;;  %v2129_v1 = vsel %vm2121_vm6, %v2108_v13, %v2111_v55  ;;  %v2126_v8 = vsel %vm2124_vm9, %v2114_v44, 2102212464  ;;  %v2133_v29 = vsel %vm2121_vm6, %v2111_v55, %v2114_v44 }
 0x93e   : > { %v2130_v19 = vsel %vm2124_vm9, %v2117_v15, 920167782  ;;  %v2134_v57 = vsel %vm2124_vm9, %v2120_v40, 1326507024  ;;  %v2127_v24 = vsel %vm2123_vm8, %v2111_v55, %v2126_v8  ;;  %v2210_v16 = vshll.u32 %v3797_v32, %v2207_v58 }
 0x93f   : > { %v2131_v17 = vsel %vm2123_vm8, %v2114_v44, %v2130_v19  ;;  %v2135_v33 = vsel %vm2123_vm8, %v2117_v15, %v2134_v57  ;;  %v2206_v27 = vshrl.u32 %v2205_v6, 5  ;;  %v2128_v56 = vsel %vm2122_vm7, %v2125_v9, %v2127_v24 }
 0x940   : > { %v2132_v31 = vsel %vm2122_vm7, %v2129_v1, %v2131_v17  ;;  %v2136_v2 = vsel %vm2122_vm7, %v2133_v29, %v2135_v33  ;;  %v2213_v47 = vshll.u32 %v3798_v34, %v2207_v58  ;;  %v2214_v3 = vshrl.u32 %v3799_v37, %v2208_v18 }
 0x941   : > { %v4777_v25 = vmul.u32.u64.low %v4759_v21, %v2136_v2  ;;  %v4778_v23 = vmul.u32.u64.high %v4759_v21, %v2136_v2, %v4777_v25  ;;  %v4781_v53 = vmul.u32.u64.low %v4759_v21, %v2132_v31  ;;  %v4782_v12 = vmul.u32.u64.high %v4759_v21, %v2132_v31, %v4781_v53 }
 0x942   : > { %v2212_v54 = vor.u32 %v2211_v43, %v2210_v16  ;;  %v2216_v61 = vshll.u32 %v3799_v37, %v2207_v58  ;;  %v2217_v10 = vshrl.u32 %v3800_v39, %v2208_v18  ;;  %v2220_v5 = vshrl.u32 %v3801_v41, %v2208_v18 }
 0x943   : > { %v2215_v7 = vor.u32 %v2214_v3, %v2213_v47  ;;  %v2219_v20 = vshll.u32 %v3800_v39, %v2207_v58  ;;  %v2222_v30 = vshll.u32 %v3801_v41, %v2207_v58  ;;  %v2223_v6 = vshrl.u32 %v3802_v48, %v2208_v18 }
 0x944   : > { %v2144_v4 = vmul.u32 %v4759_v21, %v2128_v56  ;;  %vm2146_vm11 = vc.u32 %v4778_v23, %v4781_v53  ;;  %v2147_v14 = vadd.s32 1, %v4782_v12  ;;  %v2218_v62 = vor.u32 %v2217_v10, %v2216_v61 }
 0x945   : > { %v2221_v38 = vor.u32 %v2220_v5, %v2219_v20  ;;  %v2224_v42 = vor.u32 %v2223_v6, %v2222_v30  ;;  %vm2225_vm13 = vcmp.lt.s32.totalorder %v2206_v27, 1  ;;  %vm2228_vm14 = vcmp.lt.s32.totalorder %v2206_v27, 4 }
 0x946   : > { %v2148_v22 = vsel %vm2146_vm11, %v2147_v14, %v4782_v12  ;;  %v2209_v63 = vshrl.u32 %v3797_v32, %v2208_v18  ;;  %v2230_v26 = vsel %vm2228_vm14, %v2218_v62, 2102212464  ;;  %v2233_v58 = vsel %vm2225_vm13, %v2212_v54, %v2215_v7 }
 0x947   : > { %v2149_v28 = vadd.s32 %v2148_v22, %v2144_v4  ;;  %vm2227_vm15 = vcmp.lt.s32.totalorder %v2206_v27, 3  ;;  %v2234_v13 = vsel %vm2228_vm14, %v2221_v38, 920167782  ;;  %v2237_v21 = vsel %vm2225_vm13, %v2215_v7, %v2218_v62 }
 0x948   : > { %vm2226_vm0 = vcmp.lt.s32.totalorder %v2206_v27, 2  ;;  %v2229_v55 = vsel %vm2225_vm13, %v2209_v63, %v2212_v54  ;;  %v2235_v44 = vsel %vm2227_vm15, %v2218_v62, %v2234_v13  ;;  %v2238_v15 = vsel %vm2228_vm14, %v2224_v42, 1326507024 }
 0x949   : > { %v2150_v40 = vadd.s32 536870912, %v2149_v28  ;;  %v2231_v9 = vsel %vm2227_vm15, %v2215_v7, %v2230_v26  ;;  %v2236_v1 = vsel %vm2226_vm0, %v2233_v58, %v2235_v44  ;;  %v2239_v8 = vsel %vm2227_vm15, %v2221_v38, %v2238_v15 }
 0x94a   : > { %v2240_v19 = vsel %vm2226_vm0, %v2237_v21, %v2239_v8  ;;  %v4800_v29 = vmul.u32.u64.low %v2241_v50, %v2236_v1  ;;  %v4801_v57 = vmul.u32.u64.high %v2241_v50, %v2236_v1, %v4800_v29  ;;  %v2232_v33 = vsel %vm2226_vm0, %v2229_v55, %v2231_v9 }
 0x94b   : > { %v2151_v24 = vshrl.u32 %v2150_v40, 30  ;;  %v4803_v18 = vmul.u32.u64.low %v2241_v50, %v2240_v19  ;;  %v4804_v17 = vmul.u32.u64.high %v2241_v50, %v2240_v19, %v4803_v18  ;;  %v2248_v16 = vmul.u32 %v2241_v50, %v2232_v33 }
 0x94c   : > { %v2251_v31 = vadd.s32 1, %v4801_v57  ;;  %v2145_v20 = vadd.s32 %v4781_v53, %v4778_v23  ;;  %vm2091_vm6 = vcmp.lt.s32.totalorder %v4743_v11, 0  ;;  %vm2090_vm7 = vcmp.le.f32.partialorder %v2089_v52, 0.7853982 }
 0x94d   : > { %v2152_v43 = vshll.u32 %v2151_v24, 30  ;;  %vm2250_vm10 = vc.u32 %v4804_v17, %v4800_v29  ;;  %v2175_v55 = vsub.s32 4, %v2151_v24  ;;  %v2249_v23 = vadd.s32 %v4800_v29, %v4804_v17 }
 0x94e   : > { %v2252_v25 = vsel %vm2250_vm10, %v2251_v31, %v4801_v57  ;;  %vm2195_vm8 = vcmp.lt.s32.totalorder %v4750_v51, 0  ;;  %vm4819_vm9 = vcmp.le.f32.partialorder %v2193_v35, 0.7853982  ;;  %vm2181_vm15 = vweird.f32 %v4743_v11 }
 0x94f   : > { %v2153_v2 = vsub.s32 %v2149_v28, %v2152_v43  ;;  %v2253_v27 = vadd.s32 %v2252_v25, %v2248_v16  ;;  %v2176_v57 = vsel %vm2091_vm6, %v2175_v55, %v2151_v24 }
 0x950   : > { %v2178_v31 = vsel %vm2090_vm7, 0, %v2176_v57 }
 0x951   : > { %v2155_v12 = vsub.s32 0, %v2153_v2  ;;  %v2254_v47 = vadd.s32 536870912, %v2253_v27  ;;  %v2182_v16 = vadd.s32 3, %v2178_v31 }
 0x953   : > { %v3150_v56 = vmin.u32 %v2155_v12, %v2153_v2  ;;  %v2255_v54 = vshrl.u32 %v2254_v47, 30 }
 0x955   : > { %v2157_v3 = vclz %v3150_v56  ;;  %v2256_v10 = vshll.u32 %v2255_v54, 30  ;;  %v2279_v12 = vsub.s32 4, %v2255_v54  ;;  %v2183_v56 = vand.u32 3, %v2182_v16 }
 0x957   : > { %v3151_v61 = vadd.s32 4294967294, %v2157_v3  ;;  %v2257_v7 = vsub.s32 %v2253_v27, %v2256_v10  ;;  %v2280_v47 = vsel %vm2195_vm8, %v2279_v12, %v2255_v54  ;;  %vm2188_vm11 = vcmp.eq.s32.totalorder %v2183_v56, 2  ;;  %v2430_v12 = vld [vmem:[#allocation8 + $0x38] sm:$0xf] }
 0x958   : > { %vm2185_vm13 = vcmp.eq.s32.totalorder %v2183_v56, 0  ;;  %vm2184_vm14 = vcmp.lt.s32.totalorder %v2183_v56, 2 }
 0x959   : > { %vm3152_vm1 = vcmp.lt.s32.totalorder %v3151_v61, 0  ;;  %v2259_v6 = vsub.s32 0, %v2257_v7 }
 0x95a   : > { %v2160_v5 = vsel %vm3152_vm1, 0, %v3151_v61 }
 0x95b   : > { %v2161_v30 = vsub.s32 32, %v2160_v5  ;;  %v2165_v50 = vsub.s32 4294967266, %v2160_v5  ;;  %v2162_v4 = vshll.u32 %v2153_v2, %v2160_v5  ;;  %v3154_v38 = vmin.u32 %v2259_v6, %v2257_v7 }
 0x95d   : > { %v2163_v14 = vshrl.u32 %v2145_v20, %v2161_v30  ;;  %v2166_v62 = vadd.s32 127, %v2165_v50  ;;  %v2261_v63 = vclz %v3154_v38  ;;  %v2282_v20 = vsel %vm4819_vm9, 0, %v2280_v47 }
 0x95e   : > { %v2286_v50 = vadd.s32 3, %v2282_v20 }
 0x95f   : > { %v2164_v42 = vor.u32 %v2163_v14, %v2162_v4  ;;  %v2167_v22 = vshll.u32 %v2166_v62, 23  ;;  %v3155_v58 = vadd.s32 4294967294, %v2261_v63  ;;  %v2301_v4 = vpop.permute.xlu1 %2300 }
 0x960   : > { %v2287_v62 = vand.u32 3, %v2286_v50 }
 0x961   : > { %v2168_v26 = vor.u32 4788187, %v2167_v22  ;;  %v2171_v13 = vcvt.s32.f32 %v2164_v42  ;;  %vm3156_vm5 = vcmp.lt.s32.totalorder %v3155_v58, 0 }
 0x962   : > { %v2264_v44 = vsel %vm3156_vm5, 0, %v3155_v58  ;;  %vm2292_vm0 = vcmp.eq.s32.totalorder %v2287_v62, 2  ;;  %vm2289_vm10 = vcmp.eq.s32.totalorder %v2287_v62, 0  ;;  %vm2288_vm1 = vcmp.lt.s32.totalorder %v2287_v62, 2 }
 0x963   : > { %v2169_v28 = vand.u32 2147483647, %v2168_v26  ;;  %v2265_v53 = vsub.s32 32, %v2264_v44  ;;  %v2269_v15 = vsub.s32 4294967266, %v2264_v44  ;;  %v2266_v9 = vshll.u32 %v2257_v7, %v2264_v44 }
 0x964   : > { %vm2285_vm5 = vweird.f32 %v4750_v51 }
 0x965   : > { %v2172_v21 = vmul.f32 %v2171_v13, %v2169_v28  ;;  %v2267_v1 = vshrl.u32 %v2249_v23, %v2265_v53  ;;  %v2270_v8 = vadd.s32 127, %v2269_v15 }
 0x967   : > { %v2173_v40 = vxor.u32 2147483648, %v2172_v21  ;;  %v2268_v33 = vor.u32 %v2267_v1, %v2266_v9  ;;  %v2271_v43 = vshll.u32 %v2270_v8, 23  ;;  %v3825_v1 = vmov 14  }
 0x968   : > { %3451 = vset.pattern.permute.xlu0 %v3825_v1  ;;  %v3826_v8 = vmov 15  }
 0x969   : > { %v2174_v19 = vsel %vm2091_vm6, %v2173_v40, %v2172_v21  ;;  %v2272_v29 = vor.u32 4788187, %v2271_v43  ;;  %v2275_v2 = vcvt.s32.f32 %v2268_v33  ;;  %3452 = vset.pattern.permute.xlu1 %v3826_v8  ;;  %vm2321_vm6 = vcmask 957440  }
 0x96a   : > { %v2177_v18 = vsel %vm2090_vm7, %v4743_v11, %v2174_v19  ;;  %vm2377_vm7 = vcmask 998400  }
 0x96b   : > { %3487 = vcosq.f32 %v2177_v18  ;;  %v2273_v17 = vand.u32 2147483647, %v2272_v29 }
 0x96c   : > { %3489 = vsinq.f32 %v2177_v18 }
 0x96d   : > { %v2276_v25 = vmul.f32 %v2275_v2, %v2273_v17 }
 0x96f   : > { %v2277_v27 = vxor.u32 2147483648, %v2276_v25 }
 0x971   : > { %v2278_v24 = vsel %vm2195_vm8, %v2277_v27, %v2276_v25  ;;  %vm2435_vm8 = vcmask 916480  }
 0x972   : > { %v2281_v61 = vsel %vm4819_vm9, %v4750_v51, %v2278_v24  ;;  %v3827_v51 = vmov 16  }
 0x973   : > { %3491 = vcosq.f32 %v2281_v61 }
 0x974   : > { %3493 = vsinq.f32 %v2281_v61 }
 0x975   : > { %v3488_v3 = vpop.eup %3487 }
 0x976   : > { %v3490_v10 = vpop.eup %3489  ;;  %v2189_v5 = vxor.u32 2147483648, %v3488_v3 }
 0x977   : > { %v2186_v7 = vxor.u32 2147483648, %v3490_v10 }
 0x978   : > { %v2190_v35 = vsel %vm2188_vm11, %v2189_v5, %v3490_v10 }
 0x979   : > { %v2187_v30 = vsel %vm2185_vm13, %v3488_v3, %v2186_v7 }
 0x97a   : > { %v2191_v54 = vsel %vm2184_vm14, %v2187_v30, %v2190_v35 }
 0x97b   : > { %v2192_v6 = vsel %vm2181_vm15, nan, %v2191_v54 }
 0x97c   : > { %v2297_v14 = vmul.f32 %v2192_v6, %v2192_v6 }
 0x97d   : > { %v3492_v42 = vpop.eup %3491 }
 0x97e   : > { %v2303_v38 = vmul.f32 %v2301_v4, %v2297_v14  ;;  %v3494_v63 = vpop.eup %3493  ;;  %v2293_v26 = vxor.u32 2147483648, %v3492_v42 }
 0x97f   : > { %v2290_v58 = vxor.u32 2147483648, %v3494_v63 }
 0x980   : > { %v2305_v22 = vadd.f32 %v2303_v38, %v4740_v46  ;;  %v2294_v13 = vsel %vm2292_vm0, %v2293_v26, %v3494_v63 }
 0x981   : > { %v2291_v21 = vsel %vm2289_vm10, %v3492_v42, %v2290_v58 }
 0x982   : > { %v2307_v28 = vpack.c.bf16 %v2305_v22, %v2305_v22  ;;  %v2295_v55 = vsel %vm2288_vm1, %v2291_v21, %v2294_v13 }
 0x983   : > { %v2296_v44 = vsel %vm2285_vm5, nan, %v2295_v55 }
 0x984   : > { %v2309_v11 = vmul.bf16 %v2307_v28, %v4364_v59  ;;  %v2298_v23 = vmul.f32 %v2296_v44, %v2296_v44 }
 0x986   : > { %2317 = vrot.lane.b32.xlu0 %v2309_v11, %s3822_s1  ;;  %v2304_v53 = vmul.f32 %v2301_v4, %v2298_v23 }
 0x988   : > { %v2306_v15 = vadd.f32 %v2304_v53, %v4746_v49 }
 0x98a   : > { %2373 = vrot.lane.b32.xlu0 %v2309_v11, %s3823_s16  ;;  %v2308_v40 = vpack.c.bf16 %v2306_v15, %v2306_v15 }
 0x98c   : > { %v2310_v9 = vmul.bf16 %v2308_v40, %v4357_v45 }
 0x98e   : > { %2431 = vrot.lane.b32.xlu0 %v2309_v11, %s3824_s24  ;;  %2319 = vrot.lane.b32.xlu1 %v2310_v9, %s3822_s1 }
 0x992   : > { %2490 = vperm.xlu0 %3451, %v4721_v60   ;;  %2375 = vrot.lane.b32.xlu1 %v2310_v9, %s3823_s16 }
 0x996   : > { %2721 = vrot.lane.b32.xlu0 %v4364_v59, %s3822_s1  ;;  %2433 = vrot.lane.b32.xlu1 %v2310_v9, %s3824_s24  ;;  %v2314_v59 = vld [vmem:[#allocation8 + $0x34] sm:$0xf]  ;;  %s5132_s24 = sld [smem:[#allocation27_spill]] }
 0x99a   : > { %2496 = vperm.xlu1 %3452, %v4721_v60  }
 0x99c   : > { %s5133_s8 = smov %s5132_s24 }
 0x99e   : > { %3453 = vset.pattern.permute.xlu1 %v3827_v51 }
 0x99f   : > { %2712 = vperm.xlu1 %3453, %v4721_v60  }
 0x9a3   : > { %2723 = vrot.lane.b32.xlu1 %v4357_v45, %s3822_s1  ;;  %v2312_v45 = vld [vmem:[#allocation8 + $0x30] sm:$0xf]  ;;  %s2924_s1 = sshll.u32 %s369_s13, 4  ;;  %s4975_s1 = int_to_ptr.vmem [resolvable:$true] %s2924_s1 }
 0x9f8   : > { %v2318_v19 = vpop.permute.xlu0 %2317 }
 0x9fc   : > { %v2374_v43 = vpop.permute.xlu0 %2373 }
 0xa00   : > { %v2320_v57 = vpop.permute.xlu1 %2319  ;;  %v2432_v17 = vpop.permute.xlu0 %2431 }
 0xa01   : > { %v2322_v18 = vsel %vm2321_vm6, %v2318_v19, %v2320_v57  ;;  %3157 = vmatprep.subr.msk.bf16.mxu0 %vm660_vm12, %v2320_v57 }
 0xa02   : > { %v2327_v33 = vsel %vm660_vm12, %v2322_v18, 0 }
 0xa03   : > { %2333 = vmatpush1.bf16.msra.mxu0 %v2327_v33 }
 0xa04   : > { %v2376_v31 = vpop.permute.xlu1 %2375 }
 0xa05   : > { %v2378_v29 = vsel %vm2377_vm7, %v2374_v43, %v2376_v31  ;;  %3159 = vmatprep.subr.msk.bf16.mxu1 %vm660_vm12, %v2376_v31 }
 0xa06   : > { %v2383_v60 = vsel %vm660_vm12, %v2378_v29, 0  ;;  %3158 = vmatmul.mubr.msk.bf16.vlgmr.msra.gmra.mrb[24].mxu0 %vm656_vm2, %v2314_v59 }
 0xa07   : > { %2389 = vmatpush1.bf16.msra.mxu1 %v2383_v60  ;;  %2478 = vmatprep.mubr.bf16.mxu0 %v3794_v0 }
 0xa08   : > { %v2434_v2 = vpop.permute.xlu1 %2433  ;;  %3185 = vmatprep.subr.bf16.mxu1 %v3803_v36 }
 0xa09   : > { %v2436_v16 = vsel %vm2435_vm8, %v2432_v17, %v2434_v2  ;;  %3161 = vmatprep.subr.msk.bf16.mxu0 %vm660_vm12, %v2434_v2 }
 0xa0a   : > { %v2441_v25 = vsel %vm660_vm12, %v2436_v16, 0  ;;  %3160 = vmatmul.mubr.msk.bf16.vlgmr.msra.gmra.mrb[24].mxu1 %vm656_vm2, %v2312_v45 }
 0xa0b   : > { %2447 = vmatpush1.bf16.msra.mxu0 %v2441_v25 }
 0xa0c   : > { %3191 = vmatprep.subr.bf16.mxu0 %v3803_v36 }
 0xa0e   : > { %3162 = vmatmul.mubr.msk.bf16.vlgmr.msra.gmra.mrb[28].mxu0 %vm656_vm2, %v2430_v12 }
 0xa11   : > { %v2491_v20 = vpop.permute.xlu0 %2490 }
 0xa19   : > { %v2497_v6 = vpop.permute.xlu1 %2496 }
 0xad9   : > { %v2366_v27 = vpop.f32.mrb[24].mxu0 }
 0xada   : > { %v2368_v56 = vpop.f32.mrb[25].mxu0 }
 0xadb   : > { %v2370_v0 = vpop.f32.mrb[26].mxu0 }
 0xadc   : > { %v2371_v52 = vpop.f32.mrb[27].mxu0 }
 0xadd   : > { %v2422_v24 = vpop.f32.mrb[24].mxu1 }
 0xade   : > { %v2423_v47 = vadd.f32 %v2422_v24, %v2366_v27  ;;  %v2424_v3 = vpop.f32.mrb[25].mxu1 }
 0xadf   : > { %v2425_v61 = vadd.f32 %v2424_v3, %v2368_v56  ;;  %v2426_v10 = vpop.f32.mrb[26].mxu1 }
 0xae0   : > { %v2427_v5 = vpop.f32.mrb[27].mxu1 }
 0xae1   : > { %v2480_v7 = vpop.f32.mrb[28].mxu0 }
 0xae2   : > { %v2487_v35 = vadd.f32 %v2480_v7, %v2423_v47  ;;  %v2482_v30 = vpop.f32.mrb[29].mxu0 }
 0xae3   : > { %v2488_v54 = vadd.f32 %v2482_v30, %v2425_v61  ;;  %v2484_v50 = vpop.f32.mrb[30].mxu0 }
 0xae4   : > { %v4852_v4 = vadd.f32 %v2491_v20, %v2487_v35  ;;  %v2485_v14 = vpop.f32.mrb[31].mxu0 }
 0xae5   : > { %v4854_v62 = vadd.f32 %v2491_v20, %v2488_v54 }
 0xae6   : > { %v4857_v38 = vmul.f32 %v2497_v6, %v4852_v4 }
 0xae7   : > { %v4860_v42 = vmul.f32 %v2497_v6, %v4854_v62 }
 0xae8   : > { %v2501_v22 = vand.u32 2147483647, %v4857_v38  ;;  %v2504_v63 = vand.u32 2139095040, %v4857_v38 }
 0xae9   : > { %v2608_v26 = vand.u32 2139095040, %v4860_v42  ;;  %v2605_v13 = vand.u32 2147483647, %v4860_v42 }
 0xaea   : > { %v2505_v58 = vshrl.u32 %v2504_v63, 23  ;;  %v2508_v28 = vand.u32 8388607, %v2501_v22 }
 0xaeb   : > { %v2609_v21 = vshrl.u32 %v2608_v26, 23  ;;  %v2612_v53 = vand.u32 8388607, %v2605_v13 }
 0xaec   : > { %v3163_v11 = vadd.s32 4294967169, %v2505_v58  ;;  %v2509_v23 = vor.u32 8388608, %v2508_v28 }
 0xaed   : > { %v3167_v55 = vadd.s32 4294967169, %v2609_v21  ;;  %v2613_v19 = vor.u32 8388608, %v2612_v53 }
 0xaee   : > { %v2511_v44 = vadd.s32 1, %v3163_v11  ;;  %v4870_v51 = vshll.u32 %v2509_v23, 8 }
 0xaef   : > { %v2615_v15 = vadd.s32 1, %v3167_v55 }
 0xaf0   : > { %vm2512_vm9 = vcmp.gt.s32.totalorder %v2511_v44, 0 }
 0xaf1   : > { %v2513_v40 = vsel %vm2512_vm9, %v2511_v44, 0  ;;  %vm2616_vm11 = vcmp.gt.s32.totalorder %v2615_v15, 0 }
 0xaf2   : > { %v2514_v9 = vshrl.u32 %v2513_v40, 5  ;;  %v2515_v1 = vand.u32 31, %v2513_v40  ;;  %v2617_v8 = vsel %vm2616_vm11, %v2615_v15, 0 }
 0xaf3   : > { %v4873_v33 = vshrl.u32 %v2617_v8, 5  ;;  %v2619_v43 = vand.u32 31, %v2617_v8  ;;  %v2653_v8 = vshll.u32 %v2613_v19, 8 }
 0xaf4   : > { %v2516_v57 = vsub.s32 32, %v2515_v1  ;;  %v2518_v18 = vshll.u32 %v3797_v32, %v2515_v1  ;;  %v2521_v59 = vshll.u32 %v3798_v34, %v2515_v1  ;;  %v2524_v31 = vshll.u32 %v3799_v37, %v2515_v1 }
 0xaf5   : > { %v2527_v29 = vshll.u32 %v3800_v39, %v2515_v1  ;;  %v2530_v60 = vshll.u32 %v3801_v41, %v2515_v1  ;;  %vm2533_vm13 = vcmp.lt.s32.totalorder %v2514_v9, 1  ;;  %vm2534_vm14 = vcmp.lt.s32.totalorder %v2514_v9, 2 }
 0xaf6   : > { %v2519_v45 = vshrl.u32 %v3798_v34, %v2516_v57  ;;  %v2522_v17 = vshrl.u32 %v3799_v37, %v2516_v57  ;;  %v2525_v2 = vshrl.u32 %v3800_v39, %v2516_v57  ;;  %v2517_v16 = vshrl.u32 %v3797_v32, %v2516_v57 }
 0xaf7   : > { %v2528_v25 = vshrl.u32 %v3801_v41, %v2516_v57  ;;  %v2531_v12 = vshrl.u32 %v3802_v48, %v2516_v57  ;;  %v2620_v52 = vsub.s32 32, %v2619_v43  ;;  %vm2535_vm15 = vcmp.lt.s32.totalorder %v2514_v9, 3 }
 0xaf8   : > { %v2520_v27 = vor.u32 %v2519_v45, %v2518_v18  ;;  %v2523_v56 = vor.u32 %v2522_v17, %v2521_v59  ;;  %v2526_v0 = vor.u32 %v2525_v2, %v2524_v31  ;;  %vm2536_vm0 = vcmp.lt.s32.totalorder %v2514_v9, 4 }
 0xaf9   : > { %v2529_v24 = vor.u32 %v2528_v25, %v2527_v29  ;;  %v2532_v47 = vor.u32 %v2531_v12, %v2530_v60  ;;  %v2622_v30 = vshll.u32 %v3797_v32, %v2619_v43  ;;  %v2623_v6 = vshrl.u32 %v3798_v34, %v2620_v52 }
 0xafa   : > { %v2537_v3 = vsel %vm2533_vm13, %v2517_v16, %v2520_v27  ;;  %v2538_v61 = vsel %vm2536_vm0, %v2526_v0, 2102212464  ;;  %v2541_v10 = vsel %vm2533_vm13, %v2520_v27, %v2523_v56  ;;  %v2545_v5 = vsel %vm2533_vm13, %v2523_v56, %v2526_v0 }
 0xafb   : > { %v2539_v7 = vsel %vm2535_vm15, %v2523_v56, %v2538_v61  ;;  %v2542_v20 = vsel %vm2536_vm0, %v2529_v24, 920167782  ;;  %v2546_v35 = vsel %vm2536_vm0, %v2532_v47, 1326507024  ;;  %v2625_v14 = vshll.u32 %v3798_v34, %v2619_v43 }
 0xafc   : > { %v2543_v54 = vsel %vm2535_vm15, %v2526_v0, %v2542_v20  ;;  %v2547_v50 = vsel %vm2535_vm15, %v2529_v24, %v2546_v35  ;;  %v2540_v63 = vsel %vm2534_vm14, %v2537_v3, %v2539_v7  ;;  %v2626_v28 = vshrl.u32 %v3799_v37, %v2620_v52 }
 0xafd   : > { %v2544_v26 = vsel %vm2534_vm14, %v2541_v10, %v2543_v54  ;;  %v2548_v58 = vsel %vm2534_vm14, %v2545_v5, %v2547_v50  ;;  %v2624_v23 = vor.u32 %v2623_v6, %v2622_v30  ;;  %v2628_v34 = vshll.u32 %v3799_v37, %v2619_v43 }
 0xafe   : > { %v4896_v21 = vmul.u32.u64.low %v4870_v51, %v2548_v58  ;;  %v4897_v11 = vmul.u32.u64.high %v4870_v51, %v2548_v58, %v4896_v21  ;;  %v4900_v55 = vmul.u32.u64.low %v4870_v51, %v2544_v26  ;;  %v4901_v44 = vmul.u32.u64.high %v4870_v51, %v2544_v26, %v4900_v55 }
 0xaff   : > { %v2627_v53 = vor.u32 %v2626_v28, %v2625_v14  ;;  %v2629_v15 = vshrl.u32 %v3800_v39, %v2620_v52  ;;  %v2631_v40 = vshll.u32 %v3800_v39, %v2619_v43  ;;  %v2632_v9 = vshrl.u32 %v3801_v41, %v2620_v52 }
 0xb00   : > { %v2635_v1 = vshrl.u32 %v3802_v48, %v2620_v52  ;;  %v2556_v57 = vmul.u32 %v4870_v51, %v2540_v63  ;;  %v2621_v18 = vshrl.u32 %v3797_v32, %v2620_v52  ;;  %v2634_v31 = vshll.u32 %v3801_v41, %v2619_v43 }
 0xb01   : > { %v2630_v59 = vor.u32 %v2629_v15, %v2628_v34  ;;  %vm2558_vm10 = vc.u32 %v4897_v11, %v4900_v55  ;;  %v2559_v37 = vadd.s32 1, %v4901_v44  ;;  %v2633_v29 = vor.u32 %v2632_v9, %v2631_v40 }
 0xb02   : > { %vm2637_vm1 = vcmp.lt.s32.totalorder %v4873_v33, 1  ;;  %v2636_v39 = vor.u32 %v2635_v1, %v2634_v31  ;;  %vm2639_vm5 = vcmp.lt.s32.totalorder %v4873_v33, 3  ;;  %vm2640_vm7 = vcmp.lt.s32.totalorder %v4873_v33, 4 }
 0xb03   : > { %v2645_v48 = vsel %vm2637_vm1, %v2624_v23, %v2627_v53  ;;  %v2560_v51 = vsel %vm2558_vm10, %v2559_v37, %v4901_v44  ;;  %v2642_v19 = vsel %vm2640_vm7, %v2630_v59, 2102212464  ;;  %v2646_v32 = vsel %vm2640_vm7, %v2633_v29, 920167782 }
 0xb04   : > { %v2649_v60 = vsel %vm2637_vm1, %v2627_v53, %v2630_v59  ;;  %v2561_v45 = vadd.s32 %v2560_v51, %v2556_v57  ;;  %vm2638_vm8 = vcmp.lt.s32.totalorder %v4873_v33, 2  ;;  %v2647_v41 = vsel %vm2639_vm5, %v2630_v59, %v2646_v32 }
 0xb05   : > { %v2650_v43 = vsel %vm2640_vm7, %v2636_v39, 1326507024  ;;  %v2641_v17 = vsel %vm2637_vm1, %v2621_v18, %v2624_v23  ;;  %v2643_v2 = vsel %vm2639_vm5, %v2627_v53, %v2642_v19  ;;  %v2648_v16 = vsel %vm2638_vm8, %v2645_v48, %v2647_v41 }
 0xb06   : > { %v2651_v25 = vsel %vm2639_vm5, %v2633_v29, %v2650_v43  ;;  %v2562_v12 = vadd.s32 536870912, %v2561_v45  ;;  %v4918_v56 = vmul.u32.u64.low %v2653_v8, %v2648_v16  ;;  %v4919_v0 = vmul.u32.u64.high %v2653_v8, %v2648_v16, %v4918_v56 }
 0xb07   : > { %v2652_v27 = vsel %vm2638_vm8, %v2649_v60, %v2651_v25  ;;  %v2644_v3 = vsel %vm2638_vm8, %v2641_v17, %v2643_v2  ;;  %v2557_v21 = vadd.s32 %v4900_v55, %v4897_v11  ;;  %vm2503_vm14 = vcmp.lt.s32.totalorder %v4857_v38, 0 }
 0xb08   : > { %v4921_v52 = vmul.u32.u64.low %v2653_v8, %v2652_v27  ;;  %v4922_v24 = vmul.u32.u64.high %v2653_v8, %v2652_v27, %v4921_v52  ;;  %v2563_v47 = vshrl.u32 %v2562_v12, 30  ;;  %v2663_v10 = vadd.s32 1, %v4919_v0 }
 0xb09   : > { %v2660_v33 = vmul.u32 %v2653_v8, %v2644_v3  ;;  %vm2502_vm15 = vcmp.le.f32.partialorder %v2501_v22, 0.7853982  ;;  %vm2607_vm0 = vcmp.lt.s32.totalorder %v4860_v42, 0  ;;  %vm2606_vm10 = vcmp.le.f32.partialorder %v2605_v13, 0.7853982 }
 0xb0a   : > { %v2564_v61 = vshll.u32 %v2563_v47, 30  ;;  %vm2662_vm9 = vc.u32 %v4922_v24, %v4918_v56  ;;  %v2661_v29 = vadd.s32 %v4918_v56, %v4922_v24  ;;  %v2587_v55 = vsub.s32 4, %v2563_v47 }
 0xb0b   : > { %v2664_v7 = vsel %vm2662_vm9, %v2663_v10, %v4919_v0  ;;  %vm2593_vm8 = vweird.f32 %v4857_v38 }
 0xb0c   : > { %v2565_v5 = vsub.s32 %v2561_v45, %v2564_v61  ;;  %v2665_v20 = vadd.s32 %v2664_v7, %v2660_v33  ;;  %v2588_v17 = vsel %vm2503_vm14, %v2587_v55, %v2563_v47 }
 0xb0d   : > { %v2590_v27 = vsel %vm2502_vm15, 0, %v2588_v17 }
 0xb0e   : > { %v2567_v35 = vsub.s32 0, %v2565_v5  ;;  %v2666_v30 = vadd.s32 536870912, %v2665_v20  ;;  %v2594_v52 = vadd.s32 3, %v2590_v27 }
 0xb10   : > { %v3164_v54 = vmin.u32 %v2567_v35, %v2565_v5  ;;  %v2667_v50 = vshrl.u32 %v2666_v30, 30  ;;  %v2595_v47 = vand.u32 3, %v2594_v52  ;;  %v2713_v35 = vpop.permute.xlu1 %2712 }
 0xb12   : > { %v2569_v6 = vclz %v3164_v54  ;;  %v2668_v14 = vshll.u32 %v2667_v50, 30  ;;  %v2691_v0 = vsub.s32 4, %v2667_v50  ;;  %vm2600_vm1 = vcmp.eq.s32.totalorder %v2595_v47, 2 }
 0xb13   : > { %vm2597_vm5 = vcmp.eq.s32.totalorder %v2595_v47, 0  ;;  %vm2596_vm7 = vcmp.lt.s32.totalorder %v2595_v47, 2 }
 0xb14   : > { %v3165_v63 = vadd.s32 4294967294, %v2569_v6  ;;  %v2669_v26 = vsub.s32 %v2665_v20, %v2668_v14  ;;  %v2692_v22 = vsel %vm2607_vm0, %v2691_v0, %v2667_v50 }
 0xb15   : > { %v2694_v33 = vsel %vm2606_vm10, 0, %v2692_v22 }
 0xb16   : > { %vm3166_vm11 = vcmp.lt.s32.totalorder %v3165_v63, 0  ;;  %v2671_v28 = vsub.s32 0, %v2669_v26  ;;  %v2698_v54 = vadd.s32 3, %v2694_v33 }
 0xb17   : > { %v2572_v58 = vsel %vm3166_vm11, 0, %v3165_v63 }
 0xb18   : > { %v2573_v44 = vsub.s32 32, %v2572_v58  ;;  %v2577_v23 = vsub.s32 4294967266, %v2572_v58  ;;  %v3168_v53 = vmin.u32 %v2671_v28, %v2669_v26  ;;  %v2574_v34 = vshll.u32 %v2565_v5, %v2572_v58  ;;  %v2724_v28 = vpop.permute.xlu1 %2723 }
 0xb19   : > { %v2699_v14 = vand.u32 3, %v2698_v54 }
 0xb1a   : > { %v2575_v15 = vshrl.u32 %v2557_v21, %v2573_v44  ;;  %v2578_v40 = vadd.s32 127, %v2577_v23  ;;  %v2673_v9 = vclz %v3168_v53  ;;  %v2722_v21 = vpop.permute.xlu0 %2721 }
 0xb1b   : > { %vm2704_vm9 = vcmp.eq.s32.totalorder %v2699_v14, 2  ;;  %vm2701_vm11 = vcmp.eq.s32.totalorder %v2699_v14, 0 }
 0xb1c   : > { %v2576_v1 = vor.u32 %v2575_v15, %v2574_v34  ;;  %v2579_v8 = vshll.u32 %v2578_v40, 23  ;;  %v3169_v57 = vadd.s32 4294967294, %v2673_v9  ;;  %v2725_v40 = vsel %vm2321_vm6, %v2722_v21, %v2724_v28 }
 0xb1e   : > { %v2580_v18 = vor.u32 4788187, %v2579_v8  ;;  %vm3170_vm13 = vcmp.lt.s32.totalorder %v3169_v57, 0  ;;  %v2583_v31 = vcvt.s32.f32 %v2576_v1 }
 0xb1f   : > { %v2676_v37 = vsel %vm3170_vm13, 0, %v3169_v57  ;;  %vm2700_vm13 = vcmp.lt.s32.totalorder %v2699_v14, 2 }
 0xb20   : > { %v2581_v59 = vand.u32 2147483647, %v2580_v18  ;;  %v2677_v39 = vsub.s32 32, %v2676_v37  ;;  %v2681_v48 = vsub.s32 4294967266, %v2676_v37  ;;  %v2678_v51 = vshll.u32 %v2669_v26, %v2676_v37 }
 0xb22   : > { %v2584_v11 = vmul.f32 %v2583_v31, %v2581_v59  ;;  %v2679_v19 = vshrl.u32 %v2661_v29, %v2677_v39  ;;  %v2682_v32 = vadd.s32 127, %v2681_v48  ;;  %v3829_v39 = vmov 17   ;;  %v3505_v48 = vld [vmem:[%s5120_s15] sm:$0xff] }
 0xb23   : > { %3454 = vset.pattern.permute.xlu0 %v3829_v39 }
 0xb24   : > { %v2585_v60 = vxor.u32 2147483648, %v2584_v11  ;;  %v2680_v45 = vor.u32 %v2679_v19, %v2678_v51  ;;  %v2683_v41 = vshll.u32 %v2682_v32, 23  ;;  %v2733_v32 = vld [vmem:[#allocation8 + $0x40] sm:$0xf] }
 0xb26   : > { %v2586_v43 = vsel %vm2503_vm14, %v2585_v60, %v2584_v11  ;;  %v2684_v2 = vor.u32 4788187, %v2683_v41  ;;  %v2687_v12 = vcvt.s32.f32 %v2680_v45  ;;  %vm2697_vm14 = vweird.f32 %v4860_v42 }
 0xb27   : > { %v2589_v16 = vsel %vm2502_vm15, %v4857_v38, %v2586_v43  ;;  %vm3828_vm15 = vmmov 0   ;;  %v2834_v43 = vld [vmem:[#allocation8 + $0x44] sm:$0xf] }
 0xb28   : > { %3495 = vcosq.f32 %v2589_v16  ;;  %v2685_v25 = vand.u32 2147483647, %v2684_v2  ;;  %3187 = vmatprep.mubr.msk.bf16.mxu1 %vm3828_vm15, %v3803_v36  ;;  %3193 = vmatprep.mubr.msk.bf16.mxu0 %vm3828_vm15, %v3803_v36 }
 0xb29   : > { %3497 = vsinq.f32 %v2589_v16 }
 0xb2a   : > { %v2688_v56 = vmul.f32 %v2687_v12, %v2685_v25 }
 0xb2c   : > { %v2689_v24 = vxor.u32 2147483648, %v2688_v56 }
 0xb2e   : > { %v2690_v3 = vsel %vm2607_vm0, %v2689_v24, %v2688_v56 }
 0xb2f   : > { %v2693_v61 = vsel %vm2606_vm10, %v4860_v42, %v2690_v3 }
 0xb30   : > { %3499 = vcosq.f32 %v2693_v61 }
 0xb31   : > { %3501 = vsinq.f32 %v2693_v61 }
 0xb32   : > { %v3496_v10 = vpop.eup %3495 }
 0xb33   : > { %v3498_v5 = vpop.eup %3497  ;;  %v2601_v7 = vxor.u32 2147483648, %v3496_v10 }
 0xb34   : > { %v2598_v20 = vxor.u32 2147483648, %v3498_v5 }
 0xb35   : > { %v2602_v30 = vsel %vm2600_vm1, %v2601_v7, %v3498_v5 }
 0xb36   : > { %v2599_v6 = vsel %vm2597_vm5, %v3496_v10, %v2598_v20 }
 0xb37   : > { %v2603_v13 = vsel %vm2596_vm7, %v2599_v6, %v2602_v30 }
 0xb38   : > { %v2604_v50 = vsel %vm2593_vm8, nan, %v2603_v13 }
 0xb39   : > { %v2709_v63 = vmul.f32 %v2604_v50, %v2604_v50 }
 0xb3a   : > { %v3500_v26 = vpop.eup %3499 }
 0xb3b   : > { %v2715_v58 = vmul.f32 %v2713_v35, %v2709_v63  ;;  %v3502_v44 = vpop.eup %3501  ;;  %v2705_v23 = vxor.u32 2147483648, %v3500_v26 }
 0xb3c   : > { %v2702_v53 = vxor.u32 2147483648, %v3502_v44 }
 0xb3d   : > { %v2717_v34 = vadd.f32 %v2715_v58, %v4852_v4  ;;  %v2706_v15 = vsel %vm2704_vm9, %v2705_v23, %v3502_v44  ;;  %v2731_v4 = vld [vmem:[#allocation8 + $0x3c] sm:$0xf] }
 0xb3e   : > { %v2703_v38 = vsel %vm2701_vm11, %v3500_v26, %v2702_v53 }
 0xb3f   : > { %v2719_v9 = vpack.c.bf16 %v2717_v34, %v2717_v34  ;;  %v2707_v1 = vsel %vm2700_vm13, %v2703_v38, %v2706_v15 }
 0xb40   : > { %v2708_v8 = vsel %vm2697_vm14, nan, %v2707_v1 }
 0xb41   : > { %v2728_v57 = vmul.bf16 %v2725_v40, %v2719_v9  ;;  %v2710_v18 = vmul.f32 %v2708_v8, %v2708_v8 }
 0xb43   : > { %2736 = vrot.lane.b32.xlu0 %v2728_v57, %s3805_s5  ;;  %v2791_v59 = vsel %vm660_vm12, %v2728_v57, 0  ;;  %v2716_v31 = vmul.f32 %v2713_v35, %v2710_v18 }
 0xb44   : > { %3192 = vmatpush3.bf16.msra.mxu0 %v2791_v59 }
 0xb45   : > { %v2718_v42 = vadd.f32 %v2716_v31, %v4854_v62 }
 0xb47   : > { %2835 = vrot.lane.b32.xlu0 %v2728_v57, %s3804_s17  ;;  %3194 = vmatmul.mubr.msk.bf16.vlgmr.msra.gmra.mrb[32].mxu0 %vm656_vm2, %v2731_v4  ;;  %v2720_v37 = vpack.c.bf16 %v2718_v42, %v2718_v42 }
 0xb49   : > { %v2729_v29 = vmul.bf16 %v2724_v28, %v2720_v37 }
 0xb4b   : > { %2738 = vrot.lane.b32.xlu1 %v2729_v29, %s3805_s5  ;;  %2888 = vperm.xlu0 %3454, %v3505_v48   ;;  %s3830_s5 = smov 116  }
 0xb4f   : > { %2837 = vrot.lane.b32.xlu1 %v2729_v29, %s3804_s17  ;;  %s5130_s17 = sld [smem:[#allocation18_spill]] }
 0xb55   : > { %s3175_s3 = sshll.u32 %s5130_s17, 1  ;;  %s3624_s17 = scalar_lea.vmem %s4975_s1, 128 }
 0xb56   : > { %s2920_s9 = sadd.s32 %s5121_s7, %s3175_s3  ;;  %s2909_s7 = scalar_lea.sflag [#allocation4], %s318_s12 }
 0xb57   : > { %s3176_s10 = sshll.u32 %s2920_s9, 7  ;;  %p3625_p13 = scmp.ne.s32.totalorder %s4975_s1, %s3624_s17 }
 0xb58   : > { %s4973_s21 = scalar_lea.hbm %s5132_s24, %s3176_s10 }
 0xb59   : > { %p3626_p11 = pnand %p3625_p13, %p5134_p3 }
 0xb5b   : > { %p3627_p1 = pneg %p3626_p11 }
 0xbb5   : > { %v2737_v11 = vpop.permute.xlu0 %2736 }
 0xbb9   : > { %v2836_v19 = vpop.permute.xlu0 %2835 }
 0xbbd   : > { %v2739_v55 = vpop.permute.xlu1 %2738 }
 0xbbe   : > { %v2740_v62 = vsel %vm654_vm3, %v2737_v11, %v2739_v55 }
 0xbbf   : > { %v2745_v51 = vsel %vm660_vm12, %v2740_v62, 0 }
 0xbc0   : > { %3186 = vmatpush3.bf16.msra.mxu1 %v2745_v51 }
 0xbc1   : > { %v2838_v60 = vpop.permute.xlu1 %2837  ;;  %3197 = vmatprep.subr.bf16.mxu1 %v3803_v36 }
 0xbc2   : > { %v2839_v45 = vsel %vm764_vm4, %v2836_v19, %v2838_v60 }
 0xbc3   : > { %v2844_v41 = vsel %vm660_vm12, %v2839_v45, 0  ;;  %3188 = vmatmul.mubr.msk.bf16.vlgmr.msra.gmra.mrb[28].mxu1 %vm656_vm2, %v2733_v32  ;;  %vm2904_vm12 = vcmask 949248  }
 0xbc4   : > { %3198 = vmatpush3.bf16.msra.mxu1 %v2844_v41  ;;  %3199 = vmatprep.mubr.msk.bf16.mxu1 %vm3828_vm15, %v3803_v36 }
 0xbca   : > { %v2889_v3 = vpop.permute.xlu0 %2888 }
 0xbcb   : > { %3200 = vmatmul.mubr.msk.bf16.vlgmr.msra.gmra.mrb[32].mxu1 %vm656_vm2, %v2834_v43 }
 0xc1a   : > { %v2827_v17 = vpop.f32.mrb[32].mxu0 }
 0xc1b   : > { %v3195_v2 = vpop.f32.mrb[33].mxu0 }
 0xc1c   : > { %v2830_v16 = vpop.f32.mrb[34].mxu0 }
 0xc1d   : > { %v3196_v25 = vpop.f32.mrb[35].mxu0 }
 0xc96   : > { %v2781_v12 = vpop.f32.mrb[28].mxu1 }
 0xc97   : > { %v3189_v27 = vpop.f32.mrb[29].mxu1  ;;  %v2828_v56 = vadd.f32 %v2827_v17, %v2781_v12 }
 0xc98   : > { %v2784_v0 = vpop.f32.mrb[30].mxu1 }
 0xc99   : > { %v3190_v52 = vpop.f32.mrb[31].mxu1 }
 0xc9e   : > { %v2880_v24 = vpop.f32.mrb[32].mxu1 }
 0xc9f   : > { %v2886_v22 = vadd.f32 %v2880_v24, %v2828_v56  ;;  %v3201_v47 = vpop.f32.mrb[33].mxu1 }
 0xca0   : > { %v2883_v36 = vpop.f32.mrb[34].mxu1 }
 0xca1   : > { %v2891_v61 = vadd.f32 %v2889_v3, %v2886_v22  ;;  %v3202_v10 = vpop.f32.mrb[35].mxu1 }
 0xca3   : > { %2893 = vrot.lane.b32.xlu1 %v2891_v61, %s3795_s11 }
 0xd15   : > { %v2894_v33 = vpop.permute.xlu1 %2893 }
 0xd16   : > { %v2896_v5 = vadd.f32 %v2894_v33, %v4740_v46  ;;  %v2897_v7 = vadd.f32 %v2894_v33, %v4746_v49 }
 0xd18   : > { %2902 = vrot.lane.b32.xlu0 %v2897_v7, %s3830_s5  ;;  %2900 = vrot.lane.b32.xlu1 %v2896_v5, %s3830_s5  ;;  %s3628_s5 = sshll.u32 %s3831_s18, 4  ;;  %s3629_s5 = int_to_ptr.vmem [resolvable:$false] %s3628_s5 }
 0xd19   : > { %s3630_s3 = scalar_lea.vmem %s3629_s5, 256  ;;  %p3631_p10 = scmp.lt.s32.totalorder %s4975_s1, %s3629_s5 }
 0xd1a   : > { %p3632_p7 = scmp.lt.s32.totalorder %s3630_s3, %s3624_s17 }
 0xd1c   : > { %p3633_p4 = por %p3632_p7, %p3631_p10 }
 0xd1e   : > { %p3634_p9 = pnand %p3633_p4, %p3627_p1 }
 0xd8a   : > { %v2903_v20 = vpop.permute.xlu0 %2902  ;;  %v2901_v35 = vpop.permute.xlu1 %2900 }
 0xd8b   : > { %v2905_v46 = vsel %vm2904_vm12, %v2901_v35, %v2903_v20 }
 0xd8c   : > { %2907 = vst [vmem:[%s369_s13] sm:$0xff] %v2905_v46 }
 0xd8d   : > { %3637 = shalt.err (!%p3634_p9)
}
 0xd8e   : > { %s3638_s12 = scalar_lea.hbm %s4973_s21, 128  ;;  %s3642_s13 = scalar_lea.hbm %s5133_s8, 512 }
 0xd8f   : > { %p3639_p8 = scmp.ne.s32.totalorder %s4973_s21, %s3638_s12  ;;  %p3643_p5 = scmp.lt.u32.totalorder %s4973_s21, %s5133_s8 }
 0xd90   : > { %p3644_p2 = scmp.lt.u32.totalorder %s3642_s13, %s3638_s12  ;;  %p3646_p13 = scmp.lt.u32.totalorder %s3638_s12, %s4973_s21 }
 0xd91   : > { %p3640_p12 = pnand %p3639_p8, %p5134_p3 }
 0xd92   : > { %p3645_p0 = por %p3644_p2, %p3643_p5 }
 0xd93   : > { %p3641_p6 = pneg %p3640_p12 }
 0xd94   : > { %p3647_p11 = por %p3646_p13, %p3645_p0 }
 0xd96   : > { %p3648_p1 = pnand %p3647_p11, %p3641_p6 }
 0xd98   : > { %3651 = shalt.err (!%p3648_p1)
}
 0xd99   : > { %3261 = dma.vmem_to_hbm [thread:$0]  (%p5134_p3), %s4975_s1, 128, %s4973_s21, %s2909_s7  }
 0xd9a PF: > { %s5135_s24 = sld [smem:[#allocation16_spill]]  ;;  %s5136_s17 = sld [smem:[#allocation22_spill]] }
 0xd9b   : > { %p3284_p10 = scmp.ge.s32.totalorder %s3786_s6, 2 }
 0xda0   : > { %s2936_s18 = sand.u32 1, %s5135_s24   ;;  %p5137_p7 = scmp.ne.s32.totalorder %s5136_s17, 0 }
 0xda1   : > { %s2937_s5 = scalar_lea.sflag [#allocation4], %s2936_s18 }
 0xda2   : > { %p3278_p4 = pnand %p3284_p10, %p5137_p7 }
 0xda4   : > { %3725 = dma.done.wait (!%p3278_p4), %s2937_s5, 128  }
 0xda5   : > { %3727 = vsyncadd (!%p3278_p4), %s2937_s5, 4294967168  ;;  %s25_s6 = sadd.s32 1, %s3786_s6   ;;  %s5139_s1 = sld [smem:[#allocation19_spill]] }
 0xda6   : > { %p5005_p9 = scmp.ge.s32.totalorder %s25_s6, 6   ;;  %s5140_s7 = sld [smem:[#allocation23_spill]] }
 0xda7   : > { %s5141_s18 = smov %s3738_s19  ;;  %s5142_s19 = smov %s3742_s20 }
 0xda8   : > { %s5143_s20 = smov %s4156_s4  ;;  %s5144_s21 = smov %s3750_s22 }
 0xda9   : > { %s5145_s22 = smov %s3754_s23  ;;  %s5146_s23 = smov %s4092_s14 }
 0xdaa   : > { %s5147_s24 = smov %s3762_s25  ;;  %s5148_s25 = smov %s3766_s26 }
 0xdab   : > { %s5149_s26 = smov %s4087_s27  ;;  %s5150_s27 = smov %s3778_s29 }
 0xdac   : > { %s5151_s28 = smov %s3782_s30  ;;  %s5152_s29 = smov %s5139_s1 }
 0xdad   : > { %s5153_s30 = smov %s5140_s7  ;;  %24 = sbr.rel (!%p5005_p9) target bundleno = 18 (0x12), region = 130 }
 0xdb4   :  { %2942 = vsyncpa [#allocation3], 1 }
 0xdb5   :  { %2944 = vsyncpa [#allocation3 + $0x1], 1 }
 0xdb6   :  { %2945 = vsyncpa [#allocation6], 1 }
 0xdb7   :  { %2947 = vsyncpa [#allocation6 + $0x1], 1 }
 0xdb8   :  { %2948 = vsyncpa [#allocation9], 1 }
 0xdb9   :  { %2949 = vsyncpa [#allocation4], 1 }
 0xdba   :  { %2951 = vsyncpa [#allocation4 + $0x1], 1 }

</bundles_post_ra>
